<compile_context>
chip_gen: v5e
topology: v5e:2x2
jax: 0.10.0
libtpu: 0.0.40
codegen_flags: <defaults>
</compile_context>

<pallas_src>
import functools

import jax
import jax.numpy as jnp
from jax.experimental import pallas as pl
from jax.experimental.pallas import tpu as pltpu


_COMPILER_PARAMS = pltpu.CompilerParams(
    dimension_semantics=("parallel",),        # megacore-splittable row-tile axis
    vmem_limit_bytes=32 * 1024 * 1024,        # v7x-safe budget; re-derive if tm / H grow
)


def _mlp3_ln(a16, b16, c16, w1a, w1b, w1c, b1, w2, b2, g, bt):
    """MLP(concat[a|b|c]) -> LayerNorm on a row tile, with W1 pre-split into 3 slabs.

    a16/b16/c16: (TM, H) bf16.  w*: (H, H) bf16.  b1/b2/g/bt: (1, H) f32.
    MXU in bf16 with f32 accumulation; everything else f32.
    """
    h = jnp.dot(a16, w1a, preferred_element_type=jnp.float32)
    h = h + jnp.dot(b16, w1b, preferred_element_type=jnp.float32)
    h = h + jnp.dot(c16, w1c, preferred_element_type=jnp.float32)
    h = jnp.maximum(h + b1, 0.0)                                  # ReLU (f32)

    y = jnp.dot(h.astype(jnp.bfloat16), w2, preferred_element_type=jnp.float32) + b2

    # LayerNorm over hidden dim (eps = 1e-5, PyTorch default), f32.
    mean = jnp.mean(y, axis=-1, keepdims=True)
    cen = y - mean
    var = jnp.mean(cen * cen, axis=-1, keepdims=True)
    return cen * jax.lax.rsqrt(var + 1e-5) * g + bt


def _edge_mlp_kernel(a_ref, b_ref, c_ref,
                     w1a_ref, w1b_ref, w1c_ref, b1_ref,
                     w2_ref, b2_ref, g_ref, bt_ref,
                     new_ref, res_ref):
    """Edge processor: e_new = MLP_LN([x_src | x_dst | e]); also emits e + e_new.

    a/b: (TM, H) bf16 gathered node features.  c: (TM, H) f32 edge features.
    """
    c = c_ref[...]
    e_new = _mlp3_ln(a_ref[...], b_ref[...], c.astype(jnp.bfloat16),
                     w1a_ref[...], w1b_ref[...], w1c_ref[...], b1_ref[...],
                     w2_ref[...], b2_ref[...], g_ref[...], bt_ref[...])
    new_ref[...] = e_new            # consumed by receiver aggregation
    res_ref[...] = c + e_new        # fused residual: edge_attr + e_new


def _node_mlp_kernel(x_ref, am_ref, aw_ref,
                     w1a_ref, w1b_ref, w1c_ref, b1_ref,
                     w2_ref, b2_ref, g_ref, bt_ref,
                     o_ref):
    """Node processor: x_out = x + MLP_LN([x | agg_mesh | agg_world]) (residual fused)."""
    xv = x_ref[...]
    x_new = _mlp3_ln(xv.astype(jnp.bfloat16),
                     am_ref[...].astype(jnp.bfloat16),
                     aw_ref[...].astype(jnp.bfloat16),
                     w1a_ref[...], w1b_ref[...], w1c_ref[...], b1_ref[...],
                     w2_ref[...], b2_ref[...], g_ref[...], bt_ref[...])
    o_ref[...] = xv + x_new


def _mlp_specs(rows, hidden, tm):
    """Grid + BlockSpecs for one row-tiled MLP call (no padding copies).

    If rows <= tm the block covers the full row dim (allowed even when rows % 8 != 0).
    Otherwise blocks of tm (multiple of 8) with a ragged last block: out-of-bounds rows
    are undefined on read but row-local through the MLP+LayerNorm and masked on store.
    """
    assert tm % 8 == 0, "row tile must be a multiple of the sublane count (8)"
    tm_eff = rows if rows <= tm else tm
    grid = (pl.cdiv(rows, tm_eff),)
    row_spec = pl.BlockSpec((tm_eff, hidden), lambda i: (i, 0))
    # Constant index_map => weights stay resident (no re-DMA across grid steps).
    # TODO(synk): pipeline_mode=pl.Buffered(1) on these would trim ~160 KiB at H=128.
    w_spec = pl.BlockSpec((hidden, hidden), lambda i: (0, 0))
    v_spec = pl.BlockSpec((1, hidden), lambda i: (0, 0))
    return grid, row_spec, w_spec, v_spec


def edge_processor(a_bf16, b_bf16, c_f32, p, *, tm=1024):
    """Returns (e_new, edge_attr + e_new) for one edge set via a single Pallas kernel."""
    rows, hidden = c_f32.shape
    grid, row_spec, w_spec, v_spec = _mlp_specs(rows, hidden, tm)
    return pl.pallas_call(
        _edge_mlp_kernel,
        out_shape=(jax.ShapeDtypeStruct((rows, hidden), jnp.float32),
                   jax.ShapeDtypeStruct((rows, hidden), jnp.float32)),
        grid_spec=pltpu.PrefetchScalarGridSpec(
            num_scalar_prefetch=0,
            grid=grid,
            in_specs=[row_spec, row_spec, row_spec,          # x[src] (bf16), x[dst] (bf16), e (f32)
                      w_spec, w_spec, w_spec, v_spec,        # W1a, W1b, W1c, b1
                      w_spec, v_spec,                        # W2, b2
                      v_spec, v_spec],                       # gamma, beta
            out_specs=[row_spec, row_spec],
        ),
        compiler_params=_COMPILER_PARAMS,
    )(a_bf16, b_bf16, c_f32,
      p["w1a"], p["w1b"], p["w1c"], p["b1"],
      p["w2"], p["b2"], p["gamma"], p["beta"])


def node_processor(x, agg_m, agg_w, p, *, tm=1024):
    """Returns x + MLP_LN([x | agg_m | agg_w]) via a single Pallas kernel."""
    rows, hidden = x.shape
    grid, row_spec, w_spec, v_spec = _mlp_specs(rows, hidden, tm)
    return pl.pallas_call(
        _node_mlp_kernel,
        out_shape=jax.ShapeDtypeStruct((rows, hidden), jnp.float32),
        grid_spec=pltpu.PrefetchScalarGridSpec(
            num_scalar_prefetch=0,
            grid=grid,
            in_specs=[row_spec, row_spec, row_spec,
                      w_spec, w_spec, w_spec, v_spec,
                      w_spec, v_spec,
                      v_spec, v_spec],
            out_specs=row_spec,
        ),
        compiler_params=_COMPILER_PARAMS,
    )(x, agg_m, agg_w,
      p["w1a"], p["w1b"], p["w1c"], p["b1"],
      p["w2"], p["b2"], p["gamma"], p["beta"])


def _init_mlp_params(key, hidden_size):
    """nn.Linear(3H->H) / nn.Linear(H->H) / LayerNorm(H) shaped params.

    Weights are stored transposed (in, out); W1 is pre-split into the three H-wide slabs
    matching the [a | b | c] concat order.  Matmul weights are bf16 (MXU operands);
    biases and LayerNorm affine stay f32.
    """
    din = 3 * hidden_size
    k1, k2, k3, k4 = jax.random.split(key, 4)
    bound1 = 1.0 / float(din) ** 0.5
    bound2 = 1.0 / float(hidden_size) ** 0.5
    w1 = jax.random.uniform(k1, (din, hidden_size), jnp.float32, -bound1, bound1)
    return {
        "w1a": w1[:hidden_size].astype(jnp.bfloat16),
        "w1b": w1[hidden_size:2 * hidden_size].astype(jnp.bfloat16),
        "w1c": w1[2 * hidden_size:].astype(jnp.bfloat16),
        "b1": jax.random.uniform(k2, (1, hidden_size), jnp.float32, -bound1, bound1),
        "w2": jax.random.uniform(k3, (hidden_size, hidden_size), jnp.float32,
                                 -bound2, bound2).astype(jnp.bfloat16),
        "b2": jax.random.uniform(k4, (1, hidden_size), jnp.float32, -bound2, bound2),
        "gamma": jnp.ones((1, hidden_size), jnp.float32),
        "beta": jnp.zeros((1, hidden_size), jnp.float32),
    }


def init_processor_params(key, hidden_size):
    k_emb, k_ewb, k_nb = jax.random.split(key, 3)
    return {
        "emb": _init_mlp_params(k_emb, hidden_size),
        "ewb": _init_mlp_params(k_ewb, hidden_size),
        "nb": _init_mlp_params(k_nb, hidden_size),
    }


@functools.partial(jax.jit, static_argnames=("num_nodes",))
def processor_mpnn_forward(params, x, edge_attr, edge_world_attr,
                           edge_index, edge_world_index, *, num_nodes):
    src_m, dst_m = edge_index[0], edge_index[1]
    src_w, dst_w = edge_world_index[0], edge_world_index[1]

    # Gathered node-feature streams go to the kernels in bf16 (gather+convert fuses in
    # XLA) — they are MXU-only operands, so no extra precision loss vs. the in-kernel cast.
    # TODO(synk): fuse the gather itself into the edge kernels once a vectorized
    # sublane dynamic-gather (or batched DMA gather) path is available; a per-row
    # loop gather costs more VMEM cycles than the HBM bytes it saves.
    x16 = x.astype(jnp.bfloat16)

    # --- EdgeMeshProcessorModule / EdgeWorldProcessorModule ---
    # The (E, 3H) concat is never built; residual edge_attr + e_new is fused in-kernel.
    em_new, em_res = edge_processor(x16[src_m], x16[dst_m], edge_attr, params["emb"])
    ew_new, ew_res = edge_processor(x16[src_w], x16[dst_w], edge_world_attr, params["ewb"])

    # --- NodeProcessorModule (aggregate updated edge features to receivers) ---
    # TODO(synk): replace segment_sum with a sorted-receiver segmented reduction fused
    # into the node kernel (scalar-prefetched per-node segment offsets).
    agg_m = jax.ops.segment_sum(em_new, dst_m, num_segments=num_nodes)
    agg_w = jax.ops.segment_sum(ew_new, dst_w, num_segments=num_nodes)

    # Node MLP with the x-residual fused in-kernel.
    x_res = node_processor(x, agg_m, agg_w, params["nb"])

    return {
        "x": x_res,
        "edge_attr": em_res,
        "edge_world_attr": ew_res,
        "edge_index": edge_index,
        "edge_world_index": edge_world_index,
    }


# ----------------------------- pure-JAX reference ------------------------------------
def _ref_mlp3_ln(a, b, c, p):
    a16, b16, c16 = (v.astype(jnp.bfloat16) for v in (a, b, c))
    h = (jnp.dot(a16, p["w1a"], preferred_element_type=jnp.float32)
         + jnp.dot(b16, p["w1b"], preferred_element_type=jnp.float32)
         + jnp.dot(c16, p["w1c"], preferred_element_type=jnp.float32))
    h = jnp.maximum(h + p["b1"], 0.0)
    y = jnp.dot(h.astype(jnp.bfloat16), p["w2"], preferred_element_type=jnp.float32) + p["b2"]
    mean = jnp.mean(y, axis=-1, keepdims=True)
    var = jnp.mean((y - mean) ** 2, axis=-1, keepdims=True)
    return (y - mean) * jax.lax.rsqrt(var + 1e-5) * p["gamma"] + p["beta"]


def processor_mpnn_reference(params, x, edge_attr, edge_world_attr,
                             edge_index, edge_world_index, num_nodes):
    src_m, dst_m = edge_index[0], edge_index[1]
    src_w, dst_w = edge_world_index[0], edge_world_index[1]
    em_new = _ref_mlp3_ln(x[src_m], x[dst_m], edge_attr, params["emb"])
    ew_new = _ref_mlp3_ln(x[src_w], x[dst_w], edge_world_attr, params["ewb"])
    agg_m = jax.ops.segment_sum(em_new, dst_m, num_segments=num_nodes)
    agg_w = jax.ops.segment_sum(ew_new, dst_w, num_segments=num_nodes)
    x_new = _ref_mlp3_ln(x, agg_m, agg_w, params["nb"])
    return {"x": x + x_new, "edge_attr": edge_attr + em_new,
            "edge_world_attr": edge_world_attr + ew_new}


if __name__ == "__main__":
    HIDDEN = 128    # module default; keep a multiple of 128 so output stores are lane-dense
    N = 64          # nodes
    E_M = 200       # mesh edges
    E_W = 160       # world edges

    key = jax.random.PRNGKey(0)
    k_param, k_x, k_em, k_ew, k_im, k_iw = jax.random.split(key, 6)

    params = init_processor_params(k_param, HIDDEN)

    x = jax.random.normal(k_x, (N, HIDDEN), jnp.float32)
    edge_attr = jax.random.normal(k_em, (E_M, HIDDEN), jnp.float32)
    edge_world_attr = jax.random.normal(k_ew, (E_W, HIDDEN), jnp.float32)
    edge_index = jax.random.randint(k_im, (2, E_M), 0, N, jnp.int32)
    edge_world_index = jax.random.randint(k_iw, (2, E_W), 0, N, jnp.int32)

    out = processor_mpnn_forward(params, x, edge_attr, edge_world_attr,
                                 edge_index, edge_world_index, num_nodes=N)
    jax.block_until_ready(out)

    # shape / finiteness sanity
    assert out["x"].shape == (N, HIDDEN)
    assert out["edge_attr"].shape == (E_M, HIDDEN)
    assert out["edge_world_attr"].shape == (E_W, HIDDEN)
    assert bool(jnp.isfinite(out["x"]).all())
    assert bool(jnp.isfinite(out["edge_attr"]).all())
    assert bool(jnp.isfinite(out["edge_world_attr"]).all())

    # numerical check vs a pure-JAX reference using the same bf16-MXU / f32-epilogue recipe
    ref = processor_mpnn_reference(params, x, edge_attr, edge_world_attr,
                                   edge_index, edge_world_index, N)
    assert bool(jnp.allclose(out["x"], ref["x"], rtol=2e-2, atol=2e-2))
    assert bool(jnp.allclose(out["edge_attr"], ref["edge_attr"], rtol=2e-2, atol=2e-2))
    assert bool(jnp.allclose(out["edge_world_attr"], ref["edge_world_attr"], rtol=2e-2, atol=2e-2))

    print("KERNEL_OK")
</pallas_src>

<mosaic_0001>
module attributes {stable_mosaic.version = 11 : i64} {
  func.func @_edge_mlp_kernel(%arg0: i32, %arg1: memref<160x128xbf16, #tpu.memory_space<vmem>>, %arg2: memref<160x128xbf16, #tpu.memory_space<vmem>>, %arg3: memref<160x128xf32, #tpu.memory_space<vmem>>, %arg4: memref<128x128xbf16, #tpu.memory_space<vmem>>, %arg5: memref<128x128xbf16, #tpu.memory_space<vmem>>, %arg6: memref<128x128xbf16, #tpu.memory_space<vmem>>, %arg7: memref<1x128xf32, #tpu.memory_space<vmem>>, %arg8: memref<128x128xbf16, #tpu.memory_space<vmem>>, %arg9: memref<1x128xf32, #tpu.memory_space<vmem>>, %arg10: memref<1x128xf32, #tpu.memory_space<vmem>>, %arg11: memref<1x128xf32, #tpu.memory_space<vmem>>, %arg12: memref<160x128xf32, #tpu.memory_space<vmem>>, %arg13: memref<160x128xf32, #tpu.memory_space<vmem>>) attributes {dimension_semantics = [#tpu.dimension_semantics<parallel>], iteration_bounds = array<i64: 1>, scalar_prefetch = 0 : i64, scratch_operands = 0 : i64, tpu.core_type = #tpu.core_type<tc>, window_params = [{transform_indices = @transform_0, window_bounds = array<i64: 160, 128>}, {transform_indices = @transform_1, window_bounds = array<i64: 160, 128>}, {transform_indices = @transform_2, window_bounds = array<i64: 160, 128>}, {pipeline_mode = #tpu.pipeline_mode<synchronous>, transform_indices = @transform_3, window_bounds = array<i64: 128, 128>}, {pipeline_mode = #tpu.pipeline_mode<synchronous>, transform_indices = @transform_4, window_bounds = array<i64: 128, 128>}, {pipeline_mode = #tpu.pipeline_mode<synchronous>, transform_indices = @transform_5, window_bounds = array<i64: 128, 128>}, {pipeline_mode = #tpu.pipeline_mode<synchronous>, transform_indices = @transform_6, window_bounds = array<i64: 1, 128>}, {pipeline_mode = #tpu.pipeline_mode<synchronous>, transform_indices = @transform_7, window_bounds = array<i64: 128, 128>}, {pipeline_mode = #tpu.pipeline_mode<synchronous>, transform_indices = @transform_8, window_bounds = array<i64: 1, 128>}, {pipeline_mode = #tpu.pipeline_mode<synchronous>, transform_indices = @transform_9, window_bounds = array<i64: 1, 128>}, {pipeline_mode = #tpu.pipeline_mode<synchronous>, transform_indices = @transform_10, window_bounds = array<i64: 1, 128>}, {transform_indices = @transform_11, window_bounds = array<i64: 160, 128>}, {transform_indices = @transform_12, window_bounds = array<i64: 160, 128>}]} {
    %c0 = arith.constant 0 : index
    %c0_0 = arith.constant 0 : index
    %0 = vector.load %arg3[%c0, %c0_0] : memref<160x128xf32, #tpu.memory_space<vmem>>, vector<160x128xf32>
    %c0_1 = arith.constant 0 : index
    %c0_2 = arith.constant 0 : index
    %1 = vector.load %arg1[%c0_1, %c0_2] : memref<160x128xbf16, #tpu.memory_space<vmem>>, vector<160x128xbf16>
    %c0_3 = arith.constant 0 : index
    %c0_4 = arith.constant 0 : index
    %2 = vector.load %arg2[%c0_3, %c0_4] : memref<160x128xbf16, #tpu.memory_space<vmem>>, vector<160x128xbf16>
    %3 = arith.truncf %0 : vector<160x128xf32> to vector<160x128xbf16>
    %c0_5 = arith.constant 0 : index
    %c0_6 = arith.constant 0 : index
    %4 = vector.load %arg4[%c0_5, %c0_6] : memref<128x128xbf16, #tpu.memory_space<vmem>>, vector<128x128xbf16>
    %c0_7 = arith.constant 0 : index
    %c0_8 = arith.constant 0 : index
    %5 = vector.load %arg5[%c0_7, %c0_8] : memref<128x128xbf16, #tpu.memory_space<vmem>>, vector<128x128xbf16>
    %c0_9 = arith.constant 0 : index
    %c0_10 = arith.constant 0 : index
    %6 = vector.load %arg6[%c0_9, %c0_10] : memref<128x128xbf16, #tpu.memory_space<vmem>>, vector<128x128xbf16>
    %c0_11 = arith.constant 0 : index
    %c0_12 = arith.constant 0 : index
    %7 = vector.load %arg7[%c0_11, %c0_12] : memref<1x128xf32, #tpu.memory_space<vmem>>, vector<1x128xf32>
    %c0_13 = arith.constant 0 : index
    %c0_14 = arith.constant 0 : index
    %8 = vector.load %arg8[%c0_13, %c0_14] : memref<128x128xbf16, #tpu.memory_space<vmem>>, vector<128x128xbf16>
    %c0_15 = arith.constant 0 : index
    %c0_16 = arith.constant 0 : index
    %9 = vector.load %arg9[%c0_15, %c0_16] : memref<1x128xf32, #tpu.memory_space<vmem>>, vector<1x128xf32>
    %c0_17 = arith.constant 0 : index
    %c0_18 = arith.constant 0 : index
    %10 = vector.load %arg10[%c0_17, %c0_18] : memref<1x128xf32, #tpu.memory_space<vmem>>, vector<1x128xf32>
    %c0_19 = arith.constant 0 : index
    %c0_20 = arith.constant 0 : index
    %11 = vector.load %arg11[%c0_19, %c0_20] : memref<1x128xf32, #tpu.memory_space<vmem>>, vector<1x128xf32>
    %cst = arith.constant dense<0.000000e+00> : vector<160x128xf32>
    %12 = tpu.matmul %1, %4, %cst {dimension_numbers = #tpu.dot_dimension_numbers<[1], [0], [0], [1], [0, 0, 1, 1], [], []>} : vector<160x128xbf16>, vector<128x128xbf16>, vector<160x128xf32> -> vector<160x128xf32>
    %cst_21 = arith.constant dense<0.000000e+00> : vector<160x128xf32>
    %13 = tpu.matmul %2, %5, %cst_21 {dimension_numbers = #tpu.dot_dimension_numbers<[1], [0], [0], [1], [0, 0, 1, 1], [], []>} : vector<160x128xbf16>, vector<128x128xbf16>, vector<160x128xf32> -> vector<160x128xf32>
    %14 = arith.addf %12, %13 : vector<160x128xf32>
    %cst_22 = arith.constant dense<0.000000e+00> : vector<160x128xf32>
    %15 = tpu.matmul %3, %6, %cst_22 {dimension_numbers = #tpu.dot_dimension_numbers<[1], [0], [0], [1], [0, 0, 1, 1], [], []>} : vector<160x128xbf16>, vector<128x128xbf16>, vector<160x128xf32> -> vector<160x128xf32>
    %16 = arith.addf %14, %15 : vector<160x128xf32>
    %17 = vector.broadcast %7 : vector<1x128xf32> to vector<160x128xf32>
    %18 = arith.addf %16, %17 : vector<160x128xf32>
    %cst_23 = arith.constant 0.000000e+00 : f32
    %19 = vector.broadcast %cst_23 : f32 to vector<160x128xf32>
    %20 = arith.maximumf %18, %19 : vector<160x128xf32>
    %21 = arith.truncf %20 : vector<160x128xf32> to vector<160x128xbf16>
    %cst_24 = arith.constant dense<0.000000e+00> : vector<160x128xf32>
    %22 = tpu.matmul %21, %8, %cst_24 {dimension_numbers = #tpu.dot_dimension_numbers<[1], [0], [0], [1], [0, 0, 1, 1], [], []>} : vector<160x128xbf16>, vector<128x128xbf16>, vector<160x128xf32> -> vector<160x128xf32>
    %23 = vector.broadcast %9 : vector<1x128xf32> to vector<160x128xf32>
    %24 = arith.addf %22, %23 : vector<160x128xf32>
    %cst_25 = arith.constant dense<0.000000e+00> : vector<160xf32>
    %25 = vector.multi_reduction <add>, %24, %cst_25 [1] : vector<160x128xf32> to vector<160xf32>
    %26 = vector.shape_cast %25 : vector<160xf32> to vector<160x1xf32>
    %cst_26 = arith.constant 1.280000e+02 : f32
    %27 = vector.broadcast %cst_26 : f32 to vector<160x1xf32>
    %28 = arith.divf %26, %27 : vector<160x1xf32>
    %29 = vector.broadcast %28 : vector<160x1xf32> to vector<160x128xf32>
    %30 = arith.subf %24, %29 : vector<160x128xf32>
    %31 = arith.mulf %30, %30 : vector<160x128xf32>
    %cst_27 = arith.constant dense<0.000000e+00> : vector<160xf32>
    %32 = vector.multi_reduction <add>, %31, %cst_27 [1] : vector<160x128xf32> to vector<160xf32>
    %33 = vector.shape_cast %32 : vector<160xf32> to vector<160x1xf32>
    %cst_28 = arith.constant 1.280000e+02 : f32
    %34 = vector.broadcast %cst_28 : f32 to vector<160x1xf32>
    %35 = arith.divf %33, %34 : vector<160x1xf32>
    %cst_29 = arith.constant 9.99999974E-6 : f32
    %36 = vector.broadcast %cst_29 : f32 to vector<160x1xf32>
    %37 = arith.addf %35, %36 : vector<160x1xf32>
    %38 = math.rsqrt %37 : vector<160x1xf32>
    %39 = vector.broadcast %38 : vector<160x1xf32> to vector<160x128xf32>
    %40 = arith.mulf %30, %39 : vector<160x128xf32>
    %41 = vector.broadcast %10 : vector<1x128xf32> to vector<160x128xf32>
    %42 = arith.mulf %40, %41 : vector<160x128xf32>
    %43 = vector.broadcast %11 : vector<1x128xf32> to vector<160x128xf32>
    %44 = arith.addf %42, %43 : vector<160x128xf32>
    %c0_30 = arith.constant 0 : index
    %c0_31 = arith.constant 0 : index
    %45 = vector.load %arg12[%c0_30, %c0_31] : memref<160x128xf32, #tpu.memory_space<vmem>>, vector<160x128xf32>
    tpu.vector_store %arg12[%c0_30, %c0_31], %44 {strides = array<i32>} : memref<160x128xf32, #tpu.memory_space<vmem>>, vector<160x128xf32>,
    %46 = arith.addf %0, %44 : vector<160x128xf32>
    %c0_32 = arith.constant 0 : index
    %c0_33 = arith.constant 0 : index
    %47 = vector.load %arg13[%c0_32, %c0_33] : memref<160x128xf32, #tpu.memory_space<vmem>>, vector<160x128xf32>
    tpu.vector_store %arg13[%c0_32, %c0_33], %46 {strides = array<i32>} : memref<160x128xf32, #tpu.memory_space<vmem>>, vector<160x128xf32>,
    return
  }
  func.func @transform_0(%arg0: i32) -> (i32, i32) {
    %c0_i32 = arith.constant 0 : i32
    %c0_i32_0 = arith.constant 0 : i32
    return %arg0, %c0_i32 : i32, i32
  }
  func.func @transform_1(%arg0: i32) -> (i32, i32) {
    %c0_i32 = arith.constant 0 : i32
    %c0_i32_0 = arith.constant 0 : i32
    return %arg0, %c0_i32 : i32, i32
  }
  func.func @transform_2(%arg0: i32) -> (i32, i32) {
    %c0_i32 = arith.constant 0 : i32
    %c0_i32_0 = arith.constant 0 : i32
    return %arg0, %c0_i32 : i32, i32
  }
  func.func @transform_3(%arg0: i32) -> (i32, i32) {
    %c0_i32 = arith.constant 0 : i32
    %c0_i32_0 = arith.constant 0 : i32
    %c0_i32_1 = arith.constant 0 : i32
    return %c0_i32, %c0_i32_0 : i32, i32
  }
  func.func @transform_4(%arg0: i32) -> (i32, i32) {
    %c0_i32 = arith.constant 0 : i32
    %c0_i32_0 = arith.constant 0 : i32
    %c0_i32_1 = arith.constant 0 : i32
    return %c0_i32, %c0_i32_0 : i32, i32
  }
  func.func @transform_5(%arg0: i32) -> (i32, i32) {
    %c0_i32 = arith.constant 0 : i32
    %c0_i32_0 = arith.constant 0 : i32
    %c0_i32_1 = arith.constant 0 : i32
    return %c0_i32, %c0_i32_0 : i32, i32
  }
  func.func @transform_6(%arg0: i32) -> (i32, i32) {
    %c0_i32 = arith.constant 0 : i32
    %c0_i32_0 = arith.constant 0 : i32
    %c0_i32_1 = arith.constant 0 : i32
    return %c0_i32, %c0_i32_0 : i32, i32
  }
  func.func @transform_7(%arg0: i32) -> (i32, i32) {
    %c0_i32 = arith.constant 0 : i32
    %c0_i32_0 = arith.constant 0 : i32
    %c0_i32_1 = arith.constant 0 : i32
    return %c0_i32, %c0_i32_0 : i32, i32
  }
  func.func @transform_8(%arg0: i32) -> (i32, i32) {
    %c0_i32 = arith.constant 0 : i32
    %c0_i32_0 = arith.constant 0 : i32
    %c0_i32_1 = arith.constant 0 : i32
    return %c0_i32, %c0_i32_0 : i32, i32
  }
  func.func @transform_9(%arg0: i32) -> (i32, i32) {
    %c0_i32 = arith.constant 0 : i32
    %c0_i32_0 = arith.constant 0 : i32
    %c0_i32_1 = arith.constant 0 : i32
    return %c0_i32, %c0_i32_0 : i32, i32
  }
  func.func @transform_10(%arg0: i32) -> (i32, i32) {
    %c0_i32 = arith.constant 0 : i32
    %c0_i32_0 = arith.constant 0 : i32
    %c0_i32_1 = arith.constant 0 : i32
    return %c0_i32, %c0_i32_0 : i32, i32
  }
  func.func @transform_11(%arg0: i32) -> (i32, i32) {
    %c0_i32 = arith.constant 0 : i32
    %c0_i32_0 = arith.constant 0 : i32
    return %arg0, %c0_i32 : i32, i32
  }
  func.func @transform_12(%arg0: i32) -> (i32, i32) {
    %c0_i32 = arith.constant 0 : i32
    %c0_i32_0 = arith.constant 0 : i32
    return %arg0, %c0_i32 : i32, i32
  }
}

module attributes {stable_mosaic.version = 11 : i64} {
  func.func @_edge_mlp_kernel(%arg0: i32, %arg1: memref<200x128xbf16, #tpu.memory_space<vmem>>, %arg2: memref<200x128xbf16, #tpu.memory_space<vmem>>, %arg3: memref<200x128xf32, #tpu.memory_space<vmem>>, %arg4: memref<128x128xbf16, #tpu.memory_space<vmem>>, %arg5: memref<128x128xbf16, #tpu.memory_space<vmem>>, %arg6: memref<128x128xbf16, #tpu.memory_space<vmem>>, %arg7: memref<1x128xf32, #tpu.memory_space<vmem>>, %arg8: memref<128x128xbf16, #tpu.memory_space<vmem>>, %arg9: memref<1x128xf32, #tpu.memory_space<vmem>>, %arg10: memref<1x128xf32, #tpu.memory_space<vmem>>, %arg11: memref<1x128xf32, #tpu.memory_space<vmem>>, %arg12: memref<200x128xf32, #tpu.memory_space<vmem>>, %arg13: memref<200x128xf32, #tpu.memory_space<vmem>>) attributes {dimension_semantics = [#tpu.dimension_semantics<parallel>], iteration_bounds = array<i64: 1>, scalar_prefetch = 0 : i64, scratch_operands = 0 : i64, tpu.core_type = #tpu.core_type<tc>, window_params = [{transform_indices = @transform_0, window_bounds = array<i64: 200, 128>}, {transform_indices = @transform_1, window_bounds = array<i64: 200, 128>}, {transform_indices = @transform_2, window_bounds = array<i64: 200, 128>}, {pipeline_mode = #tpu.pipeline_mode<synchronous>, transform_indices = @transform_3, window_bounds = array<i64: 128, 128>}, {pipeline_mode = #tpu.pipeline_mode<synchronous>, transform_indices = @transform_4, window_bounds = array<i64: 128, 128>}, {pipeline_mode = #tpu.pipeline_mode<synchronous>, transform_indices = @transform_5, window_bounds = array<i64: 128, 128>}, {pipeline_mode = #tpu.pipeline_mode<synchronous>, transform_indices = @transform_6, window_bounds = array<i64: 1, 128>}, {pipeline_mode = #tpu.pipeline_mode<synchronous>, transform_indices = @transform_7, window_bounds = array<i64: 128, 128>}, {pipeline_mode = #tpu.pipeline_mode<synchronous>, transform_indices = @transform_8, window_bounds = array<i64: 1, 128>}, {pipeline_mode = #tpu.pipeline_mode<synchronous>, transform_indices = @transform_9, window_bounds = array<i64: 1, 128>}, {pipeline_mode = #tpu.pipeline_mode<synchronous>, transform_indices = @transform_10, window_bounds = array<i64: 1, 128>}, {transform_indices = @transform_11, window_bounds = array<i64: 200, 128>}, {transform_indices = @transform_12, window_bounds = array<i64: 200, 128>}]} {
    %c0 = arith.constant 0 : index
    %c0_0 = arith.constant 0 : index
    %0 = vector.load %arg3[%c0, %c0_0] : memref<200x128xf32, #tpu.memory_space<vmem>>, vector<200x128xf32>
    %c0_1 = arith.constant 0 : index
    %c0_2 = arith.constant 0 : index
    %1 = vector.load %arg1[%c0_1, %c0_2] : memref<200x128xbf16, #tpu.memory_space<vmem>>, vector<200x128xbf16>
    %c0_3 = arith.constant 0 : index
    %c0_4 = arith.constant 0 : index
    %2 = vector.load %arg2[%c0_3, %c0_4] : memref<200x128xbf16, #tpu.memory_space<vmem>>, vector<200x128xbf16>
    %3 = arith.truncf %0 : vector<200x128xf32> to vector<200x128xbf16>
    %c0_5 = arith.constant 0 : index
    %c0_6 = arith.constant 0 : index
    %4 = vector.load %arg4[%c0_5, %c0_6] : memref<128x128xbf16, #tpu.memory_space<vmem>>, vector<128x128xbf16>
    %c0_7 = arith.constant 0 : index
    %c0_8 = arith.constant 0 : index
    %5 = vector.load %arg5[%c0_7, %c0_8] : memref<128x128xbf16, #tpu.memory_space<vmem>>, vector<128x128xbf16>
    %c0_9 = arith.constant 0 : index
    %c0_10 = arith.constant 0 : index
    %6 = vector.load %arg6[%c0_9, %c0_10] : memref<128x128xbf16, #tpu.memory_space<vmem>>, vector<128x128xbf16>
    %c0_11 = arith.constant 0 : index
    %c0_12 = arith.constant 0 : index
    %7 = vector.load %arg7[%c0_11, %c0_12] : memref<1x128xf32, #tpu.memory_space<vmem>>, vector<1x128xf32>
    %c0_13 = arith.constant 0 : index
    %c0_14 = arith.constant 0 : index
    %8 = vector.load %arg8[%c0_13, %c0_14] : memref<128x128xbf16, #tpu.memory_space<vmem>>, vector<128x128xbf16>
    %c0_15 = arith.constant 0 : index
    %c0_16 = arith.constant 0 : index
    %9 = vector.load %arg9[%c0_15, %c0_16] : memref<1x128xf32, #tpu.memory_space<vmem>>, vector<1x128xf32>
    %c0_17 = arith.constant 0 : index
    %c0_18 = arith.constant 0 : index
    %10 = vector.load %arg10[%c0_17, %c0_18] : memref<1x128xf32, #tpu.memory_space<vmem>>, vector<1x128xf32>
    %c0_19 = arith.constant 0 : index
    %c0_20 = arith.constant 0 : index
    %11 = vector.load %arg11[%c0_19, %c0_20] : memref<1x128xf32, #tpu.memory_space<vmem>>, vector<1x128xf32>
    %cst = arith.constant dense<0.000000e+00> : vector<200x128xf32>
    %12 = tpu.matmul %1, %4, %cst {dimension_numbers = #tpu.dot_dimension_numbers<[1], [0], [0], [1], [0, 0, 1, 1], [], []>} : vector<200x128xbf16>, vector<128x128xbf16>, vector<200x128xf32> -> vector<200x128xf32>
    %cst_21 = arith.constant dense<0.000000e+00> : vector<200x128xf32>
    %13 = tpu.matmul %2, %5, %cst_21 {dimension_numbers = #tpu.dot_dimension_numbers<[1], [0], [0], [1], [0, 0, 1, 1], [], []>} : vector<200x128xbf16>, vector<128x128xbf16>, vector<200x128xf32> -> vector<200x128xf32>
    %14 = arith.addf %12, %13 : vector<200x128xf32>
    %cst_22 = arith.constant dense<0.000000e+00> : vector<200x128xf32>
    %15 = tpu.matmul %3, %6, %cst_22 {dimension_numbers = #tpu.dot_dimension_numbers<[1], [0], [0], [1], [0, 0, 1, 1], [], []>} : vector<200x128xbf16>, vector<128x128xbf16>, vector<200x128xf32> -> vector<200x128xf32>
    %16 = arith.addf %14, %15 : vector<200x128xf32>
    %17 = vector.broadcast %7 : vector<1x128xf32> to vector<200x128xf32>
    %18 = arith.addf %16, %17 : vector<200x128xf32>
    %cst_23 = arith.constant 0.000000e+00 : f32
    %19 = vector.broadcast %cst_23 : f32 to vector<200x128xf32>
    %20 = arith.maximumf %18, %19 : vector<200x128xf32>
    %21 = arith.truncf %20 : vector<200x128xf32> to vector<200x128xbf16>
    %cst_24 = arith.constant dense<0.000000e+00> : vector<200x128xf32>
    %22 = tpu.matmul %21, %8, %cst_24 {dimension_numbers = #tpu.dot_dimension_numbers<[1], [0], [0], [1], [0, 0, 1, 1], [], []>} : vector<200x128xbf16>, vector<128x128xbf16>, vector<200x128xf32> -> vector<200x128xf32>
    %23 = vector.broadcast %9 : vector<1x128xf32> to vector<200x128xf32>
    %24 = arith.addf %22, %23 : vector<200x128xf32>
    %cst_25 = arith.constant dense<0.000000e+00> : vector<200xf32>
    %25 = vector.multi_reduction <add>, %24, %cst_25 [1] : vector<200x128xf32> to vector<200xf32>
    %26 = vector.shape_cast %25 : vector<200xf32> to vector<200x1xf32>
    %cst_26 = arith.constant 1.280000e+02 : f32
    %27 = vector.broadcast %cst_26 : f32 to vector<200x1xf32>
    %28 = arith.divf %26, %27 : vector<200x1xf32>
    %29 = vector.broadcast %28 : vector<200x1xf32> to vector<200x128xf32>
    %30 = arith.subf %24, %29 : vector<200x128xf32>
    %31 = arith.mulf %30, %30 : vector<200x128xf32>
    %cst_27 = arith.constant dense<0.000000e+00> : vector<200xf32>
    %32 = vector.multi_reduction <add>, %31, %cst_27 [1] : vector<200x128xf32> to vector<200xf32>
    %33 = vector.shape_cast %32 : vector<200xf32> to vector<200x1xf32>
    %cst_28 = arith.constant 1.280000e+02 : f32
    %34 = vector.broadcast %cst_28 : f32 to vector<200x1xf32>
    %35 = arith.divf %33, %34 : vector<200x1xf32>
    %cst_29 = arith.constant 9.99999974E-6 : f32
    %36 = vector.broadcast %cst_29 : f32 to vector<200x1xf32>
    %37 = arith.addf %35, %36 : vector<200x1xf32>
    %38 = math.rsqrt %37 : vector<200x1xf32>
    %39 = vector.broadcast %38 : vector<200x1xf32> to vector<200x128xf32>
    %40 = arith.mulf %30, %39 : vector<200x128xf32>
    %41 = vector.broadcast %10 : vector<1x128xf32> to vector<200x128xf32>
    %42 = arith.mulf %40, %41 : vector<200x128xf32>
    %43 = vector.broadcast %11 : vector<1x128xf32> to vector<200x128xf32>
    %44 = arith.addf %42, %43 : vector<200x128xf32>
    %c0_30 = arith.constant 0 : index
    %c0_31 = arith.constant 0 : index
    %45 = vector.load %arg12[%c0_30, %c0_31] : memref<200x128xf32, #tpu.memory_space<vmem>>, vector<200x128xf32>
    tpu.vector_store %arg12[%c0_30, %c0_31], %44 {strides = array<i32>} : memref<200x128xf32, #tpu.memory_space<vmem>>, vector<200x128xf32>,
    %46 = arith.addf %0, %44 : vector<200x128xf32>
    %c0_32 = arith.constant 0 : index
    %c0_33 = arith.constant 0 : index
    %47 = vector.load %arg13[%c0_32, %c0_33] : memref<200x128xf32, #tpu.memory_space<vmem>>, vector<200x128xf32>
    tpu.vector_store %arg13[%c0_32, %c0_33], %46 {strides = array<i32>} : memref<200x128xf32, #tpu.memory_space<vmem>>, vector<200x128xf32>,
    return
  }
  func.func @transform_0(%arg0: i32) -> (i32, i32) {
    %c0_i32 = arith.constant 0 : i32
    %c0_i32_0 = arith.constant 0 : i32
    return %arg0, %c0_i32 : i32, i32
  }
  func.func @transform_1(%arg0: i32) -> (i32, i32) {
    %c0_i32 = arith.constant 0 : i32
    %c0_i32_0 = arith.constant 0 : i32
    return %arg0, %c0_i32 : i32, i32
  }
  func.func @transform_2(%arg0: i32) -> (i32, i32) {
    %c0_i32 = arith.constant 0 : i32
    %c0_i32_0 = arith.constant 0 : i32
    return %arg0, %c0_i32 : i32, i32
  }
  func.func @transform_3(%arg0: i32) -> (i32, i32) {
    %c0_i32 = arith.constant 0 : i32
    %c0_i32_0 = arith.constant 0 : i32
    %c0_i32_1 = arith.constant 0 : i32
    return %c0_i32, %c0_i32_0 : i32, i32
  }
  func.func @transform_4(%arg0: i32) -> (i32, i32) {
    %c0_i32 = arith.constant 0 : i32
    %c0_i32_0 = arith.constant 0 : i32
    %c0_i32_1 = arith.constant 0 : i32
    return %c0_i32, %c0_i32_0 : i32, i32
  }
  func.func @transform_5(%arg0: i32) -> (i32, i32) {
    %c0_i32 = arith.constant 0 : i32
    %c0_i32_0 = arith.constant 0 : i32
    %c0_i32_1 = arith.constant 0 : i32
    return %c0_i32, %c0_i32_0 : i32, i32
  }
  func.func @transform_6(%arg0: i32) -> (i32, i32) {
    %c0_i32 = arith.constant 0 : i32
    %c0_i32_0 = arith.constant 0 : i32
    %c0_i32_1 = arith.constant 0 : i32
    return %c0_i32, %c0_i32_0 : i32, i32
  }
  func.func @transform_7(%arg0: i32) -> (i32, i32) {
    %c0_i32 = arith.constant 0 : i32
    %c0_i32_0 = arith.constant 0 : i32
    %c0_i32_1 = arith.constant 0 : i32
    return %c0_i32, %c0_i32_0 : i32, i32
  }
  func.func @transform_8(%arg0: i32) -> (i32, i32) {
    %c0_i32 = arith.constant 0 : i32
    %c0_i32_0 = arith.constant 0 : i32
    %c0_i32_1 = arith.constant 0 : i32
    return %c0_i32, %c0_i32_0 : i32, i32
  }
  func.func @transform_9(%arg0: i32) -> (i32, i32) {
    %c0_i32 = arith.constant 0 : i32
    %c0_i32_0 = arith.constant 0 : i32
    %c0_i32_1 = arith.constant 0 : i32
    return %c0_i32, %c0_i32_0 : i32, i32
  }
  func.func @transform_10(%arg0: i32) -> (i32, i32) {
    %c0_i32 = arith.constant 0 : i32
    %c0_i32_0 = arith.constant 0 : i32
    %c0_i32_1 = arith.constant 0 : i32
    return %c0_i32, %c0_i32_0 : i32, i32
  }
  func.func @transform_11(%arg0: i32) -> (i32, i32) {
    %c0_i32 = arith.constant 0 : i32
    %c0_i32_0 = arith.constant 0 : i32
    return %arg0, %c0_i32 : i32, i32
  }
  func.func @transform_12(%arg0: i32) -> (i32, i32) {
    %c0_i32 = arith.constant 0 : i32
    %c0_i32_0 = arith.constant 0 : i32
    return %arg0, %c0_i32 : i32, i32
  }
}

module attributes {stable_mosaic.version = 11 : i64} {
  func.func @_node_mlp_kernel(%arg0: i32, %arg1: memref<64x128xf32, #tpu.memory_space<vmem>>, %arg2: memref<64x128xf32, #tpu.memory_space<vmem>>, %arg3: memref<64x128xf32, #tpu.memory_space<vmem>>, %arg4: memref<128x128xbf16, #tpu.memory_space<vmem>>, %arg5: memref<128x128xbf16, #tpu.memory_space<vmem>>, %arg6: memref<128x128xbf16, #tpu.memory_space<vmem>>, %arg7: memref<1x128xf32, #tpu.memory_space<vmem>>, %arg8: memref<128x128xbf16, #tpu.memory_space<vmem>>, %arg9: memref<1x128xf32, #tpu.memory_space<vmem>>, %arg10: memref<1x128xf32, #tpu.memory_space<vmem>>, %arg11: memref<1x128xf32, #tpu.memory_space<vmem>>, %arg12: memref<64x128xf32, #tpu.memory_space<vmem>>) attributes {dimension_semantics = [#tpu.dimension_semantics<parallel>], iteration_bounds = array<i64: 1>, scalar_prefetch = 0 : i64, scratch_operands = 0 : i64, tpu.core_type = #tpu.core_type<tc>, window_params = [{transform_indices = @transform_0, window_bounds = array<i64: 64, 128>}, {transform_indices = @transform_1, window_bounds = array<i64: 64, 128>}, {transform_indices = @transform_2, window_bounds = array<i64: 64, 128>}, {pipeline_mode = #tpu.pipeline_mode<synchronous>, transform_indices = @transform_3, window_bounds = array<i64: 128, 128>}, {pipeline_mode = #tpu.pipeline_mode<synchronous>, transform_indices = @transform_4, window_bounds = array<i64: 128, 128>}, {pipeline_mode = #tpu.pipeline_mode<synchronous>, transform_indices = @transform_5, window_bounds = array<i64: 128, 128>}, {pipeline_mode = #tpu.pipeline_mode<synchronous>, transform_indices = @transform_6, window_bounds = array<i64: 1, 128>}, {pipeline_mode = #tpu.pipeline_mode<synchronous>, transform_indices = @transform_7, window_bounds = array<i64: 128, 128>}, {pipeline_mode = #tpu.pipeline_mode<synchronous>, transform_indices = @transform_8, window_bounds = array<i64: 1, 128>}, {pipeline_mode = #tpu.pipeline_mode<synchronous>, transform_indices = @transform_9, window_bounds = array<i64: 1, 128>}, {pipeline_mode = #tpu.pipeline_mode<synchronous>, transform_indices = @transform_10, window_bounds = array<i64: 1, 128>}, {transform_indices = @transform_11, window_bounds = array<i64: 64, 128>}]} {
    %c0 = arith.constant 0 : index
    %c0_0 = arith.constant 0 : index
    %0 = vector.load %arg1[%c0, %c0_0] : memref<64x128xf32, #tpu.memory_space<vmem>>, vector<64x128xf32>
    %1 = arith.truncf %0 : vector<64x128xf32> to vector<64x128xbf16>
    %c0_1 = arith.constant 0 : index
    %c0_2 = arith.constant 0 : index
    %2 = vector.load %arg2[%c0_1, %c0_2] : memref<64x128xf32, #tpu.memory_space<vmem>>, vector<64x128xf32>
    %3 = arith.truncf %2 : vector<64x128xf32> to vector<64x128xbf16>
    %c0_3 = arith.constant 0 : index
    %c0_4 = arith.constant 0 : index
    %4 = vector.load %arg3[%c0_3, %c0_4] : memref<64x128xf32, #tpu.memory_space<vmem>>, vector<64x128xf32>
    %5 = arith.truncf %4 : vector<64x128xf32> to vector<64x128xbf16>
    %c0_5 = arith.constant 0 : index
    %c0_6 = arith.constant 0 : index
    %6 = vector.load %arg4[%c0_5, %c0_6] : memref<128x128xbf16, #tpu.memory_space<vmem>>, vector<128x128xbf16>
    %c0_7 = arith.constant 0 : index
    %c0_8 = arith.constant 0 : index
    %7 = vector.load %arg5[%c0_7, %c0_8] : memref<128x128xbf16, #tpu.memory_space<vmem>>, vector<128x128xbf16>
    %c0_9 = arith.constant 0 : index
    %c0_10 = arith.constant 0 : index
    %8 = vector.load %arg6[%c0_9, %c0_10] : memref<128x128xbf16, #tpu.memory_space<vmem>>, vector<128x128xbf16>
    %c0_11 = arith.constant 0 : index
    %c0_12 = arith.constant 0 : index
    %9 = vector.load %arg7[%c0_11, %c0_12] : memref<1x128xf32, #tpu.memory_space<vmem>>, vector<1x128xf32>
    %c0_13 = arith.constant 0 : index
    %c0_14 = arith.constant 0 : index
    %10 = vector.load %arg8[%c0_13, %c0_14] : memref<128x128xbf16, #tpu.memory_space<vmem>>, vector<128x128xbf16>
    %c0_15 = arith.constant 0 : index
    %c0_16 = arith.constant 0 : index
    %11 = vector.load %arg9[%c0_15, %c0_16] : memref<1x128xf32, #tpu.memory_space<vmem>>, vector<1x128xf32>
    %c0_17 = arith.constant 0 : index
    %c0_18 = arith.constant 0 : index
    %12 = vector.load %arg10[%c0_17, %c0_18] : memref<1x128xf32, #tpu.memory_space<vmem>>, vector<1x128xf32>
    %c0_19 = arith.constant 0 : index
    %c0_20 = arith.constant 0 : index
    %13 = vector.load %arg11[%c0_19, %c0_20] : memref<1x128xf32, #tpu.memory_space<vmem>>, vector<1x128xf32>
    %cst = arith.constant dense<0.000000e+00> : vector<64x128xf32>
    %14 = tpu.matmul %1, %6, %cst {dimension_numbers = #tpu.dot_dimension_numbers<[1], [0], [0], [1], [0, 0, 1, 1], [], []>} : vector<64x128xbf16>, vector<128x128xbf16>, vector<64x128xf32> -> vector<64x128xf32>
    %cst_21 = arith.constant dense<0.000000e+00> : vector<64x128xf32>
    %15 = tpu.matmul %3, %7, %cst_21 {dimension_numbers = #tpu.dot_dimension_numbers<[1], [0], [0], [1], [0, 0, 1, 1], [], []>} : vector<64x128xbf16>, vector<128x128xbf16>, vector<64x128xf32> -> vector<64x128xf32>
    %16 = arith.addf %14, %15 : vector<64x128xf32>
    %cst_22 = arith.constant dense<0.000000e+00> : vector<64x128xf32>
    %17 = tpu.matmul %5, %8, %cst_22 {dimension_numbers = #tpu.dot_dimension_numbers<[1], [0], [0], [1], [0, 0, 1, 1], [], []>} : vector<64x128xbf16>, vector<128x128xbf16>, vector<64x128xf32> -> vector<64x128xf32>
    %18 = arith.addf %16, %17 : vector<64x128xf32>
    %19 = vector.broadcast %9 : vector<1x128xf32> to vector<64x128xf32>
    %20 = arith.addf %18, %19 : vector<64x128xf32>
    %cst_23 = arith.constant 0.000000e+00 : f32
    %21 = vector.broadcast %cst_23 : f32 to vector<64x128xf32>
    %22 = arith.maximumf %20, %21 : vector<64x128xf32>
    %23 = arith.truncf %22 : vector<64x128xf32> to vector<64x128xbf16>
    %cst_24 = arith.constant dense<0.000000e+00> : vector<64x128xf32>
    %24 = tpu.matmul %23, %10, %cst_24 {dimension_numbers = #tpu.dot_dimension_numbers<[1], [0], [0], [1], [0, 0, 1, 1], [], []>} : vector<64x128xbf16>, vector<128x128xbf16>, vector<64x128xf32> -> vector<64x128xf32>
    %25 = vector.broadcast %11 : vector<1x128xf32> to vector<64x128xf32>
    %26 = arith.addf %24, %25 : vector<64x128xf32>
    %cst_25 = arith.constant dense<0.000000e+00> : vector<64xf32>
    %27 = vector.multi_reduction <add>, %26, %cst_25 [1] : vector<64x128xf32> to vector<64xf32>
    %28 = vector.shape_cast %27 : vector<64xf32> to vector<64x1xf32>
    %cst_26 = arith.constant 1.280000e+02 : f32
    %29 = vector.broadcast %cst_26 : f32 to vector<64x1xf32>
    %30 = arith.divf %28, %29 : vector<64x1xf32>
    %31 = vector.broadcast %30 : vector<64x1xf32> to vector<64x128xf32>
    %32 = arith.subf %26, %31 : vector<64x128xf32>
    %33 = arith.mulf %32, %32 : vector<64x128xf32>
    %cst_27 = arith.constant dense<0.000000e+00> : vector<64xf32>
    %34 = vector.multi_reduction <add>, %33, %cst_27 [1] : vector<64x128xf32> to vector<64xf32>
    %35 = vector.shape_cast %34 : vector<64xf32> to vector<64x1xf32>
    %cst_28 = arith.constant 1.280000e+02 : f32
    %36 = vector.broadcast %cst_28 : f32 to vector<64x1xf32>
    %37 = arith.divf %35, %36 : vector<64x1xf32>
    %cst_29 = arith.constant 9.99999974E-6 : f32
    %38 = vector.broadcast %cst_29 : f32 to vector<64x1xf32>
    %39 = arith.addf %37, %38 : vector<64x1xf32>
    %40 = math.rsqrt %39 : vector<64x1xf32>
    %41 = vector.broadcast %40 : vector<64x1xf32> to vector<64x128xf32>
    %42 = arith.mulf %32, %41 : vector<64x128xf32>
    %43 = vector.broadcast %12 : vector<1x128xf32> to vector<64x128xf32>
    %44 = arith.mulf %42, %43 : vector<64x128xf32>
    %45 = vector.broadcast %13 : vector<1x128xf32> to vector<64x128xf32>
    %46 = arith.addf %44, %45 : vector<64x128xf32>
    %47 = arith.addf %0, %46 : vector<64x128xf32>
    %c0_30 = arith.constant 0 : index
    %c0_31 = arith.constant 0 : index
    %48 = vector.load %arg12[%c0_30, %c0_31] : memref<64x128xf32, #tpu.memory_space<vmem>>, vector<64x128xf32>
    tpu.vector_store %arg12[%c0_30, %c0_31], %47 {strides = array<i32>} : memref<64x128xf32, #tpu.memory_space<vmem>>, vector<64x128xf32>,
    return
  }
  func.func @transform_0(%arg0: i32) -> (i32, i32) {
    %c0_i32 = arith.constant 0 : i32
    %c0_i32_0 = arith.constant 0 : i32
    return %arg0, %c0_i32 : i32, i32
  }
  func.func @transform_1(%arg0: i32) -> (i32, i32) {
    %c0_i32 = arith.constant 0 : i32
    %c0_i32_0 = arith.constant 0 : i32
    return %arg0, %c0_i32 : i32, i32
  }
  func.func @transform_2(%arg0: i32) -> (i32, i32) {
    %c0_i32 = arith.constant 0 : i32
    %c0_i32_0 = arith.constant 0 : i32
    return %arg0, %c0_i32 : i32, i32
  }
  func.func @transform_3(%arg0: i32) -> (i32, i32) {
    %c0_i32 = arith.constant 0 : i32
    %c0_i32_0 = arith.constant 0 : i32
    %c0_i32_1 = arith.constant 0 : i32
    return %c0_i32, %c0_i32_0 : i32, i32
  }
  func.func @transform_4(%arg0: i32) -> (i32, i32) {
    %c0_i32 = arith.constant 0 : i32
    %c0_i32_0 = arith.constant 0 : i32
    %c0_i32_1 = arith.constant 0 : i32
    return %c0_i32, %c0_i32_0 : i32, i32
  }
  func.func @transform_5(%arg0: i32) -> (i32, i32) {
    %c0_i32 = arith.constant 0 : i32
    %c0_i32_0 = arith.constant 0 : i32
    %c0_i32_1 = arith.constant 0 : i32
    return %c0_i32, %c0_i32_0 : i32, i32
  }
  func.func @transform_6(%arg0: i32) -> (i32, i32) {
    %c0_i32 = arith.constant 0 : i32
    %c0_i32_0 = arith.constant 0 : i32
    %c0_i32_1 = arith.constant 0 : i32
    return %c0_i32, %c0_i32_0 : i32, i32
  }
  func.func @transform_7(%arg0: i32) -> (i32, i32) {
    %c0_i32 = arith.constant 0 : i32
    %c0_i32_0 = arith.constant 0 : i32
    %c0_i32_1 = arith.constant 0 : i32
    return %c0_i32, %c0_i32_0 : i32, i32
  }
  func.func @transform_8(%arg0: i32) -> (i32, i32) {
    %c0_i32 = arith.constant 0 : i32
    %c0_i32_0 = arith.constant 0 : i32
    %c0_i32_1 = arith.constant 0 : i32
    return %c0_i32, %c0_i32_0 : i32, i32
  }
  func.func @transform_9(%arg0: i32) -> (i32, i32) {
    %c0_i32 = arith.constant 0 : i32
    %c0_i32_0 = arith.constant 0 : i32
    %c0_i32_1 = arith.constant 0 : i32
    return %c0_i32, %c0_i32_0 : i32, i32
  }
  func.func @transform_10(%arg0: i32) -> (i32, i32) {
    %c0_i32 = arith.constant 0 : i32
    %c0_i32_0 = arith.constant 0 : i32
    %c0_i32_1 = arith.constant 0 : i32
    return %c0_i32, %c0_i32_0 : i32, i32
  }
  func.func @transform_11(%arg0: i32) -> (i32, i32) {
    %c0_i32 = arith.constant 0 : i32
    %c0_i32_0 = arith.constant 0 : i32
    return %arg0, %c0_i32 : i32, i32
  }
}

</mosaic_0001>

<bundles_post_ra>
// kernel: processor_mpnn_forward.4
= control target key start
LH: loop header
LB: loop body
LE: loop exit
PB: predicated region body
PF: predicated region fallthrough
CT: control target
= control target key end

     0   :  { %s2424_s0 = inlined_call_operand.vmem [shape: bf16[160,128], index: 0, kind: input, shape index: {}]   ;;  %s2425_s1 = inlined_call_operand.vmem [shape: bf16[160,128], index: 1, kind: input, shape index: {}]   ;;  %s2426_s2 = inlined_call_operand.vmem [shape: f32[160,128], index: 2, kind: input, shape index: {}]   ;;  %s2427_s3 = inlined_call_operand.vmem [shape: bf16[128,128], index: 3, kind: input, shape index: {}]   ;;  %s2428_s4 = inlined_call_operand.vmem [shape: bf16[128,128], index: 4, kind: input, shape index: {}]   ;;  %s2429_s5 = inlined_call_operand.vmem [shape: bf16[128,128], index: 5, kind: input, shape index: {}]   ;;  %s2430_s6 = inlined_call_operand.vmem [shape: f32[1,128], index: 6, kind: input, shape index: {}]   ;;  %s2431_s7 = inlined_call_operand.vmem [shape: bf16[128,128], index: 7, kind: input, shape index: {}]   ;;  %s2432_s8 = inlined_call_operand.vmem [shape: f32[1,128], index: 8, kind: input, shape index: {}]   ;;  %s2433_s9 = inlined_call_operand.vmem [shape: f32[1,128], index: 9, kind: input, shape index: {}]   ;;  %s2434_s10 = inlined_call_operand.vmem [shape: f32[1,128], index: 10, kind: input, shape index: {}]   ;;  %s2435_s11 = inlined_call_operand.vmem [shape: f32[160,128], index: 11, kind: output, shape index: {0}]   ;;  %s2436_s12 = inlined_call_operand.hbm [shape: f32[160,128], index: 12, kind: output, shape index: {1}]  }
   0x1   :  { %v1581_v0 = vld [vmem:[%s2428_s4 + $0x38] sm:$0xff]  ;;  %v1580_v3 = vld [vmem:[%s2428_s4 + $0x30] sm:$0xff]  ;;  %v1579_v6 = vld [vmem:[%s2428_s4 + $0x28] sm:$0xff] }
   0x2   :  { %v1573_v1 = vld [vmem:[%s2427_s3 + $0x38] sm:$0xff]  ;;  %287 = vmatpush.bf16.msra.mxu0 %v1581_v0  ;;  %v1572_v4 = vld [vmem:[%s2427_s3 + $0x30] sm:$0xff]  ;;  %v1571_v7 = vld [vmem:[%s2427_s3 + $0x28] sm:$0xff] }
   0x3   :  { %v1589_v2 = vld [vmem:[%s2429_s5 + $0x38] sm:$0xff]  ;;  %454 = vmatpush.bf16.msra.mxu1 %v1573_v1  ;;  %v1588_v5 = vld [vmem:[%s2429_s5 + $0x30] sm:$0xff]  ;;  %v1587_v8 = vld [vmem:[%s2429_s5 + $0x28] sm:$0xff] }
   0x4   :  { %561 = vmatpush.bf16.msra.mxu2 %v1589_v2  ;;  %v1578_v9 = vld [vmem:[%s2428_s4 + $0x20] sm:$0xff] }
   0x5   :  { %v1570_v10 = vld [vmem:[%s2427_s3 + $0x20] sm:$0xff] }
   0x6   :  { %288 = vmatpush.bf16.msra.mxu0 %v1580_v3  ;;  %v1586_v11 = vld [vmem:[%s2429_s5 + $0x20] sm:$0xff] }
   0x7   :  { %455 = vmatpush.bf16.msra.mxu1 %v1572_v4 }
   0x8   :  { %562 = vmatpush.bf16.msra.mxu2 %v1588_v5 }
   0xa   :  { %289 = vmatpush.bf16.msra.mxu0 %v1579_v6 }
   0xb   :  { %456 = vmatpush.bf16.msra.mxu1 %v1571_v7 }
   0xc   :  { %563 = vmatpush.bf16.msra.mxu2 %v1587_v8 }
   0xd   :  { %18 = vsyncpa [#allocation3], 0  ;;  %v1577_v12 = vld [vmem:[%s2428_s4 + $0x18] sm:$0xff]  ;;  %v1576_v15 = vld [vmem:[%s2428_s4 + $0x10] sm:$0xff]  ;;  %s1692_s19 = smov [#allocation2]   ;;  %s1324_s21 = sshll.u32 %s2436_s12, 4  ;;  %s1325_s21 = int_to_ptr.hbm [resolvable:$true] %s1324_s21 }
   0xe   :  { %290 = vmatpush.bf16.msra.mxu0 %v1578_v9  ;;  %v1569_v13 = vld [vmem:[%s2427_s3 + $0x18] sm:$0xff]  ;;  %v1568_v16 = vld [vmem:[%s2427_s3 + $0x10] sm:$0xff]  ;;  %v1575_v18 = vld [vmem:[%s2428_s4 + $0x8] sm:$0xff] }
   0xf   :  { %457 = vmatpush.bf16.msra.mxu1 %v1570_v10  ;;  %v1585_v14 = vld [vmem:[%s2429_s5 + $0x18] sm:$0xff]  ;;  %v1584_v17 = vld [vmem:[%s2429_s5 + $0x10] sm:$0xff]  ;;  %v1567_v19 = vld [vmem:[%s2427_s3 + $0x8] sm:$0xff] }
  0x10   :  { %564 = vmatpush.bf16.msra.mxu2 %v1586_v11  ;;  %v1583_v20 = vld [vmem:[%s2429_s5 + $0x8] sm:$0xff]  ;;  %v1574_v21 = vld [vmem:[%s2428_s4] sm:$0xff]  ;;  %v43_v29 = vld [vmem:[%s2426_s2 + $0x10] sm:$0xff] }
  0x11   :  { %v1566_v22 = vld [vmem:[%s2427_s3] sm:$0xff]  ;;  %v1840_v25 = vld [vmem:[%s2426_s2 + $0x8] sm:$0xff]  ;;  %v1856_v30 = vld [vmem:[%s2426_s2 + $0x18] sm:$0xff]  ;;  %s1322_s3 = sshll.u32 %s1692_s19, 4  ;;  %s1323_s3 = int_to_ptr.vmem [resolvable:$true] %s1322_s3 }
  0x12   :  { %291 = vmatpush.bf16.msra.mxu0 %v1577_v12  ;;  %v1582_v23 = vld [vmem:[%s2429_s5] sm:$0xff]  ;;  %v1557_v31 = vld [vmem:[%s2425_s1 + $0x8] sm:$0xff]  ;;  %v102_v33 = vpack.c.bf16 %v1856_v30, %v43_v29  ;;  %v1558_v36 = vld [vmem:[%s2425_s1 + $0x10] sm:$0xff] }
  0x13   :  { %458 = vmatpush.bf16.msra.mxu1 %v1569_v13  ;;  %v1835_v24 = vld [vmem:[%s2426_s2] sm:$0xff]  ;;  %v1547_v32 = vld [vmem:[%s2424_s0 + $0x8] sm:$0xff]  ;;  %v1548_v37 = vld [vmem:[%s2424_s0 + $0x10] sm:$0xff] }
  0x14   :  { %565 = vmatpush.bf16.msra.mxu2 %v1585_v14  ;;  %v1556_v26 = vld [vmem:[%s2425_s1] sm:$0xff]  ;;  %v101_v28 = vpack.c.bf16 %v1840_v25, %v1835_v24  ;;  %v46_v35 = vld [vmem:[%s2426_s2 + $0x28] sm:$0xff]  ;;  %v47_v39 = vld [vmem:[%s2426_s2 + $0x30] sm:$0xff] }
  0x15   :  { %v1546_v27 = vld [vmem:[%s2424_s0] sm:$0xff]  ;;  %v48_v40 = vld [vmem:[%s2426_s2 + $0x38] sm:$0xff]  ;;  %v50_v45 = vld [vmem:[%s2426_s2 + $0x48] sm:$0xff] }
  0x16   :  { %292 = vmatpush.bf16.msra.mxu0 %v1576_v15  ;;  %v45_v34 = vld [vmem:[%s2426_s2 + $0x20] sm:$0xff]  ;;  %v1559_v41 = vld [vmem:[%s2425_s1 + $0x18] sm:$0xff]  ;;  %v104_v43 = vpack.c.bf16 %v48_v40, %v47_v39  ;;  %v51_v49 = vld [vmem:[%s2426_s2 + $0x50] sm:$0xff] }
  0x17   :  { %459 = vmatpush.bf16.msra.mxu1 %v1568_v16  ;;  %v103_v38 = vpack.c.bf16 %v46_v35, %v45_v34  ;;  %v1549_v42 = vld [vmem:[%s2424_s0 + $0x18] sm:$0xff]  ;;  %v49_v44 = vld [vmem:[%s2426_s2 + $0x40] sm:$0xff]  ;;  %v1561_v51 = vld [vmem:[%s2425_s1 + $0x28] sm:$0xff] }
  0x18   :  { %566 = vmatpush.bf16.msra.mxu2 %v1584_v17  ;;  %v1560_v46 = vld [vmem:[%s2425_s1 + $0x20] sm:$0xff]  ;;  %v105_v48 = vpack.c.bf16 %v50_v45, %v49_v44  ;;  %v52_v50 = vld [vmem:[%s2426_s2 + $0x58] sm:$0xff]  ;;  %v1551_v52 = vld [vmem:[%s2424_s0 + $0x28] sm:$0xff] }
  0x19   :  { %v1550_v47 = vld [vmem:[%s2424_s0 + $0x20] sm:$0xff]  ;;  %v106_v53 = vpack.c.bf16 %v52_v50, %v51_v49  ;;  %v1597_v54 = vld [vmem:[%s2431_s7 + $0x38] sm:$0xff]  ;;  %v1596_v55 = vld [vmem:[%s2431_s7 + $0x30] sm:$0xff] }
  0x1a   :  { %293 = vmatpush.bf16.msra.mxu0 %v1575_v18  ;;  %744 = vmatpush.bf16.msra.mxu3 %v1597_v54  ;;  %v53_v56 = vld [vmem:[%s2426_s2 + $0x60] sm:$0xff]  ;;  %v54_v57 = vld [vmem:[%s2426_s2 + $0x68] sm:$0xff]  ;;  %v1562_v58 = vld [vmem:[%s2425_s1 + $0x30] sm:$0xff] }
  0x1b   :  { %460 = vmatpush.bf16.msra.mxu1 %v1567_v19  ;;  %v1552_v59 = vld [vmem:[%s2424_s0 + $0x30] sm:$0xff]  ;;  %v1595_v60 = vld [vmem:[%s2431_s7 + $0x28] sm:$0xff]  ;;  %v107_v61 = vpack.c.bf16 %v54_v57, %v53_v56  ;;  %v1594_v62 = vld [vmem:[%s2431_s7 + $0x20] sm:$0xff] }
  0x1c   :  { %567 = vmatpush.bf16.msra.mxu2 %v1583_v20  ;;  %v1593_v63 = vld [vmem:[%s2431_s7 + $0x18] sm:$0xff]  ;;  %v1592_v0 = vld [vmem:[%s2431_s7 + $0x10] sm:$0xff]  ;;  %v1591_v5 = vld [vmem:[%s2431_s7 + $0x8] sm:$0xff] }
  0x1d   :  { %v55_v1 = vld [vmem:[%s2426_s2 + $0x70] sm:$0xff]  ;;  %v56_v2 = vld [vmem:[%s2426_s2 + $0x78] sm:$0xff]  ;;  %v1590_v7 = vld [vmem:[%s2431_s7] sm:$0xff] }
  0x1e   :  { %294 = vmatpush.bf16.msra.mxu0 %v1574_v21  ;;  %745 = vmatpush.bf16.msra.mxu3 %v1596_v55  ;;  %v1563_v3 = vld [vmem:[%s2425_s1 + $0x38] sm:$0xff]  ;;  %v108_v6 = vpack.c.bf16 %v56_v2, %v55_v1  ;;  %v57_v8 = vld [vmem:[%s2426_s2 + $0x80] sm:$0xff]  ;;  %v58_v9 = vld [vmem:[%s2426_s2 + $0x88] sm:$0xff] }
  0x1f   :  { %461 = vmatpush.bf16.msra.mxu1 %v1566_v22  ;;  %v1553_v4 = vld [vmem:[%s2424_s0 + $0x38] sm:$0xff]  ;;  %v1564_v10 = vld [vmem:[%s2425_s1 + $0x40] sm:$0xff]  ;;  %v109_v14 = vpack.c.bf16 %v58_v9, %v57_v8  ;;  %v59_v21 = vld [vmem:[%s2426_s2 + $0x90] sm:$0xff] }
  0x20   :  { %568 = vmatpush.bf16.msra.mxu2 %v1582_v23  ;;  %v1554_v11 = vld [vmem:[%s2424_s0 + $0x40] sm:$0xff]  ;;  %v60_v22 = vld [vmem:[%s2426_s2 + $0x98] sm:$0xff] }
  0x21   :  { %295 = vmatmul.bf16.vlgmr.msra.gmra.mxu0 %v1556_v26  ;;  %v1976_v20 = vld [vmem:[%s2430_s6] ss:$0 sm:$0xff]  ;;  %v110_v34 = vpack.c.bf16 %v60_v22, %v59_v21  ;;  %s1694_s6 = smov 8  }
  0x22   :  { %462 = vmatmul.bf16.vlgmr.msra.gmra.mxu1 %v1546_v27  ;;  %746 = vmatpush.bf16.msra.mxu3 %v1595_v60  ;;  %v1565_v27 = vld [vmem:[%s2425_s1 + $0x48] sm:$0xff]  ;;  %s1693_s1 = smov 128  }
  0x23   :  { %569 = vmatmul.bf16.vlgmr.msra.gmra.mxu2 %v101_v28  ;;  %v1555_v28 = vld [vmem:[%s2424_s0 + $0x48] sm:$0xff] }
  0x26   :  { %747 = vmatpush.bf16.msra.mxu3 %v1594_v62 }
  0x2a   :  { %748 = vmatpush.bf16.msra.mxu3 %v1593_v63 }
  0x2e   :  { %749 = vmatpush.bf16.msra.mxu3 %v1592_v0 }
  0x31   :  { %300 = vmatmul.bf16.gmra.mxu0 %v1557_v31 }
  0x32   :  { %467 = vmatmul.bf16.gmra.mxu1 %v1547_v32  ;;  %750 = vmatpush.bf16.msra.mxu3 %v1591_v5 }
  0x33   :  { %574 = vmatmul.bf16.gmra.mxu2 %v102_v33 }
  0x36   :  { %751 = vmatpush.bf16.msra.mxu3 %v1590_v7 }
  0x41   :  { %305 = vmatmul.bf16.gmra.mxu0 %v1558_v36 }
  0x42   :  { %472 = vmatmul.bf16.gmra.mxu1 %v1548_v37 }
  0x43   :  { %579 = vmatmul.bf16.gmra.mxu2 %v103_v38 }
  0x51   :  { %310 = vmatmul.bf16.gmra.mxu0 %v1559_v41 }
  0x52   :  { %477 = vmatmul.bf16.gmra.mxu1 %v1549_v42 }
  0x53   :  { %584 = vmatmul.bf16.gmra.mxu2 %v104_v43 }
  0x61   :  { %315 = vmatmul.bf16.gmra.mxu0 %v1560_v46 }
  0x62   :  { %482 = vmatmul.bf16.gmra.mxu1 %v1550_v47 }
  0x63   :  { %589 = vmatmul.bf16.gmra.mxu2 %v105_v48 }
  0x71   :  { %320 = vmatmul.bf16.gmra.mxu0 %v1561_v51 }
  0x72   :  { %487 = vmatmul.bf16.gmra.mxu1 %v1551_v52 }
  0x73   :  { %594 = vmatmul.bf16.gmra.mxu2 %v106_v53 }
  0x81   :  { %325 = vmatmul.bf16.gmra.mxu0 %v1562_v58 }
  0x82   :  { %492 = vmatmul.bf16.gmra.mxu1 %v1552_v59 }
  0x83   :  { %599 = vmatmul.bf16.gmra.mxu2 %v107_v61 }
  0x91   :  { %330 = vmatmul.bf16.gmra.mxu0 %v1563_v3 }
  0x92   :  { %497 = vmatmul.bf16.gmra.mxu1 %v1553_v4 }
  0x93   :  { %604 = vmatmul.bf16.gmra.mxu2 %v108_v6 }
  0x9e   :  { %v296_v12 = vpop.f32.mrf.mxu0 }
  0x9f   :  { %v463_v13 = vpop.f32.mrf.mxu1 }
  0xa0   :  { %v464_v16 = vadd.f32 %v463_v13, %v296_v12 }
  0xa1   :  { %335 = vmatmul.bf16.gmra.mxu0 %v1564_v10 }
  0xa2   :  { %502 = vmatmul.bf16.gmra.mxu1 %v1554_v11 }
  0xa3   :  { %609 = vmatmul.bf16.gmra.mxu2 %v109_v14 }
  0xa6   :  { %v570_v15 = vpop.f32.mrf.mxu2  ;;  %v298_v17 = vpop.f32.mrf.mxu0 }
  0xa7   :  { %v465_v18 = vpop.f32.mrf.mxu1  ;;  %v620_v19 = vadd.f32 %v570_v15, %v464_v16 }
  0xa8   :  { %v466_v23 = vadd.f32 %v465_v18, %v298_v17 }
  0xa9   :  { %v643_v29 = vadd.f32 %v1976_v20, %v620_v19 }
  0xab   :  { %v663_v36 = vmax.f32 %v643_v29, 0.0 }
  0xae   :  { %v572_v26 = vpop.f32.mrf.mxu2  ;;  %v301_v32 = vpop.f32.mrf.mxu0 }
  0xaf   :  { %v621_v31 = vadd.f32 %v572_v26, %v466_v23  ;;  %v468_v33 = vpop.f32.mrf.mxu1 }
  0xb0   :  { %v469_v40 = vadd.f32 %v468_v33, %v301_v32 }
  0xb1   :  { %v644_v35 = vadd.f32 %v1976_v20, %v621_v31  ;;  %340 = vmatmul.bf16.gmra.mxu0 %v1565_v27 }
  0xb2   :  { %507 = vmatmul.bf16.gmra.mxu1 %v1555_v28 }
  0xb3   :  { %v664_v37 = vmax.f32 %v644_v35, 0.0  ;;  %614 = vmatmul.bf16.gmra.mxu2 %v110_v34 }
  0xb5   :  { %v683_v38 = vpack.c.bf16 %v664_v37, %v663_v36 }
  0xb6   :  { %v575_v39 = vpop.f32.mrf.mxu2  ;;  %v303_v41 = vpop.f32.mrf.mxu0 }
  0xb7   :  { %752 = vmatmul.bf16.vlgmr.msra.gmra.mxu3 %v683_v38  ;;  %v470_v42 = vpop.f32.mrf.mxu1  ;;  %v622_v43 = vadd.f32 %v575_v39, %v469_v40 }
  0xb8   :  { %v471_v44 = vadd.f32 %v470_v42, %v303_v41 }
  0xb9   :  { %v645_v46 = vadd.f32 %v1976_v20, %v622_v43 }
  0xbb   :  { %v665_v51 = vmax.f32 %v645_v46, 0.0 }
  0xbe   :  { %v577_v45 = vpop.f32.mrf.mxu2  ;;  %v306_v48 = vpop.f32.mrf.mxu0 }
  0xbf   :  { %v623_v47 = vadd.f32 %v577_v45, %v471_v44  ;;  %v473_v49 = vpop.f32.mrf.mxu1 }
  0xc0   :  { %v474_v55 = vadd.f32 %v473_v49, %v306_v48 }
  0xc1   :  { %v646_v50 = vadd.f32 %v1976_v20, %v623_v47 }
  0xc3   :  { %v666_v52 = vmax.f32 %v646_v50, 0.0 }
  0xc5   :  { %v684_v53 = vpack.c.bf16 %v666_v52, %v665_v51 }
  0xc6   :  { %v580_v54 = vpop.f32.mrf.mxu2  ;;  %v308_v56 = vpop.f32.mrf.mxu0 }
  0xc7   :  { %757 = vmatmul.bf16.gmra.mxu3 %v684_v53  ;;  %v475_v57 = vpop.f32.mrf.mxu1  ;;  %v624_v58 = vadd.f32 %v580_v54, %v474_v55 }
  0xc8   :  { %v476_v59 = vadd.f32 %v475_v57, %v308_v56 }
  0xc9   :  { %v647_v61 = vadd.f32 %v1976_v20, %v624_v58 }
  0xcb   :  { %v667_v2 = vmax.f32 %v647_v61, 0.0 }
  0xce   :  { %v582_v60 = vpop.f32.mrf.mxu2  ;;  %v311_v63 = vpop.f32.mrf.mxu0 }
  0xcf   :  { %v625_v62 = vadd.f32 %v582_v60, %v476_v59  ;;  %v478_v0 = vpop.f32.mrf.mxu1 }
  0xd0   :  { %v479_v6 = vadd.f32 %v478_v0, %v311_v63 }
  0xd1   :  { %v648_v1 = vadd.f32 %v1976_v20, %v625_v62 }
  0xd3   :  { %v668_v3 = vmax.f32 %v648_v1, 0.0 }
  0xd5   :  { %v685_v4 = vpack.c.bf16 %v668_v3, %v667_v2 }
  0xd6   :  { %v585_v5 = vpop.f32.mrf.mxu2  ;;  %v313_v7 = vpop.f32.mrf.mxu0 }
  0xd7   :  { %762 = vmatmul.bf16.gmra.mxu3 %v685_v4  ;;  %v480_v8 = vpop.f32.mrf.mxu1  ;;  %v626_v9 = vadd.f32 %v585_v5, %v479_v6 }
  0xd8   :  { %v481_v10 = vadd.f32 %v480_v8, %v313_v7 }
  0xd9   :  { %v649_v12 = vadd.f32 %v1976_v20, %v626_v9 }
  0xdb   :  { %v669_v17 = vmax.f32 %v649_v12, 0.0 }
  0xde   :  { %v587_v11 = vpop.f32.mrf.mxu2  ;;  %v316_v14 = vpop.f32.mrf.mxu0 }
  0xdf   :  { %v627_v13 = vadd.f32 %v587_v11, %v481_v10  ;;  %v483_v15 = vpop.f32.mrf.mxu1 }
  0xe0   :  { %v484_v22 = vadd.f32 %v483_v15, %v316_v14 }
  0xe1   :  { %v650_v16 = vadd.f32 %v1976_v20, %v627_v13 }
  0xe3   :  { %v670_v18 = vmax.f32 %v650_v16, 0.0 }
  0xe5   :  { %v686_v19 = vpack.c.bf16 %v670_v18, %v669_v17 }
  0xe6   :  { %v590_v21 = vpop.f32.mrf.mxu2  ;;  %v318_v23 = vpop.f32.mrf.mxu0 }
  0xe7   :  { %767 = vmatmul.bf16.gmra.mxu3 %v686_v19  ;;  %v485_v26 = vpop.f32.mrf.mxu1  ;;  %v628_v27 = vadd.f32 %v590_v21, %v484_v22 }
  0xe8   :  { %v486_v28 = vadd.f32 %v485_v26, %v318_v23 }
  0xe9   :  { %v651_v31 = vadd.f32 %v1976_v20, %v628_v27 }
  0xeb   :  { %v671_v36 = vmax.f32 %v651_v31, 0.0 }
  0xee   :  { %v592_v29 = vpop.f32.mrf.mxu2  ;;  %v321_v33 = vpop.f32.mrf.mxu0 }
  0xef   :  { %v629_v32 = vadd.f32 %v592_v29, %v486_v28  ;;  %v488_v34 = vpop.f32.mrf.mxu1 }
  0xf0   :  { %v489_v40 = vadd.f32 %v488_v34, %v321_v33 }
  0xf1   :  { %v652_v35 = vadd.f32 %v1976_v20, %v629_v32 }
  0xf3   :  { %v672_v37 = vmax.f32 %v652_v35, 0.0 }
  0xf5   :  { %v687_v38 = vpack.c.bf16 %v672_v37, %v671_v36 }
  0xf6   :  { %v595_v39 = vpop.f32.mrf.mxu2  ;;  %v323_v41 = vpop.f32.mrf.mxu0 }
  0xf7   :  { %772 = vmatmul.bf16.gmra.mxu3 %v687_v38  ;;  %v490_v42 = vpop.f32.mrf.mxu1  ;;  %v630_v43 = vadd.f32 %v595_v39, %v489_v40 }
  0xf8   :  { %v491_v44 = vadd.f32 %v490_v42, %v323_v41  ;;  %v2011_v41 = vld [vmem:[%s2432_s8] ss:$0 sm:$0xff] }
  0xf9   :  { %v653_v46 = vadd.f32 %v1976_v20, %v630_v43 }
  0xfb   :  { %v673_v51 = vmax.f32 %v653_v46, 0.0 }
  0xfe   :  { %v597_v45 = vpop.f32.mrf.mxu2  ;;  %v326_v48 = vpop.f32.mrf.mxu0 }
  0xff   :  { %v631_v47 = vadd.f32 %v597_v45, %v491_v44  ;;  %v493_v49 = vpop.f32.mrf.mxu1 }
 0x100   :  { %v494_v55 = vadd.f32 %v493_v49, %v326_v48 }
 0x101   :  { %v654_v50 = vadd.f32 %v1976_v20, %v631_v47 }
 0x103   :  { %v674_v52 = vmax.f32 %v654_v50, 0.0 }
 0x105   :  { %v688_v53 = vpack.c.bf16 %v674_v52, %v673_v51 }
 0x106   :  { %v600_v54 = vpop.f32.mrf.mxu2  ;;  %v328_v56 = vpop.f32.mrf.mxu0 }
 0x107   :  { %777 = vmatmul.bf16.gmra.mxu3 %v688_v53  ;;  %v495_v57 = vpop.f32.mrf.mxu1  ;;  %v632_v58 = vadd.f32 %v600_v54, %v494_v55 }
 0x108   :  { %v496_v59 = vadd.f32 %v495_v57, %v328_v56 }
 0x109   :  { %v655_v61 = vadd.f32 %v1976_v20, %v632_v58 }
 0x10b   :  { %v675_v2 = vmax.f32 %v655_v61, 0.0 }
 0x10e   :  { %v602_v60 = vpop.f32.mrf.mxu2  ;;  %v331_v63 = vpop.f32.mrf.mxu0 }
 0x10f   :  { %v633_v62 = vadd.f32 %v602_v60, %v496_v59  ;;  %v498_v0 = vpop.f32.mrf.mxu1 }
 0x110   :  { %v499_v6 = vadd.f32 %v498_v0, %v331_v63 }
 0x111   :  { %v656_v1 = vadd.f32 %v1976_v20, %v633_v62 }
 0x113   :  { %v676_v3 = vmax.f32 %v656_v1, 0.0 }
 0x115   :  { %v689_v4 = vpack.c.bf16 %v676_v3, %v675_v2 }
 0x116   :  { %v605_v5 = vpop.f32.mrf.mxu2  ;;  %v333_v7 = vpop.f32.mrf.mxu0 }
 0x117   :  { %782 = vmatmul.bf16.gmra.mxu3 %v689_v4  ;;  %v500_v8 = vpop.f32.mrf.mxu1  ;;  %v634_v9 = vadd.f32 %v605_v5, %v499_v6 }
 0x118   :  { %v501_v10 = vadd.f32 %v500_v8, %v333_v7 }
 0x119   :  { %v657_v12 = vadd.f32 %v1976_v20, %v634_v9 }
 0x11b   :  { %v677_v17 = vmax.f32 %v657_v12, 0.0  ;;  %v1691_v12 = vmov 128.0  }
 0x11c   :  { %1606 = vrcp.f32 %v1691_v12 }
 0x11e   :  { %v607_v11 = vpop.f32.mrf.mxu2  ;;  %v336_v14 = vpop.f32.mrf.mxu0 }
 0x11f   :  { %v635_v13 = vadd.f32 %v607_v11, %v501_v10  ;;  %v503_v15 = vpop.f32.mrf.mxu1 }
 0x120   :  { %v504_v22 = vadd.f32 %v503_v15, %v336_v14 }
 0x121   :  { %v658_v16 = vadd.f32 %v1976_v20, %v635_v13 }
 0x122   :  { %v1607_v14 = vpop.eup %1606 }
 0x123   :  { %v678_v18 = vmax.f32 %v658_v16, 0.0  ;;  %v844_v16 = vmul.f32 128.0, %v1607_v14  ;;  %vm848_vm0 = vweird.f32 %v1607_v14 }
 0x125   :  { %v690_v19 = vpack.c.bf16 %v678_v18, %v677_v17  ;;  %v845_v18 = vsub.f32 1.0, %v844_v16 }
 0x126   :  { %v610_v21 = vpop.f32.mrf.mxu2  ;;  %v338_v23 = vpop.f32.mrf.mxu0 }
 0x127   :  { %787 = vmatmul.bf16.gmra.mxu3 %v690_v19  ;;  %v505_v26 = vpop.f32.mrf.mxu1  ;;  %v636_v27 = vadd.f32 %v610_v21, %v504_v22  ;;  %v846_v21 = vmul.f32 %v1607_v14, %v845_v18 }
 0x128   :  { %v506_v28 = vadd.f32 %v505_v26, %v338_v23 }
 0x129   :  { %v659_v31 = vadd.f32 %v1976_v20, %v636_v27  ;;  %v847_v23 = vadd.f32 %v1607_v14, %v846_v21 }
 0x12b   :  { %v679_v36 = vmax.f32 %v659_v31, 0.0  ;;  %v2075_v27 = vsel %vm848_vm0, %v1607_v14, %v847_v23 }
 0x12e   :  { %v612_v29 = vpop.f32.mrf.mxu2  ;;  %v341_v33 = vpop.f32.mrf.mxu0 }
 0x12f   :  { %v637_v32 = vadd.f32 %v612_v29, %v506_v28  ;;  %v508_v34 = vpop.f32.mrf.mxu1 }
 0x130   :  { %v509_v40 = vadd.f32 %v508_v34, %v341_v33 }
 0x131   :  { %v660_v35 = vadd.f32 %v1976_v20, %v637_v32 }
 0x133   :  { %v680_v37 = vmax.f32 %v660_v35, 0.0 }
 0x135   :  { %v691_v38 = vpack.c.bf16 %v680_v37, %v679_v36 }
 0x136   :  { %v615_v39 = vpop.f32.mrf.mxu2  ;;  %v343_v42 = vpop.f32.mrf.mxu0 }
 0x137   :  { %792 = vmatmul.bf16.gmra.mxu3 %v691_v38  ;;  %v510_v43 = vpop.f32.mrf.mxu1  ;;  %v638_v45 = vadd.f32 %v615_v39, %v509_v40 }
 0x138   :  { %v511_v47 = vadd.f32 %v510_v43, %v343_v42 }
 0x139   :  { %v661_v49 = vadd.f32 %v1976_v20, %v638_v45 }
 0x13a   :  { %v753_v44 = vpop.f32.mrf.mxu3 }
 0x13b   :  { %v2014_v46 = vadd.f32 %v2011_v41, %v753_v44  ;;  %v681_v53 = vmax.f32 %v661_v49, 0.0 }
 0x13d   :  { %803 = vadd.xlane.f32.xlu0 %v2014_v46 }
 0x13e   :  { %v617_v48 = vpop.f32.mrf.mxu2 }
 0x13f   :  { %v639_v50 = vadd.f32 %v617_v48, %v511_v47 }
 0x141   :  { %v662_v51 = vadd.f32 %v1976_v20, %v639_v50 }
 0x142   :  { %v755_v52 = vpop.f32.mrf.mxu3 }
 0x143   :  { %v682_v54 = vmax.f32 %v662_v51, 0.0  ;;  %v2020_v55 = vadd.f32 %v2011_v41, %v755_v52 }
 0x145   :  { %805 = vadd.xlane.f32.xlu0 %v2020_v55  ;;  %v692_v56 = vpack.c.bf16 %v682_v54, %v681_v53 }
 0x147   :  { %797 = vmatmul.bf16.gmra.mxu3 %v692_v56 }
 0x14a   :  { %v758_v57 = vpop.f32.mrf.mxu3 }
 0x14b   :  { %v2024_v58 = vadd.f32 %v2011_v41, %v758_v57 }
 0x14d   :  { %807 = vadd.xlane.f32.xlu1 %v2024_v58 }
 0x152   :  { %v760_v59 = vpop.f32.mrf.mxu3 }
 0x153   :  { %v2028_v60 = vadd.f32 %v2011_v41, %v760_v59 }
 0x155   :  { %809 = vadd.xlane.f32.xlu1 %v2028_v60 }
 0x15a   :  { %v763_v20 = vpop.f32.mrf.mxu3 }
 0x15b   :  { %v2032_v61 = vadd.f32 %v2011_v41, %v763_v20 }
 0x15d   :  { %811 = vadd.xlane.f32.xlu2 %v2032_v61 }
 0x162   :  { %v765_v62 = vpop.f32.mrf.mxu3 }
 0x163   :  { %v2036_v63 = vadd.f32 %v2011_v41, %v765_v62 }
 0x165   :  { %813 = vadd.xlane.f32.xlu2 %v2036_v63 }
 0x16a   :  { %v768_v0 = vpop.f32.mrf.mxu3 }
 0x16b   :  { %v2040_v1 = vadd.f32 %v2011_v41, %v768_v0 }
 0x16d   :  { %815 = vadd.xlane.f32.xlu0 %v2040_v1 }
 0x172   :  { %v770_v2 = vpop.f32.mrf.mxu3 }
 0x173   :  { %v2044_v3 = vadd.f32 %v2011_v41, %v770_v2 }
 0x175   :  { %817 = vadd.xlane.f32.xlu1 %v2044_v3 }
 0x17a   :  { %v773_v4 = vpop.f32.mrf.mxu3 }
 0x17b   :  { %v2048_v5 = vadd.f32 %v2011_v41, %v773_v4 }
 0x17d   :  { %819 = vadd.xlane.f32.xlu2 %v2048_v5 }
 0x182   :  { %v775_v6 = vpop.f32.mrf.mxu3 }
 0x183   :  { %v2052_v7 = vadd.f32 %v2011_v41, %v775_v6 }
 0x185   :  { %821 = vadd.xlane.f32.xlu0 %v2052_v7 }
 0x18a   :  { %v778_v8 = vpop.f32.mrf.mxu3 }
 0x18b   :  { %v2056_v9 = vadd.f32 %v2011_v41, %v778_v8 }
 0x18d   :  { %823 = vadd.xlane.f32.xlu1 %v2056_v9 }
 0x192   :  { %v780_v10 = vpop.f32.mrf.mxu3 }
 0x193   :  { %v2060_v11 = vadd.f32 %v2011_v41, %v780_v10 }
 0x195   :  { %825 = vadd.xlane.f32.xlu2 %v2060_v11 }
 0x19a   :  { %v783_v13 = vpop.f32.mrf.mxu3 }
 0x19b   :  { %v2064_v15 = vadd.f32 %v2011_v41, %v783_v13 }
 0x19d   :  { %827 = vadd.xlane.f32.xlu0 %v2064_v15 }
 0x1a2   :  { %v785_v17 = vpop.f32.mrf.mxu3 }
 0x1a3   :  { %v2068_v19 = vadd.f32 %v2011_v41, %v785_v17 }
 0x1a5   :  { %829 = vadd.xlane.f32.xlu1 %v2068_v19 }
 0x1aa   :  { %v788_v22 = vpop.f32.mrf.mxu3 }
 0x1ab   :  { %v2072_v26 = vadd.f32 %v2011_v41, %v788_v22 }
 0x1ad   :  { %831 = vadd.xlane.f32.xlu2 %v2072_v26 }
 0x1b0   :  { %v804_v28 = vpop.xlane.xlu0 %803 }
 0x1b1   :  { %v850_v29 = vmul.f32 %v2075_v27, %v804_v28 }
 0x1b2   :  { %v790_v31 = vpop.f32.mrf.mxu3 }
 0x1b3   :  { %v2079_v32 = vsub.f32 %v2014_v46, %v850_v29  ;;  %v2082_v33 = vadd.f32 %v2011_v41, %v790_v31 }
 0x1b5   :  { %833 = vadd.xlane.f32.xlu0 %v2082_v33  ;;  %v890_v34 = vmul.f32 %v2079_v32, %v2079_v32 }
 0x1b7   :  { %910 = vadd.xlane.f32.xlu2 %v890_v34 }
 0x1b8   :  { %v806_v35 = vpop.xlane.xlu0 %805 }
 0x1b9   :  { %v851_v36 = vmul.f32 %v2075_v27, %v806_v35 }
 0x1ba   :  { %v793_v37 = vpop.f32.mrf.mxu3 }
 0x1bb   :  { %v2089_v38 = vsub.f32 %v2020_v55, %v851_v36  ;;  %v2092_v39 = vadd.f32 %v2011_v41, %v793_v37 }
 0x1bd   :  { %835 = vadd.xlane.f32.xlu1 %v2092_v39  ;;  %v891_v40 = vmul.f32 %v2089_v38, %v2089_v38 }
 0x1bf   :  { %912 = vadd.xlane.f32.xlu0 %v891_v40 }
 0x1c0   :  { %v808_v42 = vpop.xlane.xlu1 %807 }
 0x1c1   :  { %v852_v54 = vmul.f32 %v2075_v27, %v808_v42 }
 0x1c2   :  { %v795_v43 = vpop.f32.mrf.mxu3 }
 0x1c3   :  { %v2098_v44 = vadd.f32 %v2011_v41, %v795_v43  ;;  %v2123_v59 = vsub.f32 %v2024_v58, %v852_v54 }
 0x1c5   :  { %837 = vadd.xlane.f32.xlu2 %v2098_v44  ;;  %v892_v62 = vmul.f32 %v2123_v59, %v2123_v59 }
 0x1c8   :  { %v810_v45 = vpop.xlane.xlu1 %809 }
 0x1c9   :  { %v853_v46 = vmul.f32 %v2075_v27, %v810_v45 }
 0x1ca   :  { %v798_v47 = vpop.f32.mrf.mxu3 }
 0x1cb   :  { %v2103_v48 = vsub.f32 %v2028_v60, %v853_v46  ;;  %v2106_v49 = vadd.f32 %v2011_v41, %v798_v47 }
 0x1cd   :  { %839 = vadd.xlane.f32.xlu0 %v2106_v49  ;;  %v893_v50 = vmul.f32 %v2103_v48, %v2103_v48 }
 0x1cf   :  { %916 = vadd.xlane.f32.xlu2 %v893_v50 }
 0x1d0   :  { %v812_v51 = vpop.xlane.xlu2 %811 }
 0x1d1   :  { %v854_v52 = vmul.f32 %v2075_v27, %v812_v51 }
 0x1d2   :  { %v800_v53 = vpop.f32.mrf.mxu3 }
 0x1d3   :  { %v2114_v55 = vsub.f32 %v2032_v61, %v854_v52  ;;  %v2117_v56 = vadd.f32 %v2011_v41, %v800_v53 }
 0x1d5   :  { %841 = vadd.xlane.f32.xlu1 %v2117_v56  ;;  %v894_v57 = vmul.f32 %v2114_v55, %v2114_v55 }
 0x1d7   :  { %918 = vadd.xlane.f32.xlu0 %v894_v57 }
 0x1d8   :  { %v814_v60 = vpop.xlane.xlu2 %813 }
 0x1d9   :  { %v855_v20 = vmul.f32 %v2075_v27, %v814_v60 }
 0x1db   :  { %v2129_v61 = vsub.f32 %v2036_v63, %v855_v20 }
 0x1dd   :  { %914 = vadd.xlane.f32.xlu1 %v892_v62  ;;  %v895_v58 = vmul.f32 %v2129_v61, %v2129_v61 }
 0x1e0   :  { %v816_v41 = vpop.xlane.xlu0 %815 }
 0x1e1   :  { %v856_v0 = vmul.f32 %v2075_v27, %v816_v41 }
 0x1e3   :  { %v2133_v2 = vsub.f32 %v2040_v1, %v856_v0 }
 0x1e5   :  { %920 = vadd.xlane.f32.xlu1 %v895_v58  ;;  %v896_v4 = vmul.f32 %v2133_v2, %v2133_v2 }
 0x1e7   :  { %922 = vadd.xlane.f32.xlu2 %v896_v4 }
 0x1e8   :  { %v818_v6 = vpop.xlane.xlu1 %817 }
 0x1e9   :  { %v857_v8 = vmul.f32 %v2075_v27, %v818_v6 }
 0x1eb   :  { %v2141_v63 = vsub.f32 %v2044_v3, %v857_v8 }
 0x1ed   :  { %v897_v10 = vmul.f32 %v2141_v63, %v2141_v63 }
 0x1ef   :  { %924 = vadd.xlane.f32.xlu0 %v897_v10 }
 0x1f0   :  { %v820_v1 = vpop.xlane.xlu2 %819 }
 0x1f1   :  { %v858_v12 = vmul.f32 %v2075_v27, %v820_v1 }
 0x1f3   :  { %v2147_v13 = vsub.f32 %v2048_v5, %v858_v12 }
 0x1f5   :  { %v898_v14 = vmul.f32 %v2147_v13, %v2147_v13 }
 0x1f7   :  { %926 = vadd.xlane.f32.xlu1 %v898_v14 }
 0x1f8   :  { %v822_v16 = vpop.xlane.xlu0 %821 }
 0x1f9   :  { %v859_v17 = vmul.f32 %v2075_v27, %v822_v16 }
 0x1fb   :  { %v2153_v3 = vsub.f32 %v2052_v7, %v859_v17 }
 0x1fd   :  { %v899_v18 = vmul.f32 %v2153_v3, %v2153_v3 }
 0x1ff   :  { %928 = vadd.xlane.f32.xlu2 %v899_v18  ;;  %v2210_v18 = vld [vmem:[%s2433_s9] ss:$0 sm:$0xff] }
 0x200   :  { %v824_v21 = vpop.xlane.xlu1 %823 }
 0x201   :  { %v860_v22 = vmul.f32 %v2075_v27, %v824_v21 }
 0x203   :  { %v2159_v5 = vsub.f32 %v2056_v9, %v860_v22 }
 0x205   :  { %v900_v23 = vmul.f32 %v2159_v5, %v2159_v5 }
 0x207   :  { %930 = vadd.xlane.f32.xlu0 %v900_v23  ;;  %v2215_v23 = vld [vmem:[%s2434_s10] ss:$0 sm:$0xff] }
 0x208   :  { %v826_v28 = vpop.xlane.xlu2 %825 }
 0x209   :  { %v861_v29 = vmul.f32 %v2075_v27, %v826_v28 }
 0x20b   :  { %v2165_v7 = vsub.f32 %v2060_v11, %v861_v29 }
 0x20d   :  { %v901_v31 = vmul.f32 %v2165_v7, %v2165_v7 }
 0x20f   :  { %932 = vadd.xlane.f32.xlu1 %v901_v31 }
 0x210   :  { %v828_v34 = vpop.xlane.xlu0 %827 }
 0x211   :  { %v862_v35 = vmul.f32 %v2075_v27, %v828_v34 }
 0x213   :  { %v2171_v9 = vsub.f32 %v2064_v15, %v862_v35 }
 0x215   :  { %v902_v36 = vmul.f32 %v2171_v9, %v2171_v9 }
 0x217   :  { %934 = vadd.xlane.f32.xlu2 %v902_v36 }
 0x218   :  { %v830_v37 = vpop.xlane.xlu1 %829 }
 0x219   :  { %v863_v40 = vmul.f32 %v2075_v27, %v830_v37 }
 0x21b   :  { %v2177_v11 = vsub.f32 %v2068_v19, %v863_v40 }
 0x21d   :  { %v903_v42 = vmul.f32 %v2177_v11, %v2177_v11 }
 0x21f   :  { %936 = vadd.xlane.f32.xlu0 %v903_v42 }
 0x220   :  { %v832_v43 = vpop.xlane.xlu2 %831 }
 0x221   :  { %v864_v45 = vmul.f32 %v2075_v27, %v832_v43 }
 0x223   :  { %v2183_v15 = vsub.f32 %v2072_v26, %v864_v45 }
 0x225   :  { %v904_v46 = vmul.f32 %v2183_v15, %v2183_v15 }
 0x227   :  { %938 = vadd.xlane.f32.xlu1 %v904_v46 }
 0x228   :  { %v834_v47 = vpop.xlane.xlu0 %833 }
 0x229   :  { %v865_v50 = vmul.f32 %v2075_v27, %v834_v47 }
 0x22a   :  { %v911_v51 = vpop.xlane.xlu2 %910 }
 0x22b   :  { %v2189_v19 = vsub.f32 %v2082_v33, %v865_v50  ;;  %v950_v52 = vmul.f32 %v911_v51, %v2075_v27 }
 0x22d   :  { %v970_v53 = vadd.f32 1e-05, %v950_v52  ;;  %v905_v54 = vmul.f32 %v2189_v19, %v2189_v19 }
 0x22f   :  { %1608 = vrsqrt.f32 %v970_v53  ;;  %940 = vadd.xlane.f32.xlu2 %v905_v54  ;;  %vm996_vm2 = vweird.f32 %v970_v53 }
 0x230   :  { %v836_v26 = vpop.xlane.xlu1 %835 }
 0x231   :  { %v866_v57 = vmul.f32 %v2075_v27, %v836_v26 }
 0x232   :  { %v913_v60 = vpop.xlane.xlu0 %912 }
 0x233   :  { %v2196_v20 = vsub.f32 %v2092_v39, %v866_v57  ;;  %v951_v62 = vmul.f32 %v913_v60, %v2075_v27 }
 0x235   :  { %v1609_v41 = vpop.eup %1608  ;;  %v971_v33 = vadd.f32 1e-05, %v951_v62  ;;  %v906_v0 = vmul.f32 %v2196_v20, %v2196_v20 }
 0x236   :  { %v991_v58 = vmul.f32 %v1609_v41, %v970_v53  ;;  %vm997_vm1 = vweird.f32 %v1609_v41 }
 0x237   :  { %1610 = vrsqrt.f32 %v971_v33  ;;  %942 = vadd.xlane.f32.xlu0 %v906_v0  ;;  %vm998_vm3 = vmor %vm996_vm2, %vm997_vm1  ;;  %vm1006_vm5 = vweird.f32 %v971_v33 }
 0x238   :  { %v992_v4 = vmul.f32 %v1609_v41, %v991_v58  ;;  %v838_v6 = vpop.xlane.xlu2 %837 }
 0x239   :  { %v867_v8 = vmul.f32 %v2075_v27, %v838_v6 }
 0x23a   :  { %v993_v10 = vmul.f32 0.5, %v992_v4 }
 0x23b   :  { %v2203_v1 = vsub.f32 %v2098_v44, %v867_v8 }
 0x23c   :  { %v994_v39 = vsub.f32 1.5, %v993_v10 }
 0x23d   :  { %v1611_v12 = vpop.eup %1610  ;;  %v907_v14 = vmul.f32 %v2203_v1, %v2203_v1 }
 0x23e   :  { %v995_v16 = vmul.f32 %v1609_v41, %v994_v39  ;;  %v1001_v17 = vmul.f32 %v1611_v12, %v971_v33  ;;  %vm1007_vm4 = vweird.f32 %v1611_v12 }
 0x23f   :  { %944 = vadd.xlane.f32.xlu1 %v907_v14  ;;  %vm1008_vm6 = vmor %vm1006_vm5, %vm1007_vm4 }
 0x240   :  { %v999_v21 = vsel %vm998_vm3, %v1609_v41, %v995_v16  ;;  %v1002_v22 = vmul.f32 %v1611_v12, %v1001_v17  ;;  %v840_v44 = vpop.xlane.xlu0 %839 }
 0x241   :  { %v1190_v28 = vmul.f32 %v999_v21, %v2079_v32  ;;  %v868_v29 = vmul.f32 %v2075_v27, %v840_v44 }
 0x242   :  { %v1003_v31 = vmul.f32 0.5, %v1002_v22  ;;  %v917_v34 = vpop.xlane.xlu2 %916 }
 0x243   :  { %v1213_v35 = vmul.f32 %v2210_v18, %v1190_v28  ;;  %v2221_v36 = vsub.f32 %v2106_v49, %v868_v29  ;;  %v953_v37 = vmul.f32 %v917_v34, %v2075_v27 }
 0x244   :  { %v1004_v40 = vsub.f32 1.5, %v1003_v31 }
 0x245   :  { %v1236_v42 = vadd.f32 %v2215_v23, %v1213_v35  ;;  %v973_v43 = vadd.f32 1e-05, %v953_v37  ;;  %v908_v45 = vmul.f32 %v2221_v36, %v2221_v36 }
 0x246   :  { %v1005_v32 = vmul.f32 %v1611_v12, %v1004_v40 }
 0x247   :  { %1256 = vst [vmem:[%s2435_s11] sm:$0xff] %v1236_v42  ;;  %v1276_v46 = vadd.f32 %v1236_v42, %v1835_v24  ;;  %1612 = vrsqrt.f32 %v973_v43  ;;  %946 = vadd.xlane.f32.xlu2 %v908_v45  ;;  %vm1026_vm8 = vweird.f32 %v973_v43 }
 0x248   :  { %v1009_v49 = vsel %vm1008_vm6, %v1611_v12, %v1005_v32  ;;  %v842_v47 = vpop.xlane.xlu1 %841 }
 0x249   :  { %1296 = vst [vmem:[#allocation2] sm:$0xff] %v1276_v46  ;;  %v1191_v50 = vmul.f32 %v1009_v49, %v2089_v38  ;;  %v869_v51 = vmul.f32 %v2075_v27, %v842_v47 }
 0x24a   :  { %v919_v52 = vpop.xlane.xlu0 %918 }
 0x24b   :  { %v1214_v53 = vmul.f32 %v2210_v18, %v1191_v50  ;;  %v2235_v54 = vsub.f32 %v2117_v56, %v869_v51  ;;  %v954_v26 = vmul.f32 %v919_v52, %v2075_v27 }
 0x24d   :  { %v1613_v57 = vpop.eup %1612  ;;  %v1237_v24 = vadd.f32 %v2215_v23, %v1214_v53  ;;  %v974_v60 = vadd.f32 1e-05, %v954_v26  ;;  %v909_v62 = vmul.f32 %v2235_v54, %v2235_v54 }
 0x24e   :  { %v1021_v41 = vmul.f32 %v1613_v57, %v973_v43  ;;  %vm1027_vm7 = vweird.f32 %v1613_v57 }
 0x24f   :  { %1257 = vst [vmem:[%s2435_s11 + $0x8] sm:$0xff] %v1237_v24  ;;  %v1277_v38 = vadd.f32 %v1237_v24, %v1840_v25  ;;  %1614 = vrsqrt.f32 %v974_v60  ;;  %948 = vadd.xlane.f32.xlu0 %v909_v62  ;;  %vm1028_vm9 = vmor %vm1026_vm8, %vm1027_vm7  ;;  %vm1036_vm11 = vweird.f32 %v974_v60 }
 0x250   :  { %v1022_v56 = vmul.f32 %v1613_v57, %v1021_v41  ;;  %v915_v33 = vpop.xlane.xlu1 %914 }
 0x251   :  { %1297 = vst [vmem:[#allocation2 + $0x8] sm:$0xff] %v1277_v38  ;;  %v952_v0 = vmul.f32 %v915_v33, %v2075_v27 }
 0x252   :  { %v1023_v58 = vmul.f32 0.5, %v1022_v56 }
 0x253   :  { %v972_v4 = vadd.f32 1e-05, %v952_v0 }
 0x254   :  { %v1024_v6 = vsub.f32 1.5, %v1023_v58 }
 0x255   :  { %v1615_v8 = vpop.eup %1614  ;;  %1616 = vrsqrt.f32 %v972_v4  ;;  %vm1016_vm14 = vweird.f32 %v972_v4 }
 0x256   :  { %v1025_v10 = vmul.f32 %v1613_v57, %v1024_v6  ;;  %v1031_v39 = vmul.f32 %v1615_v8, %v974_v60  ;;  %vm1037_vm10 = vweird.f32 %v1615_v8 }
 0x257   :  { %vm1038_vm12 = vmor %vm1036_vm11, %vm1037_vm10 }
 0x258   :  { %v1029_v12 = vsel %vm1028_vm9, %v1613_v57, %v1025_v10  ;;  %v1032_v14 = vmul.f32 %v1615_v8, %v1031_v39  ;;  %v921_v25 = vpop.xlane.xlu1 %920 }
 0x259   :  { %v1193_v16 = vmul.f32 %v1029_v12, %v2103_v48  ;;  %v955_v17 = vmul.f32 %v921_v25, %v2075_v27 }
 0x25a   :  { %v1033_v21 = vmul.f32 0.5, %v1032_v14  ;;  %v923_v22 = vpop.xlane.xlu2 %922 }
 0x25b   :  { %v1617_v44 = vpop.eup %1616  ;;  %v1216_v28 = vmul.f32 %v2210_v18, %v1193_v16  ;;  %v975_v29 = vadd.f32 1e-05, %v955_v17  ;;  %v956_v31 = vmul.f32 %v923_v22, %v2075_v27 }
 0x25c   :  { %v1034_v34 = vsub.f32 1.5, %v1033_v21  ;;  %v1011_v35 = vmul.f32 %v1617_v44, %v972_v4  ;;  %vm1017_vm13 = vweird.f32 %v1617_v44 }
 0x25d   :  { %v1239_v37 = vadd.f32 %v2215_v23, %v1216_v28  ;;  %1618 = vrsqrt.f32 %v975_v29  ;;  %v976_v40 = vadd.f32 1e-05, %v956_v31  ;;  %vm1018_vm15 = vmor %vm1016_vm14, %vm1017_vm13  ;;  %vm1046_vm1 = vweird.f32 %v975_v29 }
 0x25e   :  { %v1035_v42 = vmul.f32 %v1615_v8, %v1034_v34  ;;  %v1012_v48 = vmul.f32 %v1617_v44, %v1011_v35 }
 0x25f   :  { %1259 = vst [vmem:[%s2435_s11 + $0x18] sm:$0xff] %v1239_v37  ;;  %v1279_v43 = vadd.f32 %v1239_v37, %v1856_v30  ;;  %1620 = vrsqrt.f32 %v976_v40  ;;  %vm1056_vm4 = vweird.f32 %v976_v40 }
 0x260   :  { %v1039_v45 = vsel %vm1038_vm12, %v1615_v8, %v1035_v42  ;;  %v1013_v32 = vmul.f32 0.5, %v1012_v48 }
 0x261   :  { %1299 = vst [vmem:[#allocation2 + $0x18] sm:$0xff] %v1279_v43  ;;  %v1194_v46 = vmul.f32 %v1039_v45, %v2114_v55  ;;  %v1648_v55 = vld [vmem:[%s2426_s2 + $0x20] sm:$0xff] }
 0x262   :  { %v1014_v49 = vsub.f32 1.5, %v1013_v32  ;;  %v925_v47 = vpop.xlane.xlu0 %924 }
 0x263   :  { %v1619_v50 = vpop.eup %1618  ;;  %v1217_v51 = vmul.f32 %v2210_v18, %v1194_v46  ;;  %v957_v52 = vmul.f32 %v925_v47, %v2075_v27 }
 0x264   :  { %v1015_v53 = vmul.f32 %v1617_v44, %v1014_v49  ;;  %v1041_v26 = vmul.f32 %v1619_v50, %v975_v29  ;;  %vm1047_vm0 = vweird.f32 %v1619_v50 }
 0x265   :  { %v1621_v57 = vpop.eup %1620  ;;  %v1240_v30 = vadd.f32 %v2215_v23, %v1217_v51  ;;  %v977_v24 = vadd.f32 1e-05, %v957_v52  ;;  %vm1048_vm3 = vmor %vm1046_vm1, %vm1047_vm0  ;;  %v1651_v51 = vld [vmem:[%s2426_s2 + $0x30] sm:$0xff] }
 0x266   :  { %v1019_v60 = vsel %vm1018_vm15, %v1617_v44, %v1015_v53  ;;  %v1042_v62 = vmul.f32 %v1619_v50, %v1041_v26  ;;  %v1051_v41 = vmul.f32 %v1621_v57, %v976_v40  ;;  %vm1057_vm2 = vweird.f32 %v1621_v57 }
 0x267   :  { %1260 = vst [vmem:[%s2435_s11 + $0x20] sm:$0xff] %v1240_v30  ;;  %v1280_v38 = vadd.f32 %v1648_v55, %v1240_v30  ;;  %v1192_v56 = vmul.f32 %v1019_v60, %v2123_v59  ;;  %1622 = vrsqrt.f32 %v977_v24  ;;  %v1649_v59 = vld [vmem:[%s2426_s2 + $0x10] sm:$0xff]  ;;  %vm1058_vm5 = vmor %vm1056_vm4, %vm1057_vm2  ;;  %vm1066_vm7 = vweird.f32 %v977_v24 }
 0x268   :  { %v1043_v33 = vmul.f32 0.5, %v1042_v62  ;;  %v1052_v0 = vmul.f32 %v1621_v57, %v1051_v41 }
 0x269   :  { %1300 = vst [vmem:[#allocation2 + $0x20] sm:$0xff] %v1280_v38  ;;  %v1215_v58 = vmul.f32 %v2210_v18, %v1192_v56 }
 0x26a   :  { %v1044_v4 = vsub.f32 1.5, %v1043_v33  ;;  %v1053_v6 = vmul.f32 0.5, %v1052_v0  ;;  %v927_v8 = vpop.xlane.xlu1 %926 }
 0x26b   :  { %v1238_v10 = vadd.f32 %v2215_v23, %v1215_v58  ;;  %v958_v39 = vmul.f32 %v927_v8, %v2075_v27 }
 0x26c   :  { %v1045_v12 = vmul.f32 %v1619_v50, %v1044_v4  ;;  %v1054_v14 = vsub.f32 1.5, %v1053_v6 }
 0x26d   :  { %v1623_v25 = vpop.eup %1622  ;;  %1258 = vst [vmem:[%s2435_s11 + $0x10] sm:$0xff] %v1238_v10  ;;  %v1278_v16 = vadd.f32 %v1649_v59, %v1238_v10  ;;  %v978_v17 = vadd.f32 1e-05, %v958_v39 }
 0x26e   :  { %v1049_v21 = vsel %vm1048_vm3, %v1619_v50, %v1045_v12  ;;  %v1055_v22 = vmul.f32 %v1621_v57, %v1054_v14  ;;  %v1061_v44 = vmul.f32 %v1623_v25, %v977_v24  ;;  %vm1067_vm6 = vweird.f32 %v1623_v25 }
 0x26f   :  { %1298 = vst [vmem:[#allocation2 + $0x10] sm:$0xff] %v1278_v16  ;;  %v1195_v28 = vmul.f32 %v1049_v21, %v2129_v61  ;;  %1624 = vrsqrt.f32 %v978_v17  ;;  %v1650_v61 = vld [vmem:[%s2426_s2 + $0x28] sm:$0xff]  ;;  %vm1068_vm8 = vmor %vm1066_vm7, %vm1067_vm6  ;;  %vm1076_vm10 = vweird.f32 %v978_v17 }
 0x270   :  { %v1059_v29 = vsel %vm1058_vm5, %v1621_v57, %v1055_v22  ;;  %v1062_v31 = vmul.f32 %v1623_v25, %v1061_v44 }
 0x271   :  { %v1218_v34 = vmul.f32 %v2210_v18, %v1195_v28  ;;  %v1196_v35 = vmul.f32 %v1059_v29, %v2133_v2 }
 0x272   :  { %v1063_v37 = vmul.f32 0.5, %v1062_v31  ;;  %v929_v42 = vpop.xlane.xlu2 %928 }
 0x273   :  { %v1241_v48 = vadd.f32 %v2215_v23, %v1218_v34  ;;  %v1219_v43 = vmul.f32 %v2210_v18, %v1196_v35  ;;  %v959_v40 = vmul.f32 %v929_v42, %v2075_v27 }
 0x274   :  { %v1064_v45 = vsub.f32 1.5, %v1063_v37 }
 0x275   :  { %v1625_v32 = vpop.eup %1624  ;;  %1261 = vst [vmem:[%s2435_s11 + $0x28] sm:$0xff] %v1241_v48  ;;  %v1281_v2 = vadd.f32 %v1650_v61, %v1241_v48  ;;  %v1242_v46 = vadd.f32 %v2215_v23, %v1219_v43  ;;  %v979_v49 = vadd.f32 1e-05, %v959_v40 }
 0x276   :  { %v1065_v47 = vmul.f32 %v1623_v25, %v1064_v45  ;;  %v1071_v50 = vmul.f32 %v1625_v32, %v978_v17  ;;  %vm1077_vm9 = vweird.f32 %v1625_v32 }
 0x277   :  { %1301 = vst [vmem:[#allocation2 + $0x28] sm:$0xff] %v1281_v2  ;;  %v1282_v52 = vadd.f32 %v1651_v51, %v1242_v46  ;;  %1626 = vrsqrt.f32 %v979_v49  ;;  %vm1078_vm11 = vmor %vm1076_vm10, %vm1077_vm9  ;;  %vm1086_vm13 = vweird.f32 %v979_v49 }
 0x278   :  { %1262 = vst [vmem:[%s2435_s11 + $0x30] sm:$0xff] %v1242_v46  ;;  %v1069_v53 = vsel %vm1068_vm8, %v1623_v25, %v1065_v47  ;;  %v1072_v26 = vmul.f32 %v1625_v32, %v1071_v50 }
 0x279   :  { %1302 = vst [vmem:[#allocation2 + $0x30] sm:$0xff] %v1282_v52  ;;  %v1197_v57 = vmul.f32 %v1069_v53, %v2141_v63  ;;  %v1652_v63 = vld [vmem:[%s2426_s2 + $0x38] sm:$0xff] }
 0x27a   :  { %v1073_v30 = vmul.f32 0.5, %v1072_v26  ;;  %v931_v24 = vpop.xlane.xlu0 %930 }
 0x27b   :  { %v1220_v60 = vmul.f32 %v2210_v18, %v1197_v57  ;;  %v960_v62 = vmul.f32 %v931_v24, %v2075_v27 }
 0x27c   :  { %v1074_v41 = vsub.f32 1.5, %v1073_v30 }
 0x27d   :  { %v1627_v55 = vpop.eup %1626  ;;  %v1243_v38 = vadd.f32 %v2215_v23, %v1220_v60  ;;  %v980_v56 = vadd.f32 1e-05, %v960_v62 }
 0x27e   :  { %v1075_v33 = vmul.f32 %v1625_v32, %v1074_v41  ;;  %v1081_v0 = vmul.f32 %v1627_v55, %v979_v49  ;;  %vm1087_vm12 = vweird.f32 %v1627_v55 }
 0x27f   :  { %1263 = vst [vmem:[%s2435_s11 + $0x38] sm:$0xff] %v1243_v38  ;;  %v1283_v58 = vadd.f32 %v1652_v63, %v1243_v38  ;;  %1628 = vrsqrt.f32 %v980_v56  ;;  %vm1088_vm14 = vmor %vm1086_vm13, %vm1087_vm12  ;;  %vm1096_vm0 = vweird.f32 %v980_v56 }
 0x280   :  { %v1079_v4 = vsel %vm1078_vm11, %v1625_v32, %v1075_v33  ;;  %v1082_v6 = vmul.f32 %v1627_v55, %v1081_v0 }
 0x281   :  { %1303 = vst [vmem:[#allocation2 + $0x38] sm:$0xff] %v1283_v58  ;;  %v1198_v8 = vmul.f32 %v1079_v4, %v2147_v13  ;;  %v1653_v13 = vld [vmem:[%s2426_s2 + $0x40] sm:$0xff] }
 0x282   :  { %v1083_v10 = vmul.f32 0.5, %v1082_v6  ;;  %v933_v39 = vpop.xlane.xlu1 %932 }
 0x283   :  { %v1221_v12 = vmul.f32 %v2210_v18, %v1198_v8  ;;  %v961_v14 = vmul.f32 %v933_v39, %v2075_v27 }
 0x284   :  { %v1084_v25 = vsub.f32 1.5, %v1083_v10 }
 0x285   :  { %v1629_v59 = vpop.eup %1628  ;;  %v1244_v16 = vadd.f32 %v2215_v23, %v1221_v12  ;;  %v981_v17 = vadd.f32 1e-05, %v961_v14 }
 0x286   :  { %v1085_v21 = vmul.f32 %v1627_v55, %v1084_v25  ;;  %v1091_v22 = vmul.f32 %v1629_v59, %v980_v56  ;;  %vm1097_vm15 = vweird.f32 %v1629_v59 }
 0x287   :  { %1264 = vst [vmem:[%s2435_s11 + $0x40] sm:$0xff] %v1244_v16  ;;  %v1284_v44 = vadd.f32 %v1653_v13, %v1244_v16  ;;  %1630 = vrsqrt.f32 %v981_v17  ;;  %vm1098_vm1 = vmor %vm1096_vm0, %vm1097_vm15  ;;  %vm1106_vm3 = vweird.f32 %v981_v17 }
 0x288   :  { %v1089_v28 = vsel %vm1088_vm14, %v1627_v55, %v1085_v21  ;;  %v1092_v29 = vmul.f32 %v1629_v59, %v1091_v22 }
 0x289   :  { %1304 = vst [vmem:[#allocation2 + $0x40] sm:$0xff] %v1284_v44  ;;  %v1199_v31 = vmul.f32 %v1089_v28, %v2153_v3  ;;  %v1654_v3 = vld [vmem:[%s2426_s2 + $0x48] sm:$0xff] }
 0x28a   :  { %v1093_v34 = vmul.f32 0.5, %v1092_v29  ;;  %v935_v35 = vpop.xlane.xlu2 %934 }
 0x28b   :  { %v1222_v37 = vmul.f32 %v2210_v18, %v1199_v31  ;;  %v962_v42 = vmul.f32 %v935_v35, %v2075_v27 }
 0x28c   :  { %v1094_v48 = vsub.f32 1.5, %v1093_v34 }
 0x28d   :  { %v1631_v43 = vpop.eup %1630  ;;  %v1245_v40 = vadd.f32 %v2215_v23, %v1222_v37  ;;  %v982_v45 = vadd.f32 1e-05, %v962_v42 }
 0x28e   :  { %v1095_v32 = vmul.f32 %v1629_v59, %v1094_v48  ;;  %v1101_v61 = vmul.f32 %v1631_v43, %v981_v17  ;;  %vm1107_vm2 = vweird.f32 %v1631_v43 }
 0x28f   :  { %1265 = vst [vmem:[%s2435_s11 + $0x48] sm:$0xff] %v1245_v40  ;;  %v1285_v2 = vadd.f32 %v1654_v3, %v1245_v40  ;;  %1632 = vrsqrt.f32 %v982_v45  ;;  %vm1108_vm4 = vmor %vm1106_vm3, %vm1107_vm2  ;;  %vm1116_vm6 = vweird.f32 %v982_v45 }
 0x290   :  { %v1099_v46 = vsel %vm1098_vm1, %v1629_v59, %v1095_v32  ;;  %v1102_v49 = vmul.f32 %v1631_v43, %v1101_v61 }
 0x291   :  { %1305 = vst [vmem:[#allocation2 + $0x48] sm:$0xff] %v1285_v2  ;;  %v1200_v47 = vmul.f32 %v1099_v46, %v2159_v5  ;;  %v1655_v5 = vld [vmem:[%s2426_s2 + $0x50] sm:$0xff] }
 0x292   :  { %v1103_v50 = vmul.f32 0.5, %v1102_v49  ;;  %v937_v51 = vpop.xlane.xlu0 %936 }
 0x293   :  { %v1223_v52 = vmul.f32 %v2210_v18, %v1200_v47  ;;  %v963_v53 = vmul.f32 %v937_v51, %v2075_v27 }
 0x294   :  { %v1104_v26 = vsub.f32 1.5, %v1103_v50 }
 0x295   :  { %v1633_v57 = vpop.eup %1632  ;;  %v1246_v30 = vadd.f32 %v2215_v23, %v1223_v52  ;;  %v983_v24 = vadd.f32 1e-05, %v963_v53 }
 0x296   :  { %v1105_v60 = vmul.f32 %v1631_v43, %v1104_v26  ;;  %v1111_v62 = vmul.f32 %v1633_v57, %v982_v45  ;;  %vm1117_vm5 = vweird.f32 %v1633_v57 }
 0x297   :  { %1266 = vst [vmem:[%s2435_s11 + $0x50] sm:$0xff] %v1246_v30  ;;  %v1286_v41 = vadd.f32 %v1655_v5, %v1246_v30  ;;  %1634 = vrsqrt.f32 %v983_v24  ;;  %vm1118_vm7 = vmor %vm1116_vm6, %vm1117_vm5  ;;  %vm1126_vm9 = vweird.f32 %v983_v24 }
 0x298   :  { %v1109_v55 = vsel %vm1108_vm4, %v1631_v43, %v1105_v60  ;;  %v1112_v38 = vmul.f32 %v1633_v57, %v1111_v62 }
 0x299   :  { %1306 = vst [vmem:[#allocation2 + $0x50] sm:$0xff] %v1286_v41  ;;  %v1201_v56 = vmul.f32 %v1109_v55, %v2165_v7  ;;  %v1656_v7 = vld [vmem:[%s2426_s2 + $0x58] sm:$0xff] }
 0x29a   :  { %v1113_v33 = vmul.f32 0.5, %v1112_v38  ;;  %v939_v0 = vpop.xlane.xlu1 %938 }
 0x29b   :  { %v1224_v63 = vmul.f32 %v2210_v18, %v1201_v56  ;;  %v964_v58 = vmul.f32 %v939_v0, %v2075_v27 }
 0x29c   :  { %v1114_v4 = vsub.f32 1.5, %v1113_v33 }
 0x29d   :  { %v1635_v6 = vpop.eup %1634  ;;  %v1247_v8 = vadd.f32 %v2215_v23, %v1224_v63  ;;  %v984_v10 = vadd.f32 1e-05, %v964_v58 }
 0x29e   :  { %v1115_v39 = vmul.f32 %v1633_v57, %v1114_v4  ;;  %v1121_v12 = vmul.f32 %v1635_v6, %v983_v24  ;;  %vm1127_vm8 = vweird.f32 %v1635_v6 }
 0x29f   :  { %1267 = vst [vmem:[%s2435_s11 + $0x58] sm:$0xff] %v1247_v8  ;;  %v1287_v14 = vadd.f32 %v1656_v7, %v1247_v8  ;;  %1636 = vrsqrt.f32 %v984_v10  ;;  %vm1128_vm10 = vmor %vm1126_vm9, %vm1127_vm8  ;;  %vm1136_vm12 = vweird.f32 %v984_v10 }
 0x2a0   :  { %v1119_v25 = vsel %vm1118_vm7, %v1633_v57, %v1115_v39  ;;  %v1122_v59 = vmul.f32 %v1635_v6, %v1121_v12 }
 0x2a1   :  { %1307 = vst [vmem:[#allocation2 + $0x58] sm:$0xff] %v1287_v14  ;;  %v1202_v16 = vmul.f32 %v1119_v25, %v2171_v9  ;;  %v1657_v9 = vld [vmem:[%s2426_s2 + $0x60] sm:$0xff] }
 0x2a2   :  { %v1123_v17 = vmul.f32 0.5, %v1122_v59  ;;  %v941_v21 = vpop.xlane.xlu2 %940 }
 0x2a3   :  { %v1225_v22 = vmul.f32 %v2210_v18, %v1202_v16  ;;  %v965_v13 = vmul.f32 %v941_v21, %v2075_v27 }
 0x2a4   :  { %v1124_v44 = vsub.f32 1.5, %v1123_v17 }
 0x2a5   :  { %v1637_v28 = vpop.eup %1636  ;;  %v1248_v29 = vadd.f32 %v2215_v23, %v1225_v22  ;;  %v985_v31 = vadd.f32 1e-05, %v965_v13 }
 0x2a6   :  { %v1125_v34 = vmul.f32 %v1635_v6, %v1124_v44  ;;  %v1131_v35 = vmul.f32 %v1637_v28, %v984_v10  ;;  %vm1137_vm11 = vweird.f32 %v1637_v28 }
 0x2a7   :  { %1268 = vst [vmem:[%s2435_s11 + $0x60] sm:$0xff] %v1248_v29  ;;  %v1288_v37 = vadd.f32 %v1657_v9, %v1248_v29  ;;  %1638 = vrsqrt.f32 %v985_v31  ;;  %vm1138_vm13 = vmor %vm1136_vm12, %vm1137_vm11  ;;  %vm1146_vm15 = vweird.f32 %v985_v31 }
 0x2a8   :  { %v1129_v42 = vsel %vm1128_vm10, %v1635_v6, %v1125_v34  ;;  %v1132_v48 = vmul.f32 %v1637_v28, %v1131_v35 }
 0x2a9   :  { %1308 = vst [vmem:[#allocation2 + $0x60] sm:$0xff] %v1288_v37  ;;  %v1203_v43 = vmul.f32 %v1129_v42, %v2177_v11  ;;  %v1658_v11 = vld [vmem:[%s2426_s2 + $0x68] sm:$0xff] }
 0x2aa   :  { %v1133_v40 = vmul.f32 0.5, %v1132_v48  ;;  %v943_v45 = vpop.xlane.xlu0 %942 }
 0x2ab   :  { %v1226_v32 = vmul.f32 %v2210_v18, %v1203_v43  ;;  %v966_v61 = vmul.f32 %v943_v45, %v2075_v27 }
 0x2ac   :  { %v1134_v3 = vsub.f32 1.5, %v1133_v40 }
 0x2ad   :  { %v1639_v2 = vpop.eup %1638  ;;  %v1249_v46 = vadd.f32 %v2215_v23, %v1226_v32  ;;  %v986_v49 = vadd.f32 1e-05, %v966_v61 }
 0x2ae   :  { %v1135_v47 = vmul.f32 %v1637_v28, %v1134_v3  ;;  %v1141_v50 = vmul.f32 %v1639_v2, %v985_v31  ;;  %vm1147_vm14 = vweird.f32 %v1639_v2 }
 0x2af   :  { %1269 = vst [vmem:[%s2435_s11 + $0x68] sm:$0xff] %v1249_v46  ;;  %v1289_v51 = vadd.f32 %v1658_v11, %v1249_v46  ;;  %1640 = vrsqrt.f32 %v986_v49  ;;  %vm1148_vm0 = vmor %vm1146_vm15, %vm1147_vm14  ;;  %vm1156_vm2 = vweird.f32 %v986_v49 }
 0x2b0   :  { %v1139_v52 = vsel %vm1138_vm13, %v1637_v28, %v1135_v47  ;;  %v1142_v53 = vmul.f32 %v1639_v2, %v1141_v50  ;;  %v1662_v47 = vld [vmem:[%s2426_s2 + $0x88] sm:$0xff] }
 0x2b1   :  { %1309 = vst [vmem:[#allocation2 + $0x68] sm:$0xff] %v1289_v51  ;;  %v1204_v26 = vmul.f32 %v1139_v52, %v2183_v15  ;;  %v1659_v15 = vld [vmem:[%s2426_s2 + $0x70] sm:$0xff] }
 0x2b2   :  { %v1143_v57 = vmul.f32 0.5, %v1142_v53  ;;  %v945_v30 = vpop.xlane.xlu1 %944 }
 0x2b3   :  { %v1227_v24 = vmul.f32 %v2210_v18, %v1204_v26  ;;  %v967_v60 = vmul.f32 %v945_v30, %v2075_v27 }
 0x2b4   :  { %v1144_v62 = vsub.f32 1.5, %v1143_v57 }
 0x2b5   :  { %v1641_v5 = vpop.eup %1640  ;;  %v1250_v41 = vadd.f32 %v2215_v23, %v1227_v24  ;;  %v987_v55 = vadd.f32 1e-05, %v967_v60  ;;  %v1663_v24 = vld [vmem:[%s2426_s2 + $0x90] sm:$0xff] }
 0x2b6   :  { %v1145_v38 = vmul.f32 %v1639_v2, %v1144_v62  ;;  %v1151_v56 = vmul.f32 %v1641_v5, %v986_v49  ;;  %vm1157_vm1 = vweird.f32 %v1641_v5 }
 0x2b7   :  { %1270 = vst [vmem:[%s2435_s11 + $0x70] sm:$0xff] %v1250_v41  ;;  %v1290_v33 = vadd.f32 %v1659_v15, %v1250_v41  ;;  %1642 = vrsqrt.f32 %v987_v55  ;;  %vm1158_vm3 = vmor %vm1156_vm2, %vm1157_vm1  ;;  %vm1166_vm5 = vweird.f32 %v987_v55 }
 0x2b8   :  { %v1149_v0 = vsel %vm1148_vm0, %v1639_v2, %v1145_v38  ;;  %v1152_v63 = vmul.f32 %v1641_v5, %v1151_v56 }
 0x2b9   :  { %1310 = vst [vmem:[#allocation2 + $0x70] sm:$0xff] %v1290_v33  ;;  %v1205_v58 = vmul.f32 %v1149_v0, %v2189_v19  ;;  %v1660_v19 = vld [vmem:[%s2426_s2 + $0x78] sm:$0xff] }
 0x2ba   :  { %v1153_v4 = vmul.f32 0.5, %v1152_v63  ;;  %v947_v6 = vpop.xlane.xlu2 %946 }
 0x2bb   :  { %v1228_v8 = vmul.f32 %v2210_v18, %v1205_v58  ;;  %v968_v10 = vmul.f32 %v947_v6, %v2075_v27 }
 0x2bc   :  { %v1154_v39 = vsub.f32 1.5, %v1153_v4 }
 0x2bd   :  { %v1643_v12 = vpop.eup %1642  ;;  %v1251_v7 = vadd.f32 %v2215_v23, %v1228_v8  ;;  %v988_v14 = vadd.f32 1e-05, %v968_v10 }
 0x2be   :  { %v1155_v25 = vmul.f32 %v1641_v5, %v1154_v39  ;;  %v1161_v59 = vmul.f32 %v1643_v12, %v987_v55  ;;  %vm1167_vm4 = vweird.f32 %v1643_v12 }
 0x2bf   :  { %1271 = vst [vmem:[%s2435_s11 + $0x78] sm:$0xff] %v1251_v7  ;;  %v1291_v16 = vadd.f32 %v1660_v19, %v1251_v7  ;;  %1644 = vrsqrt.f32 %v988_v14  ;;  %vm1168_vm6 = vmor %vm1166_vm5, %vm1167_vm4  ;;  %vm1176_vm8 = vweird.f32 %v988_v14 }
 0x2c0   :  { %v1159_v17 = vsel %vm1158_vm3, %v1641_v5, %v1155_v25  ;;  %v1162_v21 = vmul.f32 %v1643_v12, %v1161_v59 }
 0x2c1   :  { %1311 = vst [vmem:[#allocation2 + $0x78] sm:$0xff] %v1291_v16  ;;  %v1206_v22 = vmul.f32 %v1159_v17, %v2196_v20  ;;  %v1661_v20 = vld [vmem:[%s2426_s2 + $0x80] sm:$0xff] }
 0x2c2   :  { %v1163_v13 = vmul.f32 0.5, %v1162_v21  ;;  %v949_v44 = vpop.xlane.xlu0 %948 }
 0x2c3   :  { %v1229_v28 = vmul.f32 %v2210_v18, %v1206_v22  ;;  %v969_v29 = vmul.f32 %v949_v44, %v2075_v27 }
 0x2c4   :  { %v1164_v31 = vsub.f32 1.5, %v1163_v13 }
 0x2c5   :  { %v1645_v34 = vpop.eup %1644  ;;  %v1252_v35 = vadd.f32 %v2215_v23, %v1229_v28  ;;  %v989_v9 = vadd.f32 1e-05, %v969_v29 }
 0x2c6   :  { %v1165_v37 = vmul.f32 %v1643_v12, %v1164_v31  ;;  %v1171_v42 = vmul.f32 %v1645_v34, %v988_v14  ;;  %vm1177_vm7 = vweird.f32 %v1645_v34 }
 0x2c7   :  { %1272 = vst [vmem:[%s2435_s11 + $0x80] sm:$0xff] %v1252_v35  ;;  %v1292_v48 = vadd.f32 %v1661_v20, %v1252_v35  ;;  %1646 = vrsqrt.f32 %v989_v9  ;;  %vm1178_vm9 = vmor %vm1176_vm8, %vm1177_vm7  ;;  %vm1186_vm11 = vweird.f32 %v989_v9 }
 0x2c8   :  { %v1169_v27 = vsel %vm1168_vm6, %v1643_v12, %v1165_v37  ;;  %v1172_v43 = vmul.f32 %v1645_v34, %v1171_v42 }
 0x2c9   :  { %1312 = vst [vmem:[#allocation2 + $0x80] sm:$0xff] %v1292_v48  ;;  %v1207_v40 = vmul.f32 %v1169_v27, %v2203_v1 }
 0x2ca   :  { %v1173_v45 = vmul.f32 0.5, %v1172_v43 }
 0x2cb   :  { %v1230_v32 = vmul.f32 %v2210_v18, %v1207_v40 }
 0x2cc   :  { %v1174_v61 = vsub.f32 1.5, %v1173_v45 }
 0x2cd   :  { %v1647_v3 = vpop.eup %1646  ;;  %v1253_v2 = vadd.f32 %v2215_v23, %v1230_v32 }
 0x2ce   :  { %v1175_v46 = vmul.f32 %v1645_v34, %v1174_v61  ;;  %v1181_v49 = vmul.f32 %v1647_v3, %v989_v9  ;;  %vm1187_vm10 = vweird.f32 %v1647_v3 }
 0x2cf   :  { %1273 = vst [vmem:[%s2435_s11 + $0x88] sm:$0xff] %v1253_v2  ;;  %v1293_v1 = vadd.f32 %v1662_v47, %v1253_v2  ;;  %vm1188_vm12 = vmor %vm1186_vm11, %vm1187_vm10 }
 0x2d0   :  { %v1179_v50 = vsel %vm1178_vm9, %v1645_v34, %v1175_v46  ;;  %v1182_v11 = vmul.f32 %v1647_v3, %v1181_v49 }
 0x2d1   :  { %1313 = vst [vmem:[#allocation2 + $0x88] sm:$0xff] %v1293_v1  ;;  %v1208_v51 = vmul.f32 %v1179_v50, %v2221_v36 }
 0x2d2   :  { %v1183_v52 = vmul.f32 0.5, %v1182_v11 }
 0x2d3   :  { %v1231_v53 = vmul.f32 %v2210_v18, %v1208_v51 }
 0x2d4   :  { %v1184_v26 = vsub.f32 1.5, %v1183_v52 }
 0x2d5   :  { %v1254_v57 = vadd.f32 %v2215_v23, %v1231_v53 }
 0x2d6   :  { %v1185_v30 = vmul.f32 %v1647_v3, %v1184_v26 }
 0x2d7   :  { %1274 = vst [vmem:[%s2435_s11 + $0x90] sm:$0xff] %v1254_v57  ;;  %v1294_v60 = vadd.f32 %v1663_v24, %v1254_v57 }
 0x2d8   :  { %v1189_v36 = vsel %vm1188_vm12, %v1647_v3, %v1185_v30 }
 0x2d9   :  { %1314 = vst [vmem:[#allocation2 + $0x90] sm:$0xff] %v1294_v60  ;;  %v1209_v62 = vmul.f32 %v1189_v36, %v2235_v54  ;;  %v1664_v54 = vld [vmem:[%s2426_s2 + $0x98] sm:$0xff] }
 0x2db   :  { %v1232_v5 = vmul.f32 %v2210_v18, %v1209_v62 }
 0x2dd   :  { %v1255_v41 = vadd.f32 %v2215_v23, %v1232_v5 }
 0x2df   :  { %1275 = vst [vmem:[%s2435_s11 + $0x98] sm:$0xff] %v1255_v41  ;;  %v1295_v55 = vadd.f32 %v1664_v54, %v1255_v41 }
 0x2e1   :  { %1315 = vst [vmem:[#allocation2 + $0x98] sm:$0xff] %v1295_v55 }
 0x2e2   :  { %1330 = dma.vmem_to_hbm [thread:$0]  %s1323_s3, 2560, %s1325_s21, [#allocation3], %s1693_s1, %s1693_s1, %s1694_s6  }
 0x2e3   :  { %1689 = dma.done.wait [#allocation3], 2560  }
 0x2e4   :  { %1690 = vsyncadd [#allocation3], 4294964736 }
 0x2e5   :  { %1337 = vsyncpa [#allocation3], 1 }

// kernel: processor_mpnn_forward.3
= control target key start
LH: loop header
LB: loop body
LE: loop exit
PB: predicated region body
PF: predicated region fallthrough
CT: control target
= control target key end

     0   :  { %s2856_s0 = inlined_call_operand.vmem [shape: bf16[200,128], index: 0, kind: input, shape index: {}]   ;;  %s2857_s1 = inlined_call_operand.vmem [shape: bf16[200,128], index: 1, kind: input, shape index: {}]   ;;  %s2858_s2 = inlined_call_operand.vmem [shape: f32[200,128], index: 2, kind: input, shape index: {}]   ;;  %s2859_s3 = inlined_call_operand.vmem [shape: bf16[128,128], index: 3, kind: input, shape index: {}]   ;;  %s2860_s4 = inlined_call_operand.vmem [shape: bf16[128,128], index: 4, kind: input, shape index: {}]   ;;  %s2861_s5 = inlined_call_operand.vmem [shape: bf16[128,128], index: 5, kind: input, shape index: {}]   ;;  %s2862_s6 = inlined_call_operand.vmem [shape: f32[1,128], index: 6, kind: input, shape index: {}]   ;;  %s2863_s7 = inlined_call_operand.vmem [shape: bf16[128,128], index: 7, kind: input, shape index: {}]   ;;  %s2864_s8 = inlined_call_operand.vmem [shape: f32[1,128], index: 8, kind: input, shape index: {}]   ;;  %s2865_s9 = inlined_call_operand.vmem [shape: f32[1,128], index: 9, kind: input, shape index: {}]   ;;  %s2866_s10 = inlined_call_operand.vmem [shape: f32[1,128], index: 10, kind: input, shape index: {}]   ;;  %s2867_s11 = inlined_call_operand.vmem [shape: f32[200,128], index: 11, kind: output, shape index: {0}]   ;;  %s2868_s12 = inlined_call_operand.hbm [shape: f32[200,128], index: 12, kind: output, shape index: {1}]  }
   0x1   :  { %v1850_v0 = vld [vmem:[%s2860_s4 + $0x38] sm:$0xff]  ;;  %v1849_v3 = vld [vmem:[%s2860_s4 + $0x30] sm:$0xff]  ;;  %v1848_v6 = vld [vmem:[%s2860_s4 + $0x28] sm:$0xff] }
   0x2   :  { %v1842_v1 = vld [vmem:[%s2859_s3 + $0x38] sm:$0xff]  ;;  %321 = vmatpush.bf16.msra.mxu0 %v1850_v0  ;;  %v1841_v4 = vld [vmem:[%s2859_s3 + $0x30] sm:$0xff]  ;;  %v1840_v7 = vld [vmem:[%s2859_s3 + $0x28] sm:$0xff] }
   0x3   :  { %v1858_v2 = vld [vmem:[%s2861_s5 + $0x38] sm:$0xff]  ;;  %518 = vmatpush.bf16.msra.mxu1 %v1842_v1  ;;  %v1857_v5 = vld [vmem:[%s2861_s5 + $0x30] sm:$0xff]  ;;  %v1856_v8 = vld [vmem:[%s2861_s5 + $0x28] sm:$0xff] }
   0x4   :  { %639 = vmatpush.bf16.msra.mxu2 %v1858_v2  ;;  %v1847_v9 = vld [vmem:[%s2860_s4 + $0x20] sm:$0xff] }
   0x5   :  { %v1839_v10 = vld [vmem:[%s2859_s3 + $0x20] sm:$0xff] }
   0x6   :  { %322 = vmatpush.bf16.msra.mxu0 %v1849_v3  ;;  %v1855_v11 = vld [vmem:[%s2861_s5 + $0x20] sm:$0xff] }
   0x7   :  { %519 = vmatpush.bf16.msra.mxu1 %v1841_v4 }
   0x8   :  { %640 = vmatpush.bf16.msra.mxu2 %v1857_v5 }
   0xa   :  { %323 = vmatpush.bf16.msra.mxu0 %v1848_v6 }
   0xb   :  { %520 = vmatpush.bf16.msra.mxu1 %v1840_v7 }
   0xc   :  { %641 = vmatpush.bf16.msra.mxu2 %v1856_v8 }
   0xd   :  { %18 = vsyncpa [#allocation3], 0  ;;  %v1846_v12 = vld [vmem:[%s2860_s4 + $0x18] sm:$0xff]  ;;  %v1845_v15 = vld [vmem:[%s2860_s4 + $0x10] sm:$0xff]  ;;  %s1982_s25 = smov 8  }
   0xe   :  { %324 = vmatpush.bf16.msra.mxu0 %v1847_v9  ;;  %v1838_v13 = vld [vmem:[%s2859_s3 + $0x18] sm:$0xff]  ;;  %v1837_v16 = vld [vmem:[%s2859_s3 + $0x10] sm:$0xff]  ;;  %v1844_v18 = vld [vmem:[%s2860_s4 + $0x8] sm:$0xff] }
   0xf   :  { %521 = vmatpush.bf16.msra.mxu1 %v1839_v10  ;;  %v1854_v14 = vld [vmem:[%s2861_s5 + $0x18] sm:$0xff]  ;;  %v1853_v17 = vld [vmem:[%s2861_s5 + $0x10] sm:$0xff]  ;;  %v1836_v19 = vld [vmem:[%s2859_s3 + $0x8] sm:$0xff] }
  0x10   :  { %642 = vmatpush.bf16.msra.mxu2 %v1855_v11  ;;  %v1852_v20 = vld [vmem:[%s2861_s5 + $0x8] sm:$0xff]  ;;  %v1843_v21 = vld [vmem:[%s2860_s4] sm:$0xff]  ;;  %v43_v29 = vld [vmem:[%s2858_s2 + $0x10] sm:$0xff] }
  0x11   :  { %v1835_v22 = vld [vmem:[%s2859_s3] sm:$0xff]  ;;  %v42_v25 = vld [vmem:[%s2858_s2 + $0x8] sm:$0xff]  ;;  %v44_v30 = vld [vmem:[%s2858_s2 + $0x18] sm:$0xff]  ;;  %s1980_s3 = smov [#allocation2]  }
  0x12   :  { %325 = vmatpush.bf16.msra.mxu0 %v1846_v12  ;;  %v1851_v23 = vld [vmem:[%s2861_s5] sm:$0xff]  ;;  %v1824_v31 = vld [vmem:[%s2857_s1 + $0x8] sm:$0xff]  ;;  %v117_v33 = vpack.c.bf16 %v44_v30, %v43_v29  ;;  %v1825_v36 = vld [vmem:[%s2857_s1 + $0x10] sm:$0xff]  ;;  %s1571_s5 = sshll.u32 %s1980_s3, 4  ;;  %s1572_s5 = int_to_ptr.vmem [resolvable:$true] %s1571_s5 }
  0x13   :  { %522 = vmatpush.bf16.msra.mxu1 %v1838_v13  ;;  %v41_v24 = vld [vmem:[%s2858_s2] sm:$0xff]  ;;  %v1812_v32 = vld [vmem:[%s2856_s0 + $0x8] sm:$0xff]  ;;  %v1813_v37 = vld [vmem:[%s2856_s0 + $0x10] sm:$0xff] }
  0x14   :  { %643 = vmatpush.bf16.msra.mxu2 %v1854_v14  ;;  %v1823_v26 = vld [vmem:[%s2857_s1] sm:$0xff]  ;;  %v116_v28 = vpack.c.bf16 %v42_v25, %v41_v24  ;;  %v46_v35 = vld [vmem:[%s2858_s2 + $0x28] sm:$0xff]  ;;  %v47_v39 = vld [vmem:[%s2858_s2 + $0x30] sm:$0xff] }
  0x15   :  { %v1811_v27 = vld [vmem:[%s2856_s0] sm:$0xff]  ;;  %v48_v40 = vld [vmem:[%s2858_s2 + $0x38] sm:$0xff]  ;;  %v50_v45 = vld [vmem:[%s2858_s2 + $0x48] sm:$0xff] }
  0x16   :  { %326 = vmatpush.bf16.msra.mxu0 %v1845_v15  ;;  %v45_v34 = vld [vmem:[%s2858_s2 + $0x20] sm:$0xff]  ;;  %v1826_v41 = vld [vmem:[%s2857_s1 + $0x18] sm:$0xff]  ;;  %v119_v43 = vpack.c.bf16 %v48_v40, %v47_v39  ;;  %v51_v49 = vld [vmem:[%s2858_s2 + $0x50] sm:$0xff] }
  0x17   :  { %523 = vmatpush.bf16.msra.mxu1 %v1837_v16  ;;  %v118_v38 = vpack.c.bf16 %v46_v35, %v45_v34  ;;  %v1814_v42 = vld [vmem:[%s2856_s0 + $0x18] sm:$0xff]  ;;  %v49_v44 = vld [vmem:[%s2858_s2 + $0x40] sm:$0xff]  ;;  %v1828_v51 = vld [vmem:[%s2857_s1 + $0x28] sm:$0xff] }
  0x18   :  { %644 = vmatpush.bf16.msra.mxu2 %v1853_v17  ;;  %v1827_v46 = vld [vmem:[%s2857_s1 + $0x20] sm:$0xff]  ;;  %v120_v48 = vpack.c.bf16 %v50_v45, %v49_v44  ;;  %v52_v50 = vld [vmem:[%s2858_s2 + $0x58] sm:$0xff]  ;;  %v1816_v52 = vld [vmem:[%s2856_s0 + $0x28] sm:$0xff] }
  0x19   :  { %v1815_v47 = vld [vmem:[%s2856_s0 + $0x20] sm:$0xff]  ;;  %v121_v53 = vpack.c.bf16 %v52_v50, %v51_v49  ;;  %v1866_v54 = vld [vmem:[%s2863_s7 + $0x38] sm:$0xff]  ;;  %v1865_v55 = vld [vmem:[%s2863_s7 + $0x30] sm:$0xff] }
  0x1a   :  { %327 = vmatpush.bf16.msra.mxu0 %v1844_v18  ;;  %854 = vmatpush.bf16.msra.mxu3 %v1866_v54  ;;  %v53_v56 = vld [vmem:[%s2858_s2 + $0x60] sm:$0xff]  ;;  %v54_v57 = vld [vmem:[%s2858_s2 + $0x68] sm:$0xff]  ;;  %v1829_v58 = vld [vmem:[%s2857_s1 + $0x30] sm:$0xff] }
  0x1b   :  { %524 = vmatpush.bf16.msra.mxu1 %v1836_v19  ;;  %v1817_v59 = vld [vmem:[%s2856_s0 + $0x30] sm:$0xff]  ;;  %v1864_v60 = vld [vmem:[%s2863_s7 + $0x28] sm:$0xff]  ;;  %v122_v61 = vpack.c.bf16 %v54_v57, %v53_v56  ;;  %v1863_v62 = vld [vmem:[%s2863_s7 + $0x20] sm:$0xff] }
  0x1c   :  { %645 = vmatpush.bf16.msra.mxu2 %v1852_v20  ;;  %v1862_v63 = vld [vmem:[%s2863_s7 + $0x18] sm:$0xff]  ;;  %v1861_v0 = vld [vmem:[%s2863_s7 + $0x10] sm:$0xff]  ;;  %v1860_v5 = vld [vmem:[%s2863_s7 + $0x8] sm:$0xff] }
  0x1d   :  { %v55_v1 = vld [vmem:[%s2858_s2 + $0x70] sm:$0xff]  ;;  %v56_v2 = vld [vmem:[%s2858_s2 + $0x78] sm:$0xff]  ;;  %v1859_v7 = vld [vmem:[%s2863_s7] sm:$0xff] }
  0x1e   :  { %328 = vmatpush.bf16.msra.mxu0 %v1843_v21  ;;  %855 = vmatpush.bf16.msra.mxu3 %v1865_v55  ;;  %v1830_v3 = vld [vmem:[%s2857_s1 + $0x38] sm:$0xff]  ;;  %v123_v6 = vpack.c.bf16 %v56_v2, %v55_v1  ;;  %v57_v8 = vld [vmem:[%s2858_s2 + $0x80] sm:$0xff]  ;;  %v58_v9 = vld [vmem:[%s2858_s2 + $0x88] sm:$0xff] }
  0x1f   :  { %525 = vmatpush.bf16.msra.mxu1 %v1835_v22  ;;  %v1818_v4 = vld [vmem:[%s2856_s0 + $0x38] sm:$0xff]  ;;  %v1831_v10 = vld [vmem:[%s2857_s1 + $0x40] sm:$0xff]  ;;  %v124_v14 = vpack.c.bf16 %v58_v9, %v57_v8  ;;  %v59_v21 = vld [vmem:[%s2858_s2 + $0x90] sm:$0xff] }
  0x20   :  { %646 = vmatpush.bf16.msra.mxu2 %v1851_v23  ;;  %v1819_v11 = vld [vmem:[%s2856_s0 + $0x40] sm:$0xff]  ;;  %v60_v22 = vld [vmem:[%s2858_s2 + $0x98] sm:$0xff]  ;;  %v1832_v25 = vld [vmem:[%s2857_s1 + $0x48] sm:$0xff] }
  0x21   :  { %329 = vmatmul.bf16.vlgmr.msra.gmra.mxu0 %v1823_v26  ;;  %v2255_v20 = vld [vmem:[%s2862_s6] ss:$0 sm:$0xff]  ;;  %v1820_v26 = vld [vmem:[%s2856_s0 + $0x48] sm:$0xff]  ;;  %v1833_v45 = vld [vmem:[%s2857_s1 + $0x50] sm:$0xff] }
  0x22   :  { %526 = vmatmul.bf16.vlgmr.msra.gmra.mxu1 %v1811_v27  ;;  %856 = vmatpush.bf16.msra.mxu3 %v1864_v60  ;;  %v1834_v1 = vld [vmem:[%s2857_s1 + $0x58] sm:$0xff] }
  0x23   :  { %647 = vmatmul.bf16.vlgmr.msra.gmra.mxu2 %v116_v28  ;;  %v1822_v2 = vld [vmem:[%s2856_s0 + $0x58] sm:$0xff] }
  0x26   :  { %857 = vmatpush.bf16.msra.mxu3 %v1863_v62  ;;  %v64_v62 = vld [vmem:[%s2858_s2 + $0xb8] sm:$0xff] }
  0x2a   :  { %858 = vmatpush.bf16.msra.mxu3 %v1862_v63 }
  0x2e   :  { %859 = vmatpush.bf16.msra.mxu3 %v1861_v0 }
  0x31   :  { %334 = vmatmul.bf16.gmra.mxu0 %v1824_v31  ;;  %v125_v31 = vpack.c.bf16 %v60_v22, %v59_v21  ;;  %v65_v22 = vld [vmem:[%s2858_s2 + $0xc0] sm:$0xff] }
  0x32   :  { %531 = vmatmul.bf16.gmra.mxu1 %v1812_v32  ;;  %860 = vmatpush.bf16.msra.mxu3 %v1860_v5 }
  0x33   :  { %652 = vmatmul.bf16.gmra.mxu2 %v117_v33 }
  0x36   :  { %861 = vmatpush.bf16.msra.mxu3 %v1859_v7 }
  0x41   :  { %339 = vmatmul.bf16.gmra.mxu0 %v1825_v36 }
  0x42   :  { %536 = vmatmul.bf16.gmra.mxu1 %v1813_v37 }
  0x43   :  { %657 = vmatmul.bf16.gmra.mxu2 %v118_v38 }
  0x51   :  { %344 = vmatmul.bf16.gmra.mxu0 %v1826_v41  ;;  %v61_v41 = vld [vmem:[%s2858_s2 + $0xa0] sm:$0xff] }
  0x52   :  { %541 = vmatmul.bf16.gmra.mxu1 %v1814_v42  ;;  %v62_v42 = vld [vmem:[%s2858_s2 + $0xa8] sm:$0xff] }
  0x53   :  { %662 = vmatmul.bf16.gmra.mxu2 %v119_v43 }
  0x61   :  { %349 = vmatmul.bf16.gmra.mxu0 %v1827_v46  ;;  %v1821_v46 = vld [vmem:[%s2856_s0 + $0x50] sm:$0xff] }
  0x62   :  { %546 = vmatmul.bf16.gmra.mxu1 %v1815_v47 }
  0x63   :  { %667 = vmatmul.bf16.gmra.mxu2 %v120_v48 }
  0x71   :  { %354 = vmatmul.bf16.gmra.mxu0 %v1828_v51  ;;  %v126_v51 = vpack.c.bf16 %v62_v42, %v61_v41 }
  0x72   :  { %551 = vmatmul.bf16.gmra.mxu1 %v1816_v52 }
  0x73   :  { %672 = vmatmul.bf16.gmra.mxu2 %v121_v53 }
  0x81   :  { %359 = vmatmul.bf16.gmra.mxu0 %v1829_v58 }
  0x82   :  { %556 = vmatmul.bf16.gmra.mxu1 %v1817_v59 }
  0x83   :  { %677 = vmatmul.bf16.gmra.mxu2 %v122_v61  ;;  %v63_v61 = vld [vmem:[%s2858_s2 + $0xb0] sm:$0xff] }
  0x84   :  { %v127_v7 = vpack.c.bf16 %v64_v62, %v63_v61 }
  0x91   :  { %364 = vmatmul.bf16.gmra.mxu0 %v1830_v3 }
  0x92   :  { %561 = vmatmul.bf16.gmra.mxu1 %v1818_v4 }
  0x93   :  { %682 = vmatmul.bf16.gmra.mxu2 %v123_v6 }
  0x9e   :  { %v330_v12 = vpop.f32.mrf.mxu0 }
  0x9f   :  { %v527_v13 = vpop.f32.mrf.mxu1 }
  0xa0   :  { %v528_v16 = vadd.f32 %v527_v13, %v330_v12 }
  0xa1   :  { %369 = vmatmul.bf16.gmra.mxu0 %v1831_v10 }
  0xa2   :  { %566 = vmatmul.bf16.gmra.mxu1 %v1819_v11 }
  0xa3   :  { %687 = vmatmul.bf16.gmra.mxu2 %v124_v14 }
  0xa6   :  { %v648_v15 = vpop.f32.mrf.mxu2  ;;  %v332_v17 = vpop.f32.mrf.mxu0 }
  0xa7   :  { %v529_v18 = vpop.f32.mrf.mxu1  ;;  %v712_v19 = vadd.f32 %v648_v15, %v528_v16  ;;  %v115_v16 = vld [vmem:[%s2857_s1 + $0x60] sm:$0xf] }
  0xa8   :  { %v530_v23 = vadd.f32 %v529_v18, %v332_v17  ;;  %v90_v17 = vld [vmem:[%s2856_s0 + $0x60] sm:$0xf]  ;;  %v246_v18 = vunpack.c.l.b16 %v115_v16  ;;  %s1573_s0 = sshll.u32 %s2868_s12, 4  ;;  %s1574_s0 = int_to_ptr.hbm [resolvable:$true] %s1573_s0 }
  0xa9   :  { %v740_v27 = vadd.f32 %v2255_v20, %v712_v19  ;;  %v443_v19 = vunpack.c.l.b16 %v90_v17 }
  0xab   :  { %v765_v33 = vmax.f32 %v740_v27, 0.0 }
  0xae   :  { %v650_v24 = vpop.f32.mrf.mxu2  ;;  %v335_v29 = vpop.f32.mrf.mxu0 }
  0xaf   :  { %v713_v28 = vadd.f32 %v650_v24, %v530_v23  ;;  %v532_v30 = vpop.f32.mrf.mxu1 }
  0xb0   :  { %v533_v37 = vadd.f32 %v532_v30, %v335_v29 }
  0xb1   :  { %v741_v32 = vadd.f32 %v2255_v20, %v713_v28  ;;  %374 = vmatmul.bf16.gmra.mxu0 %v1832_v25  ;;  %v259_v25 = vpack.c.b16 %v246_v18, %v246_v18 }
  0xb2   :  { %571 = vmatmul.bf16.gmra.mxu1 %v1820_v26  ;;  %v456_v26 = vpack.c.b16 %v443_v19, %v443_v19 }
  0xb3   :  { %692 = vmatmul.bf16.gmra.mxu2 %v125_v31  ;;  %v766_v34 = vmax.f32 %v741_v32, 0.0  ;;  %v128_v31 = vpack.c.bf16 %v65_v22, %v65_v22 }
  0xb5   :  { %v790_v35 = vpack.c.bf16 %v766_v34, %v765_v33 }
  0xb6   :  { %v653_v36 = vpop.f32.mrf.mxu2  ;;  %v337_v38 = vpop.f32.mrf.mxu0 }
  0xb7   :  { %862 = vmatmul.bf16.vlgmr.msra.gmra.mxu3 %v790_v35  ;;  %v534_v39 = vpop.f32.mrf.mxu1  ;;  %v714_v40 = vadd.f32 %v653_v36, %v533_v37 }
  0xb8   :  { %v535_v43 = vadd.f32 %v534_v39, %v337_v38 }
  0xb9   :  { %v742_v47 = vadd.f32 %v2255_v20, %v714_v40 }
  0xbb   :  { %v767_v53 = vmax.f32 %v742_v47, 0.0 }
  0xbe   :  { %v655_v44 = vpop.f32.mrf.mxu2  ;;  %v340_v49 = vpop.f32.mrf.mxu0 }
  0xbf   :  { %v715_v48 = vadd.f32 %v655_v44, %v535_v43  ;;  %v537_v50 = vpop.f32.mrf.mxu1 }
  0xc0   :  { %v538_v57 = vadd.f32 %v537_v50, %v340_v49 }
  0xc1   :  { %v743_v52 = vadd.f32 %v2255_v20, %v715_v48  ;;  %379 = vmatmul.bf16.gmra.mxu0 %v1833_v45 }
  0xc2   :  { %576 = vmatmul.bf16.gmra.mxu1 %v1821_v46 }
  0xc3   :  { %v768_v54 = vmax.f32 %v743_v52, 0.0  ;;  %697 = vmatmul.bf16.gmra.mxu2 %v126_v51 }
  0xc5   :  { %v791_v55 = vpack.c.bf16 %v768_v54, %v767_v53 }
  0xc6   :  { %v658_v56 = vpop.f32.mrf.mxu2  ;;  %v342_v58 = vpop.f32.mrf.mxu0 }
  0xc7   :  { %867 = vmatmul.bf16.gmra.mxu3 %v791_v55  ;;  %v539_v59 = vpop.f32.mrf.mxu1  ;;  %v716_v60 = vadd.f32 %v658_v56, %v538_v57 }
  0xc8   :  { %v540_v63 = vadd.f32 %v539_v59, %v342_v58 }
  0xc9   :  { %v744_v3 = vadd.f32 %v2255_v20, %v716_v60 }
  0xcb   :  { %v769_v9 = vmax.f32 %v744_v3, 0.0 }
  0xce   :  { %v660_v0 = vpop.f32.mrf.mxu2  ;;  %v345_v5 = vpop.f32.mrf.mxu0 }
  0xcf   :  { %v717_v4 = vadd.f32 %v660_v0, %v540_v63  ;;  %v542_v6 = vpop.f32.mrf.mxu1 }
  0xd0   :  { %v543_v13 = vadd.f32 %v542_v6, %v345_v5 }
  0xd1   :  { %v745_v8 = vadd.f32 %v2255_v20, %v717_v4  ;;  %384 = vmatmul.bf16.gmra.mxu0 %v1834_v1 }
  0xd2   :  { %581 = vmatmul.bf16.gmra.mxu1 %v1822_v2 }
  0xd3   :  { %v770_v10 = vmax.f32 %v745_v8, 0.0  ;;  %702 = vmatmul.bf16.gmra.mxu2 %v127_v7 }
  0xd5   :  { %v792_v11 = vpack.c.bf16 %v770_v10, %v769_v9 }
  0xd6   :  { %v663_v12 = vpop.f32.mrf.mxu2  ;;  %v347_v14 = vpop.f32.mrf.mxu0 }
  0xd7   :  { %872 = vmatmul.bf16.gmra.mxu3 %v792_v11  ;;  %v544_v15 = vpop.f32.mrf.mxu1  ;;  %v718_v21 = vadd.f32 %v663_v12, %v543_v13 }
  0xd8   :  { %v545_v23 = vadd.f32 %v544_v15, %v347_v14 }
  0xd9   :  { %v746_v27 = vadd.f32 %v2255_v20, %v718_v21 }
  0xdb   :  { %v771_v33 = vmax.f32 %v746_v27, 0.0 }
  0xde   :  { %v665_v24 = vpop.f32.mrf.mxu2  ;;  %v350_v29 = vpop.f32.mrf.mxu0 }
  0xdf   :  { %v719_v28 = vadd.f32 %v665_v24, %v545_v23  ;;  %v547_v30 = vpop.f32.mrf.mxu1 }
  0xe0   :  { %v548_v37 = vadd.f32 %v547_v30, %v350_v29 }
  0xe1   :  { %v747_v32 = vadd.f32 %v2255_v20, %v719_v28  ;;  %389 = vmatmul.bf16.gmra.mxu0 %v259_v25 }
  0xe2   :  { %586 = vmatmul.bf16.gmra.mxu1 %v456_v26 }
  0xe3   :  { %v772_v34 = vmax.f32 %v747_v32, 0.0  ;;  %707 = vmatmul.bf16.gmra.mxu2 %v128_v31 }
  0xe5   :  { %v793_v35 = vpack.c.bf16 %v772_v34, %v771_v33 }
  0xe6   :  { %v668_v36 = vpop.f32.mrf.mxu2  ;;  %v352_v38 = vpop.f32.mrf.mxu0 }
  0xe7   :  { %877 = vmatmul.bf16.gmra.mxu3 %v793_v35  ;;  %v549_v39 = vpop.f32.mrf.mxu1  ;;  %v720_v40 = vadd.f32 %v668_v36, %v548_v37 }
  0xe8   :  { %v550_v41 = vadd.f32 %v549_v39, %v352_v38 }
  0xe9   :  { %v748_v43 = vadd.f32 %v2255_v20, %v720_v40 }
  0xeb   :  { %v773_v48 = vmax.f32 %v748_v43, 0.0 }
  0xee   :  { %v670_v42 = vpop.f32.mrf.mxu2  ;;  %v355_v45 = vpop.f32.mrf.mxu0 }
  0xef   :  { %v721_v44 = vadd.f32 %v670_v42, %v550_v41  ;;  %v552_v46 = vpop.f32.mrf.mxu1 }
  0xf0   :  { %v553_v52 = vadd.f32 %v552_v46, %v355_v45 }
  0xf1   :  { %v749_v47 = vadd.f32 %v2255_v20, %v721_v44 }
  0xf3   :  { %v774_v49 = vmax.f32 %v749_v47, 0.0 }
  0xf5   :  { %v794_v50 = vpack.c.bf16 %v774_v49, %v773_v48 }
  0xf6   :  { %v673_v51 = vpop.f32.mrf.mxu2  ;;  %v357_v53 = vpop.f32.mrf.mxu0 }
  0xf7   :  { %882 = vmatmul.bf16.gmra.mxu3 %v794_v50  ;;  %v554_v54 = vpop.f32.mrf.mxu1  ;;  %v722_v55 = vadd.f32 %v673_v51, %v553_v52  ;;  %v2323_v52 = vld [vmem:[%s2864_s8] ss:$0 sm:$0xff] }
  0xf8   :  { %v555_v56 = vadd.f32 %v554_v54, %v357_v53 }
  0xf9   :  { %v750_v58 = vadd.f32 %v2255_v20, %v722_v55 }
  0xfb   :  { %v775_v63 = vmax.f32 %v750_v58, 0.0 }
  0xfe   :  { %v675_v57 = vpop.f32.mrf.mxu2  ;;  %v360_v60 = vpop.f32.mrf.mxu0 }
  0xff   :  { %v723_v59 = vadd.f32 %v675_v57, %v555_v56  ;;  %v557_v61 = vpop.f32.mrf.mxu1 }
 0x100   :  { %v558_v3 = vadd.f32 %v557_v61, %v360_v60 }
 0x101   :  { %v751_v62 = vadd.f32 %v2255_v20, %v723_v59 }
 0x103   :  { %v776_v0 = vmax.f32 %v751_v62, 0.0 }
 0x105   :  { %v795_v1 = vpack.c.bf16 %v776_v0, %v775_v63 }
 0x106   :  { %v678_v2 = vpop.f32.mrf.mxu2  ;;  %v362_v4 = vpop.f32.mrf.mxu0 }
 0x107   :  { %887 = vmatmul.bf16.gmra.mxu3 %v795_v1  ;;  %v559_v5 = vpop.f32.mrf.mxu1  ;;  %v724_v6 = vadd.f32 %v678_v2, %v558_v3 }
 0x108   :  { %v560_v7 = vadd.f32 %v559_v5, %v362_v4 }
 0x109   :  { %v752_v9 = vadd.f32 %v2255_v20, %v724_v6 }
 0x10b   :  { %v777_v14 = vmax.f32 %v752_v9, 0.0 }
 0x10e   :  { %v680_v8 = vpop.f32.mrf.mxu2  ;;  %v365_v11 = vpop.f32.mrf.mxu0 }
 0x10f   :  { %v725_v10 = vadd.f32 %v680_v8, %v560_v7  ;;  %v562_v12 = vpop.f32.mrf.mxu1 }
 0x110   :  { %v563_v18 = vadd.f32 %v562_v12, %v365_v11 }
 0x111   :  { %v753_v13 = vadd.f32 %v2255_v20, %v725_v10 }
 0x113   :  { %v778_v15 = vmax.f32 %v753_v13, 0.0 }
 0x115   :  { %v796_v16 = vpack.c.bf16 %v778_v15, %v777_v14 }
 0x116   :  { %v683_v17 = vpop.f32.mrf.mxu2  ;;  %v367_v19 = vpop.f32.mrf.mxu0 }
 0x117   :  { %892 = vmatmul.bf16.gmra.mxu3 %v796_v16  ;;  %v564_v21 = vpop.f32.mrf.mxu1  ;;  %v726_v22 = vadd.f32 %v683_v17, %v563_v18 }
 0x118   :  { %v565_v23 = vadd.f32 %v564_v21, %v367_v19 }
 0x119   :  { %v754_v25 = vadd.f32 %v2255_v20, %v726_v22 }
 0x11b   :  { %v779_v30 = vmax.f32 %v754_v25, 0.0 }
 0x11e   :  { %v685_v24 = vpop.f32.mrf.mxu2  ;;  %v370_v27 = vpop.f32.mrf.mxu0 }
 0x11f   :  { %v727_v26 = vadd.f32 %v685_v24, %v565_v23  ;;  %v567_v28 = vpop.f32.mrf.mxu1 }
 0x120   :  { %v568_v34 = vadd.f32 %v567_v28, %v370_v27 }
 0x121   :  { %v755_v29 = vadd.f32 %v2255_v20, %v727_v26 }
 0x123   :  { %v780_v31 = vmax.f32 %v755_v29, 0.0 }
 0x125   :  { %v797_v32 = vpack.c.bf16 %v780_v31, %v779_v30 }
 0x126   :  { %v688_v33 = vpop.f32.mrf.mxu2  ;;  %v372_v35 = vpop.f32.mrf.mxu0 }
 0x127   :  { %897 = vmatmul.bf16.gmra.mxu3 %v797_v32  ;;  %v569_v36 = vpop.f32.mrf.mxu1  ;;  %v728_v37 = vadd.f32 %v688_v33, %v568_v34 }
 0x128   :  { %v570_v38 = vadd.f32 %v569_v36, %v372_v35 }
 0x129   :  { %v756_v40 = vadd.f32 %v2255_v20, %v728_v37 }
 0x12b   :  { %v781_v45 = vmax.f32 %v756_v40, 0.0 }
 0x12e   :  { %v690_v39 = vpop.f32.mrf.mxu2  ;;  %v375_v42 = vpop.f32.mrf.mxu0 }
 0x12f   :  { %v729_v41 = vadd.f32 %v690_v39, %v570_v38  ;;  %v572_v43 = vpop.f32.mrf.mxu1 }
 0x130   :  { %v573_v49 = vadd.f32 %v572_v43, %v375_v42 }
 0x131   :  { %v757_v44 = vadd.f32 %v2255_v20, %v729_v41 }
 0x133   :  { %v782_v46 = vmax.f32 %v757_v44, 0.0 }
 0x135   :  { %v798_v47 = vpack.c.bf16 %v782_v46, %v781_v45 }
 0x136   :  { %v693_v48 = vpop.f32.mrf.mxu2  ;;  %v377_v50 = vpop.f32.mrf.mxu0 }
 0x137   :  { %902 = vmatmul.bf16.gmra.mxu3 %v798_v47  ;;  %v574_v51 = vpop.f32.mrf.mxu1  ;;  %v730_v54 = vadd.f32 %v693_v48, %v573_v49 }
 0x138   :  { %v575_v56 = vadd.f32 %v574_v51, %v377_v50 }
 0x139   :  { %v758_v58 = vadd.f32 %v2255_v20, %v730_v54 }
 0x13a   :  { %v863_v53 = vpop.f32.mrf.mxu3 }
 0x13b   :  { %v2326_v55 = vadd.f32 %v2323_v52, %v863_v53  ;;  %v783_v0 = vmax.f32 %v758_v58, 0.0 }
 0x13d   :  { %927 = vadd.xlane.f32.xlu0 %v2326_v55 }
 0x13e   :  { %v695_v57 = vpop.f32.mrf.mxu2  ;;  %v380_v60 = vpop.f32.mrf.mxu0 }
 0x13f   :  { %v731_v59 = vadd.f32 %v695_v57, %v575_v56  ;;  %v577_v61 = vpop.f32.mrf.mxu1 }
 0x140   :  { %v578_v5 = vadd.f32 %v577_v61, %v380_v60 }
 0x141   :  { %v759_v62 = vadd.f32 %v2255_v20, %v731_v59 }
 0x142   :  { %v865_v63 = vpop.f32.mrf.mxu3 }
 0x143   :  { %v784_v1 = vmax.f32 %v759_v62, 0.0  ;;  %v2332_v2 = vadd.f32 %v2323_v52, %v865_v63 }
 0x145   :  { %929 = vadd.xlane.f32.xlu0 %v2332_v2  ;;  %v799_v3 = vpack.c.bf16 %v784_v1, %v783_v0  ;;  %v1979_v1 = vmov 128.0  }
 0x146   :  { %v698_v4 = vpop.f32.mrf.mxu2  ;;  %v382_v6 = vpop.f32.mrf.mxu0  ;;  %1875 = vrcp.f32 %v1979_v1 }
 0x147   :  { %907 = vmatmul.bf16.gmra.mxu3 %v799_v3  ;;  %v579_v7 = vpop.f32.mrf.mxu1  ;;  %v732_v9 = vadd.f32 %v698_v4, %v578_v5 }
 0x148   :  { %v580_v11 = vadd.f32 %v579_v7, %v382_v6 }
 0x149   :  { %v760_v13 = vadd.f32 %v2255_v20, %v732_v9 }
 0x14a   :  { %v868_v8 = vpop.f32.mrf.mxu3 }
 0x14b   :  { %v2336_v10 = vadd.f32 %v2323_v52, %v868_v8  ;;  %v785_v19 = vmax.f32 %v760_v13, 0.0 }
 0x14c   :  { %v1876_v4 = vpop.eup %1875 }
 0x14d   :  { %931 = vadd.xlane.f32.xlu1 %v2336_v10  ;;  %v978_v6 = vmul.f32 128.0, %v1876_v4  ;;  %vm982_vm0 = vweird.f32 %v1876_v4 }
 0x14e   :  { %v700_v12 = vpop.f32.mrf.mxu2  ;;  %v385_v15 = vpop.f32.mrf.mxu0 }
 0x14f   :  { %v733_v14 = vadd.f32 %v700_v12, %v580_v11  ;;  %v582_v16 = vpop.f32.mrf.mxu1  ;;  %v979_v8 = vsub.f32 1.0, %v978_v6 }
 0x150   :  { %v583_v25 = vadd.f32 %v582_v16, %v385_v15 }
 0x151   :  { %v761_v17 = vadd.f32 %v2255_v20, %v733_v14  ;;  %v980_v11 = vmul.f32 %v1876_v4, %v979_v8 }
 0x152   :  { %v870_v18 = vpop.f32.mrf.mxu3 }
 0x153   :  { %v786_v21 = vmax.f32 %v761_v17, 0.0  ;;  %v2342_v22 = vadd.f32 %v2323_v52, %v870_v18  ;;  %v981_v13 = vadd.f32 %v1876_v4, %v980_v11 }
 0x155   :  { %933 = vadd.xlane.f32.xlu1 %v2342_v22  ;;  %v800_v23 = vpack.c.bf16 %v786_v21, %v785_v19  ;;  %v2392_v15 = vsel %vm982_vm0, %v1876_v4, %v981_v13 }
 0x156   :  { %v703_v24 = vpop.f32.mrf.mxu2  ;;  %v387_v26 = vpop.f32.mrf.mxu0 }
 0x157   :  { %912 = vmatmul.bf16.gmra.mxu3 %v800_v23  ;;  %v584_v27 = vpop.f32.mrf.mxu1  ;;  %v734_v29 = vadd.f32 %v703_v24, %v583_v25 }
 0x158   :  { %v585_v31 = vadd.f32 %v584_v27, %v387_v26 }
 0x159   :  { %v762_v33 = vadd.f32 %v2255_v20, %v734_v29 }
 0x15a   :  { %v873_v28 = vpop.f32.mrf.mxu3 }
 0x15b   :  { %v2346_v30 = vadd.f32 %v2323_v52, %v873_v28  ;;  %v787_v39 = vmax.f32 %v762_v33, 0.0 }
 0x15d   :  { %935 = vadd.xlane.f32.xlu2 %v2346_v30 }
 0x15e   :  { %v705_v32 = vpop.f32.mrf.mxu2  ;;  %v390_v35 = vpop.f32.mrf.mxu0 }
 0x15f   :  { %v735_v34 = vadd.f32 %v705_v32, %v585_v31  ;;  %v587_v36 = vpop.f32.mrf.mxu1 }
 0x160   :  { %v588_v42 = vadd.f32 %v587_v36, %v390_v35 }
 0x161   :  { %v763_v37 = vadd.f32 %v2255_v20, %v735_v34 }
 0x162   :  { %v875_v38 = vpop.f32.mrf.mxu3 }
 0x163   :  { %v788_v40 = vmax.f32 %v763_v37, 0.0  ;;  %v2352_v41 = vadd.f32 %v2323_v52, %v875_v38 }
 0x165   :  { %937 = vadd.xlane.f32.xlu2 %v2352_v41  ;;  %v801_v43 = vpack.c.bf16 %v788_v40, %v787_v39 }
 0x166   :  { %v708_v44 = vpop.f32.mrf.mxu2  ;;  %v392_v46 = vpop.f32.mrf.mxu0 }
 0x167   :  { %v736_v45 = vadd.f32 %v708_v44, %v588_v42  ;;  %917 = vmatmul.bf16.gmra.mxu3 %v801_v43  ;;  %v589_v47 = vpop.f32.mrf.mxu1 }
 0x169   :  { %v764_v49 = vadd.f32 %v2255_v20, %v736_v45 }
 0x16a   :  { %v878_v48 = vpop.f32.mrf.mxu3 }
 0x16b   :  { %v2357_v50 = vadd.f32 %v2323_v52, %v878_v48  ;;  %v789_v53 = vmax.f32 %v764_v49, 0.0 }
 0x16d   :  { %939 = vadd.xlane.f32.xlu0 %v2357_v50  ;;  %v802_v56 = vpack.c.bf16 %v789_v53, %v789_v53 }
 0x16e   :  { %v710_v51 = vpop.f32.mrf.mxu2 }
 0x172   :  { %v880_v54 = vpop.f32.mrf.mxu3 }
 0x173   :  { %v2361_v57 = vadd.f32 %v2323_v52, %v880_v54 }
 0x175   :  { %941 = vadd.xlane.f32.xlu1 %v2361_v57 }
 0x177   :  { %922 = vmatmul.bf16.gmra.mxu3 %v802_v56 }
 0x17a   :  { %v883_v58 = vpop.f32.mrf.mxu3 }
 0x17b   :  { %v2365_v59 = vadd.f32 %v2323_v52, %v883_v58 }
 0x17d   :  { %943 = vadd.xlane.f32.xlu2 %v2365_v59 }
 0x182   :  { %v885_v20 = vpop.f32.mrf.mxu3 }
 0x183   :  { %v2369_v60 = vadd.f32 %v2323_v52, %v885_v20 }
 0x185   :  { %945 = vadd.xlane.f32.xlu0 %v2369_v60 }
 0x18a   :  { %v888_v61 = vpop.f32.mrf.mxu3 }
 0x18b   :  { %v2373_v62 = vadd.f32 %v2323_v52, %v888_v61 }
 0x18d   :  { %947 = vadd.xlane.f32.xlu1 %v2373_v62 }
 0x192   :  { %v890_v63 = vpop.f32.mrf.mxu3 }
 0x193   :  { %v2377_v0 = vadd.f32 %v2323_v52, %v890_v63 }
 0x195   :  { %949 = vadd.xlane.f32.xlu2 %v2377_v0 }
 0x19a   :  { %v893_v3 = vpop.f32.mrf.mxu3 }
 0x19b   :  { %v2381_v5 = vadd.f32 %v2323_v52, %v893_v3 }
 0x19d   :  { %951 = vadd.xlane.f32.xlu0 %v2381_v5 }
 0x1a2   :  { %v895_v7 = vpop.f32.mrf.mxu3 }
 0x1a3   :  { %v2385_v9 = vadd.f32 %v2323_v52, %v895_v7 }
 0x1a5   :  { %953 = vadd.xlane.f32.xlu1 %v2385_v9 }
 0x1aa   :  { %v898_v12 = vpop.f32.mrf.mxu3 }
 0x1ab   :  { %v2389_v14 = vadd.f32 %v2323_v52, %v898_v12 }
 0x1ad   :  { %955 = vadd.xlane.f32.xlu2 %v2389_v14 }
 0x1b0   :  { %v928_v16 = vpop.xlane.xlu0 %927 }
 0x1b1   :  { %v984_v17 = vmul.f32 %v2392_v15, %v928_v16 }
 0x1b2   :  { %v900_v18 = vpop.f32.mrf.mxu3 }
 0x1b3   :  { %v2396_v19 = vsub.f32 %v2326_v55, %v984_v17  ;;  %v2399_v21 = vadd.f32 %v2323_v52, %v900_v18 }
 0x1b5   :  { %957 = vadd.xlane.f32.xlu0 %v2399_v21  ;;  %v1034_v23 = vmul.f32 %v2396_v19, %v2396_v19 }
 0x1b7   :  { %1059 = vadd.xlane.f32.xlu1 %v1034_v23 }
 0x1b8   :  { %v930_v24 = vpop.xlane.xlu0 %929 }
 0x1b9   :  { %v985_v25 = vmul.f32 %v2392_v15, %v930_v24 }
 0x1ba   :  { %v903_v26 = vpop.f32.mrf.mxu3 }
 0x1bb   :  { %v2406_v27 = vsub.f32 %v2332_v2, %v985_v25  ;;  %v2409_v28 = vadd.f32 %v2323_v52, %v903_v26 }
 0x1bd   :  { %v1035_v55 = vmul.f32 %v2406_v27, %v2406_v27 }
 0x1bf   :  { %1061 = vadd.xlane.f32.xlu2 %v1035_v55  ;;  %959 = vadd.xlane.f32.xlu1 %v2409_v28 }
 0x1c0   :  { %v932_v29 = vpop.xlane.xlu1 %931 }
 0x1c1   :  { %v986_v31 = vmul.f32 %v2392_v15, %v932_v29 }
 0x1c2   :  { %v905_v32 = vpop.f32.mrf.mxu3 }
 0x1c3   :  { %v2416_v33 = vsub.f32 %v2336_v10, %v986_v31  ;;  %v2419_v34 = vadd.f32 %v2323_v52, %v905_v32 }
 0x1c5   :  { %v1036_v2 = vmul.f32 %v2416_v33, %v2416_v33 }
 0x1c7   :  { %1063 = vadd.xlane.f32.xlu0 %v1036_v2  ;;  %961 = vadd.xlane.f32.xlu2 %v2419_v34 }
 0x1c8   :  { %v934_v35 = vpop.xlane.xlu1 %933 }
 0x1c9   :  { %v987_v36 = vmul.f32 %v2392_v15, %v934_v35 }
 0x1ca   :  { %v908_v37 = vpop.f32.mrf.mxu3 }
 0x1cb   :  { %v2426_v38 = vsub.f32 %v2342_v22, %v987_v36  ;;  %v2429_v39 = vadd.f32 %v2323_v52, %v908_v37 }
 0x1cd   :  { %v1037_v10 = vmul.f32 %v2426_v38, %v2426_v38 }
 0x1cf   :  { %1065 = vadd.xlane.f32.xlu1 %v1037_v10  ;;  %963 = vadd.xlane.f32.xlu0 %v2429_v39 }
 0x1d0   :  { %v936_v40 = vpop.xlane.xlu2 %935 }
 0x1d1   :  { %v988_v42 = vmul.f32 %v2392_v15, %v936_v40 }
 0x1d2   :  { %v910_v43 = vpop.f32.mrf.mxu3 }
 0x1d3   :  { %v2436_v44 = vsub.f32 %v2346_v30, %v988_v42  ;;  %v2439_v45 = vadd.f32 %v2323_v52, %v910_v43 }
 0x1d5   :  { %v1038_v22 = vmul.f32 %v2436_v44, %v2436_v44 }
 0x1d7   :  { %1067 = vadd.xlane.f32.xlu2 %v1038_v22  ;;  %965 = vadd.xlane.f32.xlu1 %v2439_v45 }
 0x1d8   :  { %v938_v46 = vpop.xlane.xlu2 %937 }
 0x1d9   :  { %v989_v47 = vmul.f32 %v2392_v15, %v938_v46 }
 0x1da   :  { %v913_v48 = vpop.f32.mrf.mxu3 }
 0x1db   :  { %v2446_v49 = vsub.f32 %v2352_v41, %v989_v47  ;;  %v2449_v51 = vadd.f32 %v2323_v52, %v913_v48 }
 0x1dd   :  { %v1039_v30 = vmul.f32 %v2446_v49, %v2446_v49 }
 0x1df   :  { %1069 = vadd.xlane.f32.xlu0 %v1039_v30  ;;  %967 = vadd.xlane.f32.xlu2 %v2449_v51 }
 0x1e0   :  { %v940_v53 = vpop.xlane.xlu0 %939 }
 0x1e1   :  { %v990_v54 = vmul.f32 %v2392_v15, %v940_v53 }
 0x1e2   :  { %v915_v56 = vpop.f32.mrf.mxu3 }
 0x1e3   :  { %v2456_v58 = vsub.f32 %v2357_v50, %v990_v54  ;;  %v2459_v20 = vadd.f32 %v2323_v52, %v915_v56 }
 0x1e5   :  { %v1040_v41 = vmul.f32 %v2456_v58, %v2456_v58 }
 0x1e7   :  { %1071 = vadd.xlane.f32.xlu1 %v1040_v41  ;;  %969 = vadd.xlane.f32.xlu0 %v2459_v20 }
 0x1e8   :  { %v942_v1 = vpop.xlane.xlu1 %941 }
 0x1e9   :  { %v991_v50 = vmul.f32 %v2392_v15, %v942_v1 }
 0x1ea   :  { %v918_v61 = vpop.f32.mrf.mxu3 }
 0x1eb   :  { %v2465_v63 = vadd.f32 %v2323_v52, %v918_v61  ;;  %v2474_v6 = vsub.f32 %v2361_v57, %v991_v50 }
 0x1ed   :  { %v1041_v18 = vmul.f32 %v2474_v6, %v2474_v6 }
 0x1ef   :  { %971 = vadd.xlane.f32.xlu1 %v2465_v63 }
 0x1f0   :  { %v944_v7 = vpop.xlane.xlu2 %943 }
 0x1f1   :  { %v992_v13 = vmul.f32 %v2392_v15, %v944_v7 }
 0x1f2   :  { %v920_v3 = vpop.f32.mrf.mxu3 }
 0x1f3   :  { %v2470_v4 = vadd.f32 %v2323_v52, %v920_v3  ;;  %v2490_v23 = vsub.f32 %v2365_v59, %v992_v13 }
 0x1f5   :  { %973 = vadd.xlane.f32.xlu2 %v2470_v4  ;;  %v1042_v26 = vmul.f32 %v2490_v23, %v2490_v23 }
 0x1f8   :  { %v946_v8 = vpop.xlane.xlu0 %945 }
 0x1f9   :  { %v993_v11 = vmul.f32 %v2392_v15, %v946_v8 }
 0x1fa   :  { %v923_v12 = vpop.f32.mrf.mxu3 }
 0x1fb   :  { %v2479_v16 = vsub.f32 %v2369_v60, %v993_v11  ;;  %v2482_v17 = vadd.f32 %v2323_v52, %v923_v12 }
 0x1fd   :  { %1073 = vadd.xlane.f32.xlu2 %v1041_v18  ;;  %975 = vadd.xlane.f32.xlu0 %v2482_v17  ;;  %v1043_v57 = vmul.f32 %v2479_v16, %v2479_v16 }
 0x1ff   :  { %1077 = vadd.xlane.f32.xlu1 %v1043_v57 }
 0x200   :  { %v948_v24 = vpop.xlane.xlu1 %947 }
 0x201   :  { %v994_v60 = vmul.f32 %v2392_v15, %v948_v24 }
 0x202   :  { %v925_v25 = vpop.f32.mrf.mxu3 }
 0x203   :  { %v2494_v52 = vsub.f32 %v2373_v62, %v994_v60 }
 0x205   :  { %1075 = vadd.xlane.f32.xlu0 %v1042_v26  ;;  %v1044_v55 = vmul.f32 %v2494_v52, %v2494_v52 }
 0x207   :  { %1079 = vadd.xlane.f32.xlu2 %v1044_v55 }
 0x208   :  { %v950_v29 = vpop.xlane.xlu2 %949 }
 0x209   :  { %v995_v59 = vmul.f32 %v2392_v15, %v950_v29  ;;  %v2546_v29 = vld [vmem:[%s2865_s9] ss:$0 sm:$0xff] }
 0x20b   :  { %v2502_v31 = vsub.f32 %v2377_v0, %v995_v59 }
 0x20d   :  { %v1045_v32 = vmul.f32 %v2502_v31, %v2502_v31 }
 0x20f   :  { %1081 = vadd.xlane.f32.xlu0 %v1045_v32 }
 0x210   :  { %v952_v62 = vpop.xlane.xlu0 %951 }
 0x211   :  { %v996_v2 = vmul.f32 %v2392_v15, %v952_v62 }
 0x213   :  { %v2508_v35 = vsub.f32 %v2381_v5, %v996_v2 }
 0x215   :  { %v1046_v36 = vmul.f32 %v2508_v35, %v2508_v35 }
 0x217   :  { %1083 = vadd.xlane.f32.xlu1 %v1046_v36 }
 0x218   :  { %v954_v37 = vpop.xlane.xlu1 %953 }
 0x219   :  { %v997_v10 = vmul.f32 %v2392_v15, %v954_v37 }
 0x21b   :  { %v2514_v0 = vsub.f32 %v2385_v9, %v997_v10 }
 0x21d   :  { %v1047_v40 = vmul.f32 %v2514_v0, %v2514_v0 }
 0x21f   :  { %1085 = vadd.xlane.f32.xlu2 %v1047_v40 }
 0x220   :  { %v956_v42 = vpop.xlane.xlu2 %955 }
 0x221   :  { %v998_v43 = vmul.f32 %v2392_v15, %v956_v42 }
 0x223   :  { %v2520_v5 = vsub.f32 %v2389_v14, %v998_v43 }
 0x225   :  { %v1048_v22 = vmul.f32 %v2520_v5, %v2520_v5 }
 0x227   :  { %1087 = vadd.xlane.f32.xlu0 %v1048_v22 }
 0x228   :  { %v958_v46 = vpop.xlane.xlu0 %957 }
 0x229   :  { %v999_v47 = vmul.f32 %v2392_v15, %v958_v46 }
 0x22a   :  { %v1060_v48 = vpop.xlane.xlu1 %1059 }
 0x22b   :  { %v2526_v9 = vsub.f32 %v2399_v21, %v999_v47  ;;  %v1109_v30 = vmul.f32 %v1060_v48, %v2392_v15 }
 0x22d   :  { %v1134_v53 = vadd.f32 1e-05, %v1109_v30  ;;  %v1049_v54 = vmul.f32 %v2526_v9, %v2526_v9 }
 0x22f   :  { %1877 = vrsqrt.f32 %v1134_v53  ;;  %1089 = vadd.xlane.f32.xlu1 %v1049_v54  ;;  %vm1165_vm2 = vweird.f32 %v1134_v53  ;;  %v1927_v54 = vld [vmem:[%s2858_s2] sm:$0xff] }
 0x232   :  { %v1062_v14 = vpop.xlane.xlu2 %1061  ;;  %v960_v56 = vpop.xlane.xlu1 %959 }
 0x233   :  { %v1110_v41 = vmul.f32 %v1062_v14, %v2392_v15  ;;  %v1000_v61 = vmul.f32 %v2392_v15, %v960_v56 }
 0x235   :  { %v1878_v1 = vpop.eup %1877  ;;  %v1135_v3 = vadd.f32 1e-05, %v1110_v41  ;;  %v2534_v50 = vsub.f32 %v2409_v28, %v1000_v61 }
 0x236   :  { %v1160_v21 = vmul.f32 %v1878_v1, %v1134_v53  ;;  %vm1166_vm1 = vweird.f32 %v1878_v1 }
 0x237   :  { %1879 = vrsqrt.f32 %v1135_v3  ;;  %v1050_v7 = vmul.f32 %v2534_v50, %v2534_v50  ;;  %vm1167_vm3 = vmor %vm1165_vm2, %vm1166_vm1  ;;  %vm1175_vm5 = vweird.f32 %v1135_v3 }
 0x238   :  { %v1161_v8 = vmul.f32 %v1878_v1, %v1160_v21 }
 0x239   :  { %1091 = vadd.xlane.f32.xlu2 %v1050_v7 }
 0x23a   :  { %v1162_v11 = vmul.f32 0.5, %v1161_v8  ;;  %v1064_v12 = vpop.xlane.xlu0 %1063  ;;  %v962_v13 = vpop.xlane.xlu2 %961 }
 0x23b   :  { %v1111_v18 = vmul.f32 %v1064_v12, %v2392_v15  ;;  %v1001_v57 = vmul.f32 %v2392_v15, %v962_v13 }
 0x23c   :  { %v1163_v24 = vsub.f32 1.5, %v1162_v11 }
 0x23d   :  { %v1880_v60 = vpop.eup %1879  ;;  %v1136_v25 = vadd.f32 1e-05, %v1111_v18  ;;  %v2541_v28 = vsub.f32 %v2419_v34, %v1001_v57  ;;  %v2553_v34 = vld [vmem:[%s2866_s10] ss:$0 sm:$0xff] }
 0x23e   :  { %v1164_v26 = vmul.f32 %v1878_v1, %v1163_v24  ;;  %v1170_v55 = vmul.f32 %v1880_v60, %v1135_v3  ;;  %vm1176_vm4 = vweird.f32 %v1880_v60 }
 0x23f   :  { %1881 = vrsqrt.f32 %v1136_v25  ;;  %v1051_v59 = vmul.f32 %v2541_v28, %v2541_v28  ;;  %vm1177_vm6 = vmor %vm1175_vm5, %vm1176_vm4  ;;  %vm1185_vm8 = vweird.f32 %v1136_v25 }
 0x240   :  { %v1168_v32 = vsel %vm1167_vm3, %v1878_v1, %v1164_v26  ;;  %v1171_v62 = vmul.f32 %v1880_v60, %v1170_v55  ;;  %v1928_v26 = vld [vmem:[%s2858_s2 + $0x8] sm:$0xff] }
 0x241   :  { %v1409_v2 = vmul.f32 %v1168_v32, %v2396_v19  ;;  %1093 = vadd.xlane.f32.xlu0 %v1051_v59 }
 0x242   :  { %v1172_v36 = vmul.f32 0.5, %v1171_v62  ;;  %v1066_v37 = vpop.xlane.xlu1 %1065  ;;  %v964_v10 = vpop.xlane.xlu0 %963 }
 0x243   :  { %v1437_v40 = vmul.f32 %v2546_v29, %v1409_v2  ;;  %v1112_v42 = vmul.f32 %v1066_v37, %v2392_v15  ;;  %v1002_v43 = vmul.f32 %v2392_v15, %v964_v10 }
 0x244   :  { %v1173_v22 = vsub.f32 1.5, %v1172_v36 }
 0x245   :  { %v1882_v46 = vpop.eup %1881  ;;  %v1465_v47 = vadd.f32 %v2553_v34, %v1437_v40  ;;  %v1137_v48 = vadd.f32 1e-05, %v1112_v42  ;;  %v2561_v30 = vsub.f32 %v2429_v39, %v1002_v43 }
 0x246   :  { %v1174_v19 = vmul.f32 %v1880_v60, %v1173_v22  ;;  %v1180_v53 = vmul.f32 %v1882_v46, %v1136_v25  ;;  %vm1186_vm7 = vweird.f32 %v1882_v46 }
 0x247   :  { %1490 = vst [vmem:[%s2867_s11] sm:$0xff] %v1465_v47  ;;  %v1515_v14 = vadd.f32 %v1927_v54, %v1465_v47  ;;  %1883 = vrsqrt.f32 %v1137_v48  ;;  %v1052_v56 = vmul.f32 %v2561_v30, %v2561_v30  ;;  %vm1187_vm9 = vmor %vm1185_vm8, %vm1186_vm7  ;;  %vm1195_vm11 = vweird.f32 %v1137_v48 }
 0x248   :  { %v1178_v41 = vsel %vm1177_vm6, %v1880_v60, %v1174_v19  ;;  %v1181_v39 = vmul.f32 %v1882_v46, %v1180_v53  ;;  %v1929_v53 = vld [vmem:[%s2858_s2 + $0x10] sm:$0xff] }
 0x249   :  { %1540 = vst [vmem:[#allocation2] sm:$0xff] %v1515_v14  ;;  %v1410_v61 = vmul.f32 %v1178_v41, %v2406_v27  ;;  %1095 = vadd.xlane.f32.xlu1 %v1052_v56 }
 0x24a   :  { %v1182_v1 = vmul.f32 0.5, %v1181_v39  ;;  %v1068_v3 = vpop.xlane.xlu2 %1067  ;;  %v966_v21 = vpop.xlane.xlu1 %965 }
 0x24b   :  { %v1438_v7 = vmul.f32 %v2546_v29, %v1410_v61  ;;  %v1113_v8 = vmul.f32 %v1068_v3, %v2392_v15  ;;  %v1003_v11 = vmul.f32 %v2392_v15, %v966_v21 }
 0x24c   :  { %v1183_v12 = vsub.f32 1.5, %v1182_v1 }
 0x24d   :  { %v1884_v13 = vpop.eup %1883  ;;  %v1466_v18 = vadd.f32 %v2553_v34, %v1438_v7  ;;  %v1138_v57 = vadd.f32 1e-05, %v1113_v8  ;;  %v2577_v24 = vsub.f32 %v2439_v45, %v1003_v11 }
 0x24e   :  { %v1184_v27 = vmul.f32 %v1882_v46, %v1183_v12  ;;  %v1190_v60 = vmul.f32 %v1884_v13, %v1137_v48  ;;  %vm1196_vm10 = vweird.f32 %v1884_v13 }
 0x24f   :  { %1491 = vst [vmem:[%s2867_s11 + $0x8] sm:$0xff] %v1466_v18  ;;  %v1516_v55 = vadd.f32 %v1928_v26, %v1466_v18  ;;  %1885 = vrsqrt.f32 %v1138_v57  ;;  %v1053_v59 = vmul.f32 %v2577_v24, %v2577_v24  ;;  %vm1197_vm12 = vmor %vm1195_vm11, %vm1196_vm10  ;;  %vm1205_vm14 = vweird.f32 %v1138_v57 }
 0x250   :  { %v1188_v32 = vsel %vm1187_vm9, %v1882_v46, %v1184_v27  ;;  %v1191_v45 = vmul.f32 %v1884_v13, %v1190_v60  ;;  %v1930_v27 = vld [vmem:[%s2858_s2 + $0x18] sm:$0xff] }
 0x251   :  { %1541 = vst [vmem:[#allocation2 + $0x8] sm:$0xff] %v1516_v55  ;;  %v1411_v25 = vmul.f32 %v1188_v32, %v2416_v33  ;;  %1097 = vadd.xlane.f32.xlu2 %v1053_v59 }
 0x252   :  { %v1192_v62 = vmul.f32 0.5, %v1191_v45  ;;  %v1070_v2 = vpop.xlane.xlu0 %1069  ;;  %v968_v36 = vpop.xlane.xlu2 %967 }
 0x253   :  { %v1439_v37 = vmul.f32 %v2546_v29, %v1411_v25  ;;  %v1114_v10 = vmul.f32 %v1070_v2, %v2392_v15  ;;  %v1004_v40 = vmul.f32 %v2392_v15, %v968_v36 }
 0x254   :  { %v1193_v42 = vsub.f32 1.5, %v1192_v62 }
 0x255   :  { %v1886_v43 = vpop.eup %1885  ;;  %v1467_v22 = vadd.f32 %v2553_v34, %v1439_v37  ;;  %v1139_v46 = vadd.f32 1e-05, %v1114_v10  ;;  %v2593_v47 = vsub.f32 %v2449_v51, %v1004_v40 }
 0x256   :  { %v1194_v33 = vmul.f32 %v1884_v13, %v1193_v42  ;;  %v1200_v19 = vmul.f32 %v1886_v43, %v1138_v57  ;;  %vm1206_vm13 = vweird.f32 %v1886_v43 }
 0x257   :  { %1492 = vst [vmem:[%s2867_s11 + $0x10] sm:$0xff] %v1467_v22  ;;  %v1517_v54 = vadd.f32 %v1929_v53, %v1467_v22  ;;  %1887 = vrsqrt.f32 %v1139_v46  ;;  %v1054_v14 = vmul.f32 %v2593_v47, %v2593_v47  ;;  %vm1207_vm15 = vmor %vm1205_vm14, %vm1206_vm13  ;;  %vm1215_vm1 = vweird.f32 %v1139_v46 }
 0x258   :  { %v1198_v56 = vsel %vm1197_vm12, %v1884_v13, %v1194_v33  ;;  %v1201_v51 = vmul.f32 %v1886_v43, %v1200_v19 }
 0x259   :  { %1542 = vst [vmem:[#allocation2 + $0x10] sm:$0xff] %v1517_v54  ;;  %v1412_v48 = vmul.f32 %v1198_v56, %v2426_v38  ;;  %1099 = vadd.xlane.f32.xlu0 %v1054_v14 }
 0x25a   :  { %v1202_v41 = vmul.f32 0.5, %v1201_v51  ;;  %v1072_v39 = vpop.xlane.xlu1 %1071  ;;  %v970_v61 = vpop.xlane.xlu0 %969 }
 0x25b   :  { %v1440_v1 = vmul.f32 %v2546_v29, %v1412_v48  ;;  %v1115_v3 = vmul.f32 %v1072_v39, %v2392_v15  ;;  %v1005_v21 = vmul.f32 %v2392_v15, %v970_v61 }
 0x25c   :  { %v1203_v7 = vsub.f32 1.5, %v1202_v41 }
 0x25d   :  { %v1888_v8 = vpop.eup %1887  ;;  %v1468_v11 = vadd.f32 %v2553_v34, %v1440_v1  ;;  %v1140_v12 = vadd.f32 1e-05, %v1115_v3  ;;  %v2609_v13 = vsub.f32 %v2459_v20, %v1005_v21 }
 0x25e   :  { %v1204_v38 = vmul.f32 %v1886_v43, %v1203_v7  ;;  %v1210_v18 = vmul.f32 %v1888_v8, %v1139_v46  ;;  %vm1216_vm0 = vweird.f32 %v1888_v8 }
 0x25f   :  { %1493 = vst [vmem:[%s2867_s11 + $0x18] sm:$0xff] %v1468_v11  ;;  %v1518_v60 = vadd.f32 %v1930_v27, %v1468_v11  ;;  %1889 = vrsqrt.f32 %v1140_v12  ;;  %v1055_v26 = vmul.f32 %v2609_v13, %v2609_v13  ;;  %vm1217_vm2 = vmor %vm1215_vm1, %vm1216_vm0  ;;  %vm1225_vm4 = vweird.f32 %v1140_v12 }
 0x260   :  { %v1208_v55 = vsel %vm1207_vm15, %v1886_v43, %v1204_v38  ;;  %v1211_v20 = vmul.f32 %v1888_v8, %v1210_v18 }
 0x261   :  { %1543 = vst [vmem:[#allocation2 + $0x18] sm:$0xff] %v1518_v60  ;;  %v1413_v57 = vmul.f32 %v1208_v55, %v2436_v44  ;;  %1101 = vadd.xlane.f32.xlu1 %v1055_v26  ;;  %v1931_v44 = vld [vmem:[%s2858_s2 + $0x20] sm:$0xff]  ;;  %v1933_v26 = vld [vmem:[%s2858_s2 + $0x30] sm:$0xff] }
 0x262   :  { %v1212_v59 = vmul.f32 0.5, %v1211_v20  ;;  %v972_v32 = vpop.xlane.xlu1 %971 }
 0x263   :  { %v1441_v45 = vmul.f32 %v2546_v29, %v1413_v57  ;;  %v1006_v25 = vmul.f32 %v2392_v15, %v972_v32 }
 0x264   :  { %v1213_v62 = vsub.f32 1.5, %v1212_v59 }
 0x265   :  { %v1890_v2 = vpop.eup %1889  ;;  %v1469_v36 = vadd.f32 %v2553_v34, %v1441_v45  ;;  %v2624_v37 = vsub.f32 %v2465_v63, %v1006_v25 }
 0x266   :  { %v1214_v10 = vmul.f32 %v1888_v8, %v1213_v62  ;;  %v1220_v40 = vmul.f32 %v1890_v2, %v1140_v12  ;;  %vm1226_vm3 = vweird.f32 %v1890_v2 }
 0x267   :  { %1494 = vst [vmem:[%s2867_s11 + $0x20] sm:$0xff] %v1469_v36  ;;  %v1519_v42 = vadd.f32 %v1931_v44, %v1469_v36  ;;  %v1056_v43 = vmul.f32 %v2624_v37, %v2624_v37  ;;  %vm1227_vm5 = vmor %vm1225_vm4, %vm1226_vm3 }
 0x268   :  { %v1218_v22 = vsel %vm1217_vm2, %v1888_v8, %v1214_v10  ;;  %v1221_v33 = vmul.f32 %v1890_v2, %v1220_v40  ;;  %v974_v63 = vpop.xlane.xlu2 %973 }
 0x269   :  { %1544 = vst [vmem:[#allocation2 + $0x20] sm:$0xff] %v1519_v42  ;;  %v1414_v46 = vmul.f32 %v1218_v22, %v2446_v49  ;;  %v1007_v19 = vmul.f32 %v2392_v15, %v974_v63  ;;  %1103 = vadd.xlane.f32.xlu2 %v1056_v43  ;;  %v1932_v49 = vld [vmem:[%s2858_s2 + $0x28] sm:$0xff] }
 0x26a   :  { %v1222_v53 = vmul.f32 0.5, %v1221_v33 }
 0x26b   :  { %v1442_v54 = vmul.f32 %v2546_v29, %v1414_v46  ;;  %v2638_v14 = vsub.f32 %v2470_v4, %v1007_v19 }
 0x26c   :  { %v1223_v56 = vsub.f32 1.5, %v1222_v53 }
 0x26d   :  { %v1470_v51 = vadd.f32 %v2553_v34, %v1442_v54  ;;  %v1057_v48 = vmul.f32 %v2638_v14, %v2638_v14 }
 0x26e   :  { %v1224_v41 = vmul.f32 %v1890_v2, %v1223_v56 }
 0x26f   :  { %1495 = vst [vmem:[%s2867_s11 + $0x28] sm:$0xff] %v1470_v51  ;;  %v1520_v39 = vadd.f32 %v1932_v49, %v1470_v51  ;;  %1105 = vadd.xlane.f32.xlu0 %v1057_v48 }
 0x270   :  { %v1228_v4 = vsel %vm1227_vm5, %v1890_v2, %v1224_v41  ;;  %v1074_v61 = vpop.xlane.xlu2 %1073  ;;  %v976_v1 = vpop.xlane.xlu0 %975 }
 0x271   :  { %1545 = vst [vmem:[#allocation2 + $0x28] sm:$0xff] %v1520_v39  ;;  %v1415_v3 = vmul.f32 %v1228_v4, %v2456_v58  ;;  %v1116_v21 = vmul.f32 %v1074_v61, %v2392_v15  ;;  %v1008_v7 = vmul.f32 %v2392_v15, %v976_v1 }
 0x272   :  { %v1078_v8 = vpop.xlane.xlu1 %1077 }
 0x273   :  { %v1443_v11 = vmul.f32 %v2546_v29, %v1415_v3  ;;  %v1141_v12 = vadd.f32 1e-05, %v1116_v21  ;;  %v2654_v38 = vsub.f32 %v2482_v17, %v1008_v7  ;;  %v1118_v18 = vmul.f32 %v1078_v8, %v2392_v15 }
 0x275   :  { %v1471_v27 = vadd.f32 %v2553_v34, %v1443_v11  ;;  %1891 = vrsqrt.f32 %v1141_v12  ;;  %v1143_v60 = vadd.f32 1e-05, %v1118_v18  ;;  %v1058_v58 = vmul.f32 %v2654_v38, %v2654_v38 }
 0x276   :  { %vm1235_vm7 = vweird.f32 %v1141_v12 }
 0x277   :  { %1496 = vst [vmem:[%s2867_s11 + $0x30] sm:$0xff] %v1471_v27  ;;  %v1521_v55 = vadd.f32 %v1933_v26, %v1471_v27  ;;  %1893 = vrsqrt.f32 %v1143_v60  ;;  %1107 = vadd.xlane.f32.xlu1 %v1058_v58  ;;  %vm1255_vm10 = vweird.f32 %v1143_v60 }
 0x278   :  { %v1076_v17 = vpop.xlane.xlu0 %1075 }
 0x279   :  { %1546 = vst [vmem:[#allocation2 + $0x30] sm:$0xff] %v1521_v55  ;;  %v1117_v20 = vmul.f32 %v1076_v17, %v2392_v15 }
 0x27a   :  { %v1080_v57 = vpop.xlane.xlu2 %1079 }
 0x27b   :  { %v1892_v59 = vpop.eup %1891  ;;  %v1142_v32 = vadd.f32 1e-05, %v1117_v20  ;;  %v1119_v45 = vmul.f32 %v1080_v57, %v2392_v15 }
 0x27c   :  { %v1230_v25 = vmul.f32 %v1892_v59, %v1141_v12  ;;  %vm1236_vm6 = vweird.f32 %v1892_v59 }
 0x27d   :  { %v1894_v62 = vpop.eup %1893  ;;  %1895 = vrsqrt.f32 %v1142_v32  ;;  %v1144_v2 = vadd.f32 1e-05, %v1119_v45  ;;  %vm1237_vm9 = vmor %vm1235_vm7, %vm1236_vm6  ;;  %vm1245_vm13 = vweird.f32 %v1142_v32 }
 0x27e   :  { %v1231_v36 = vmul.f32 %v1892_v59, %v1230_v25  ;;  %v1250_v10 = vmul.f32 %v1894_v62, %v1143_v60  ;;  %vm1256_vm8 = vweird.f32 %v1894_v62 }
 0x27f   :  { %1897 = vrsqrt.f32 %v1144_v2  ;;  %vm1257_vm11 = vmor %vm1255_vm10, %vm1256_vm8  ;;  %vm1265_vm0 = vweird.f32 %v1144_v2 }
 0x280   :  { %v1232_v40 = vmul.f32 0.5, %v1231_v36  ;;  %v1251_v44 = vmul.f32 %v1894_v62, %v1250_v10 }
 0x282   :  { %v1233_v42 = vsub.f32 1.5, %v1232_v40  ;;  %v1252_v43 = vmul.f32 0.5, %v1251_v44  ;;  %v1082_v22 = vpop.xlane.xlu0 %1081 }
 0x283   :  { %v1896_v33 = vpop.eup %1895  ;;  %v1120_v63 = vmul.f32 %v1082_v22, %v2392_v15 }
 0x284   :  { %v1234_v46 = vmul.f32 %v1892_v59, %v1233_v42  ;;  %v1253_v19 = vsub.f32 1.5, %v1252_v43  ;;  %v1240_v53 = vmul.f32 %v1896_v33, %v1142_v32  ;;  %vm1246_vm12 = vweird.f32 %v1896_v33  ;;  %v1935_v32 = vld [vmem:[%s2858_s2 + $0x48] sm:$0xff] }
 0x285   :  { %v1898_v54 = vpop.eup %1897  ;;  %v2669_v56 = vadd.f32 1e-05, %v1120_v63  ;;  %vm1247_vm15 = vmor %vm1245_vm13, %vm1246_vm12  ;;  %v1936_v63 = vld [vmem:[%s2858_s2 + $0x40] sm:$0xff] }
 0x286   :  { %v1238_v51 = vsel %vm1237_vm9, %v1892_v59, %v1234_v46  ;;  %v1254_v48 = vmul.f32 %v1894_v62, %v1253_v19  ;;  %v1241_v41 = vmul.f32 %v1896_v33, %v1240_v53  ;;  %v1260_v49 = vmul.f32 %v1898_v54, %v1144_v2 }
 0x287   :  { %v1416_v39 = vmul.f32 %v1238_v51, %v2474_v6  ;;  %1899 = vrsqrt.f32 %v2669_v56  ;;  %vm1266_vm14 = vweird.f32 %v1898_v54  ;;  %vm1275_vm3 = vweird.f32 %v2669_v56  ;;  %v1937_v51 = vld [vmem:[%s2858_s2 + $0x50] sm:$0xff] }
 0x288   :  { %v1258_v4 = vsel %vm1257_vm11, %v1894_v62, %v1254_v48  ;;  %v1242_v61 = vmul.f32 0.5, %v1241_v41  ;;  %v1261_v1 = vmul.f32 %v1898_v54, %v1260_v49  ;;  %vm1267_vm1 = vmor %vm1265_vm0, %vm1266_vm14 }
 0x289   :  { %v1444_v3 = vmul.f32 %v2546_v29, %v1416_v39  ;;  %v1418_v21 = vmul.f32 %v1258_v4, %v2479_v16  ;;  %v1934_v16 = vld [vmem:[%s2858_s2 + $0x38] sm:$0xff] }
 0x28a   :  { %v1243_v7 = vsub.f32 1.5, %v1242_v61  ;;  %v1262_v8 = vmul.f32 0.5, %v1261_v1  ;;  %v1084_v11 = vpop.xlane.xlu1 %1083 }
 0x28b   :  { %v1472_v12 = vadd.f32 %v2553_v34, %v1444_v3  ;;  %v1446_v18 = vmul.f32 %v2546_v29, %v1418_v21  ;;  %v1121_v6 = vmul.f32 %v1084_v11, %v2392_v15 }
 0x28c   :  { %v1244_v27 = vmul.f32 %v1896_v33, %v1243_v7  ;;  %v1263_v60 = vsub.f32 1.5, %v1262_v8 }
 0x28d   :  { %v1900_v58 = vpop.eup %1899  ;;  %1497 = vst [vmem:[%s2867_s11 + $0x38] sm:$0xff] %v1472_v12  ;;  %v1522_v26 = vadd.f32 %v1934_v16, %v1472_v12  ;;  %v1474_v55 = vadd.f32 %v2553_v34, %v1446_v18  ;;  %v1146_v17 = vadd.f32 1e-05, %v1121_v6 }
 0x28e   :  { %v1248_v20 = vsel %vm1247_vm15, %v1896_v33, %v1244_v27  ;;  %v1264_v57 = vmul.f32 %v1898_v54, %v1263_v60  ;;  %v1270_v59 = vmul.f32 %v1900_v58, %v2669_v56  ;;  %vm1276_vm2 = vweird.f32 %v1900_v58 }
 0x28f   :  { %1547 = vst [vmem:[#allocation2 + $0x38] sm:$0xff] %v1522_v26  ;;  %v1524_v45 = vadd.f32 %v1935_v32, %v1474_v55  ;;  %v1417_v25 = vmul.f32 %v1248_v20, %v2490_v23  ;;  %1901 = vrsqrt.f32 %v1146_v17  ;;  %vm1277_vm4 = vmor %vm1275_vm3, %vm1276_vm2  ;;  %vm1285_vm6 = vweird.f32 %v1146_v17 }
 0x290   :  { %1499 = vst [vmem:[%s2867_s11 + $0x48] sm:$0xff] %v1474_v55  ;;  %v1268_v62 = vsel %vm1267_vm1, %v1898_v54, %v1264_v57  ;;  %v1271_v36 = vmul.f32 %v1900_v58, %v1270_v59 }
 0x291   :  { %1549 = vst [vmem:[#allocation2 + $0x48] sm:$0xff] %v1524_v45  ;;  %v1445_v2 = vmul.f32 %v2546_v29, %v1417_v25  ;;  %v1419_v10 = vmul.f32 %v1268_v62, %v2494_v52 }
 0x292   :  { %v1272_v40 = vmul.f32 0.5, %v1271_v36  ;;  %v1086_v44 = vpop.xlane.xlu2 %1085 }
 0x293   :  { %v1473_v42 = vadd.f32 %v2553_v34, %v1445_v2  ;;  %v1447_v23 = vmul.f32 %v2546_v29, %v1419_v10  ;;  %v1122_v43 = vmul.f32 %v1086_v44, %v2392_v15 }
 0x294   :  { %v1273_v22 = vsub.f32 1.5, %v1272_v40 }
 0x295   :  { %v1902_v33 = vpop.eup %1901  ;;  %1498 = vst [vmem:[%s2867_s11 + $0x40] sm:$0xff] %v1473_v42  ;;  %v1523_v52 = vadd.f32 %v1936_v63, %v1473_v42  ;;  %v1475_v46 = vadd.f32 %v2553_v34, %v1447_v23  ;;  %v1147_v19 = vadd.f32 1e-05, %v1122_v43 }
 0x296   :  { %v1274_v53 = vmul.f32 %v1900_v58, %v1273_v22  ;;  %v1280_v54 = vmul.f32 %v1902_v33, %v1146_v17  ;;  %vm1286_vm5 = vweird.f32 %v1902_v33 }
 0x297   :  { %1548 = vst [vmem:[#allocation2 + $0x40] sm:$0xff] %v1523_v52  ;;  %v1525_v48 = vadd.f32 %v1937_v51, %v1475_v46  ;;  %1903 = vrsqrt.f32 %v1147_v19  ;;  %vm1287_vm7 = vmor %vm1285_vm6, %vm1286_vm5  ;;  %vm1295_vm9 = vweird.f32 %v1147_v19 }
 0x298   :  { %1500 = vst [vmem:[%s2867_s11 + $0x50] sm:$0xff] %v1475_v46  ;;  %v1278_v41 = vsel %vm1277_vm4, %v1900_v58, %v1274_v53  ;;  %v1281_v49 = vmul.f32 %v1902_v33, %v1280_v54 }
 0x299   :  { %1550 = vst [vmem:[#allocation2 + $0x50] sm:$0xff] %v1525_v48  ;;  %v1420_v39 = vmul.f32 %v1278_v41, %v2502_v31  ;;  %v1938_v31 = vld [vmem:[%s2858_s2 + $0x58] sm:$0xff] }
 0x29a   :  { %v1282_v4 = vmul.f32 0.5, %v1281_v49  ;;  %v1088_v56 = vpop.xlane.xlu0 %1087 }
 0x29b   :  { %v1448_v61 = vmul.f32 %v2546_v29, %v1420_v39  ;;  %v1123_v1 = vmul.f32 %v1088_v56, %v2392_v15 }
 0x29c   :  { %v1283_v3 = vsub.f32 1.5, %v1282_v4 }
 0x29d   :  { %v1904_v21 = vpop.eup %1903  ;;  %v1476_v7 = vadd.f32 %v2553_v34, %v1448_v61  ;;  %v1148_v8 = vadd.f32 1e-05, %v1123_v1 }
 0x29e   :  { %v1284_v11 = vmul.f32 %v1902_v33, %v1283_v3  ;;  %v1290_v12 = vmul.f32 %v1904_v21, %v1147_v19  ;;  %vm1296_vm8 = vweird.f32 %v1904_v21 }
 0x29f   :  { %1501 = vst [vmem:[%s2867_s11 + $0x58] sm:$0xff] %v1476_v7  ;;  %v1526_v18 = vadd.f32 %v1938_v31, %v1476_v7  ;;  %1905 = vrsqrt.f32 %v1148_v8  ;;  %vm1297_vm10 = vmor %vm1295_vm9, %vm1296_vm8  ;;  %vm1305_vm12 = vweird.f32 %v1148_v8 }
 0x2a0   :  { %v1288_v6 = vsel %vm1287_vm7, %v1902_v33, %v1284_v11  ;;  %v1291_v27 = vmul.f32 %v1904_v21, %v1290_v12 }
 0x2a1   :  { %1551 = vst [vmem:[#allocation2 + $0x58] sm:$0xff] %v1526_v18  ;;  %v1421_v60 = vmul.f32 %v1288_v6, %v2508_v35  ;;  %v1939_v35 = vld [vmem:[%s2858_s2 + $0x60] sm:$0xff] }
 0x2a2   :  { %v1292_v58 = vmul.f32 0.5, %v1291_v27  ;;  %v1090_v16 = vpop.xlane.xlu1 %1089 }
 0x2a3   :  { %v1449_v26 = vmul.f32 %v2546_v29, %v1421_v60  ;;  %v1124_v55 = vmul.f32 %v1090_v16, %v2392_v15 }
 0x2a4   :  { %v1293_v17 = vsub.f32 1.5, %v1292_v58 }
 0x2a5   :  { %v1906_v20 = vpop.eup %1905  ;;  %v1477_v57 = vadd.f32 %v2553_v34, %v1449_v26  ;;  %v1149_v59 = vadd.f32 1e-05, %v1124_v55 }
 0x2a6   :  { %v1294_v32 = vmul.f32 %v1904_v21, %v1293_v17  ;;  %v1300_v45 = vmul.f32 %v1906_v20, %v1148_v8  ;;  %vm1306_vm11 = vweird.f32 %v1906_v20 }
 0x2a7   :  { %1502 = vst [vmem:[%s2867_s11 + $0x60] sm:$0xff] %v1477_v57  ;;  %v1527_v25 = vadd.f32 %v1939_v35, %v1477_v57  ;;  %1907 = vrsqrt.f32 %v1149_v59  ;;  %vm1307_vm13 = vmor %vm1305_vm12, %vm1306_vm11  ;;  %vm1315_vm15 = vweird.f32 %v1149_v59 }
 0x2a8   :  { %v1298_v62 = vsel %vm1297_vm10, %v1904_v21, %v1294_v32  ;;  %v1301_v36 = vmul.f32 %v1906_v20, %v1300_v45 }
 0x2a9   :  { %1552 = vst [vmem:[#allocation2 + $0x60] sm:$0xff] %v1527_v25  ;;  %v1422_v2 = vmul.f32 %v1298_v62, %v2514_v0  ;;  %v1940_v0 = vld [vmem:[%s2858_s2 + $0x68] sm:$0xff] }
 0x2aa   :  { %v1302_v10 = vmul.f32 0.5, %v1301_v36 }
 0x2ab   :  { %v1450_v40 = vmul.f32 %v2546_v29, %v1422_v2 }
 0x2ac   :  { %v1303_v44 = vsub.f32 1.5, %v1302_v10  ;;  %v1092_v42 = vpop.xlane.xlu2 %1091 }
 0x2ad   :  { %v1908_v23 = vpop.eup %1907  ;;  %v1478_v43 = vadd.f32 %v2553_v34, %v1450_v40  ;;  %v1125_v22 = vmul.f32 %v1092_v42, %v2392_v15 }
 0x2ae   :  { %v1304_v33 = vmul.f32 %v1906_v20, %v1303_v44  ;;  %v1310_v63 = vmul.f32 %v1908_v23, %v1149_v59  ;;  %vm1316_vm14 = vweird.f32 %v1908_v23 }
 0x2af   :  { %1503 = vst [vmem:[%s2867_s11 + $0x68] sm:$0xff] %v1478_v43  ;;  %v1528_v52 = vadd.f32 %v1940_v0, %v1478_v43  ;;  %v1150_v46 = vadd.f32 1e-05, %v1125_v22  ;;  %vm1317_vm0 = vmor %vm1315_vm15, %vm1316_vm14 }
 0x2b0   :  { %v1308_v19 = vsel %vm1307_vm13, %v1906_v20, %v1304_v33  ;;  %v1311_v53 = vmul.f32 %v1908_v23, %v1310_v63 }
 0x2b1   :  { %1553 = vst [vmem:[#allocation2 + $0x68] sm:$0xff] %v1528_v52  ;;  %v1423_v54 = vmul.f32 %v1308_v19, %v2520_v5  ;;  %1909 = vrsqrt.f32 %v1150_v46  ;;  %v1941_v5 = vld [vmem:[%s2858_s2 + $0x70] sm:$0xff]  ;;  %vm1325_vm2 = vweird.f32 %v1150_v46 }
 0x2b2   :  { %v1312_v51 = vmul.f32 0.5, %v1311_v53 }
 0x2b3   :  { %v1451_v48 = vmul.f32 %v2546_v29, %v1423_v54 }
 0x2b4   :  { %v1313_v41 = vsub.f32 1.5, %v1312_v51  ;;  %v1094_v49 = vpop.xlane.xlu0 %1093 }
 0x2b5   :  { %v1479_v39 = vadd.f32 %v2553_v34, %v1451_v48  ;;  %v1126_v4 = vmul.f32 %v1094_v49, %v2392_v15 }
 0x2b6   :  { %v1314_v56 = vmul.f32 %v1908_v23, %v1313_v41 }
 0x2b7   :  { %v1910_v61 = vpop.eup %1909  ;;  %1504 = vst [vmem:[%s2867_s11 + $0x70] sm:$0xff] %v1479_v39  ;;  %v1529_v1 = vadd.f32 %v1941_v5, %v1479_v39  ;;  %v1151_v3 = vadd.f32 1e-05, %v1126_v4 }
 0x2b8   :  { %v1318_v21 = vsel %vm1317_vm0, %v1908_v23, %v1314_v56  ;;  %v1320_v7 = vmul.f32 %v1910_v61, %v1150_v46  ;;  %vm1326_vm1 = vweird.f32 %v1910_v61 }
 0x2b9   :  { %1554 = vst [vmem:[#allocation2 + $0x70] sm:$0xff] %v1529_v1  ;;  %v1424_v8 = vmul.f32 %v1318_v21, %v2526_v9  ;;  %1911 = vrsqrt.f32 %v1151_v3  ;;  %v1942_v9 = vld [vmem:[%s2858_s2 + $0x78] sm:$0xff]  ;;  %vm1327_vm3 = vmor %vm1325_vm2, %vm1326_vm1  ;;  %vm1335_vm5 = vweird.f32 %v1151_v3 }
 0x2ba   :  { %v1321_v11 = vmul.f32 %v1910_v61, %v1320_v7 }
 0x2bb   :  { %v1452_v12 = vmul.f32 %v2546_v29, %v1424_v8 }
 0x2bc   :  { %v1322_v31 = vmul.f32 0.5, %v1321_v11  ;;  %v1096_v18 = vpop.xlane.xlu1 %1095 }
 0x2bd   :  { %v1480_v6 = vadd.f32 %v2553_v34, %v1452_v12  ;;  %v1127_v27 = vmul.f32 %v1096_v18, %v2392_v15 }
 0x2be   :  { %v1323_v60 = vsub.f32 1.5, %v1322_v31 }
 0x2bf   :  { %v1912_v58 = vpop.eup %1911  ;;  %1505 = vst [vmem:[%s2867_s11 + $0x78] sm:$0xff] %v1480_v6  ;;  %v1530_v16 = vadd.f32 %v1942_v9, %v1480_v6  ;;  %v1152_v26 = vadd.f32 1e-05, %v1127_v27 }
 0x2c0   :  { %v1324_v55 = vmul.f32 %v1910_v61, %v1323_v60  ;;  %v1330_v17 = vmul.f32 %v1912_v58, %v1151_v3  ;;  %vm1336_vm4 = vweird.f32 %v1912_v58 }
 0x2c1   :  { %1555 = vst [vmem:[#allocation2 + $0x78] sm:$0xff] %v1530_v16  ;;  %1913 = vrsqrt.f32 %v1152_v26  ;;  %vm1337_vm6 = vmor %vm1335_vm5, %vm1336_vm4  ;;  %vm1345_vm8 = vweird.f32 %v1152_v26 }
 0x2c2   :  { %v1328_v20 = vsel %vm1327_vm3, %v1910_v61, %v1324_v55  ;;  %v1331_v57 = vmul.f32 %v1912_v58, %v1330_v17 }
 0x2c3   :  { %v1425_v59 = vmul.f32 %v1328_v20, %v2534_v50  ;;  %v1943_v50 = vld [vmem:[%s2858_s2 + $0x80] sm:$0xff] }
 0x2c4   :  { %v1332_v32 = vmul.f32 0.5, %v1331_v57  ;;  %v1098_v45 = vpop.xlane.xlu2 %1097 }
 0x2c5   :  { %v1453_v35 = vmul.f32 %v2546_v29, %v1425_v59  ;;  %v1128_v25 = vmul.f32 %v1098_v45, %v2392_v15 }
 0x2c6   :  { %v1333_v62 = vsub.f32 1.5, %v1332_v32 }
 0x2c7   :  { %v1914_v36 = vpop.eup %1913  ;;  %v1481_v2 = vadd.f32 %v2553_v34, %v1453_v35  ;;  %v1153_v10 = vadd.f32 1e-05, %v1128_v25 }
 0x2c8   :  { %v1334_v40 = vmul.f32 %v1912_v58, %v1333_v62  ;;  %v1340_v44 = vmul.f32 %v1914_v36, %v1152_v26  ;;  %vm1346_vm7 = vweird.f32 %v1914_v36 }
 0x2c9   :  { %1506 = vst [vmem:[%s2867_s11 + $0x80] sm:$0xff] %v1481_v2  ;;  %v1531_v42 = vadd.f32 %v1943_v50, %v1481_v2  ;;  %1915 = vrsqrt.f32 %v1153_v10  ;;  %vm1347_vm9 = vmor %vm1345_vm8, %vm1346_vm7  ;;  %vm1355_vm11 = vweird.f32 %v1153_v10 }
 0x2ca   :  { %v1338_v23 = vsel %vm1337_vm6, %v1912_v58, %v1334_v40  ;;  %v1341_v43 = vmul.f32 %v1914_v36, %v1340_v44 }
 0x2cb   :  { %1556 = vst [vmem:[#allocation2 + $0x80] sm:$0xff] %v1531_v42  ;;  %v1426_v22 = vmul.f32 %v1338_v23, %v2541_v28  ;;  %v1944_v28 = vld [vmem:[%s2858_s2 + $0x88] sm:$0xff] }
 0x2cc   :  { %v1342_v33 = vmul.f32 0.5, %v1341_v43  ;;  %v1100_v63 = vpop.xlane.xlu0 %1099 }
 0x2cd   :  { %v1454_v0 = vmul.f32 %v2546_v29, %v1426_v22  ;;  %v1129_v52 = vmul.f32 %v1100_v63, %v2392_v15 }
 0x2ce   :  { %v1343_v46 = vsub.f32 1.5, %v1342_v33 }
 0x2cf   :  { %v1916_v19 = vpop.eup %1915  ;;  %v1482_v53 = vadd.f32 %v2553_v34, %v1454_v0  ;;  %v1154_v54 = vadd.f32 1e-05, %v1129_v52 }
 0x2d0   :  { %v1344_v51 = vmul.f32 %v1914_v36, %v1343_v46  ;;  %v1350_v48 = vmul.f32 %v1916_v19, %v1153_v10  ;;  %vm1356_vm10 = vweird.f32 %v1916_v19 }
 0x2d1   :  { %1507 = vst [vmem:[%s2867_s11 + $0x88] sm:$0xff] %v1482_v53  ;;  %v1532_v41 = vadd.f32 %v1944_v28, %v1482_v53  ;;  %1917 = vrsqrt.f32 %v1154_v54  ;;  %vm1357_vm12 = vmor %vm1355_vm11, %vm1356_vm10  ;;  %vm1365_vm14 = vweird.f32 %v1154_v54 }
 0x2d2   :  { %v1348_v49 = vsel %vm1347_vm9, %v1914_v36, %v1344_v51  ;;  %v1351_v39 = vmul.f32 %v1916_v19, %v1350_v48 }
 0x2d3   :  { %1557 = vst [vmem:[#allocation2 + $0x88] sm:$0xff] %v1532_v41  ;;  %v1427_v4 = vmul.f32 %v1348_v49, %v2561_v30  ;;  %v1945_v30 = vld [vmem:[%s2858_s2 + $0x90] sm:$0xff] }
 0x2d4   :  { %v1352_v56 = vmul.f32 0.5, %v1351_v39  ;;  %v1102_v61 = vpop.xlane.xlu1 %1101 }
 0x2d5   :  { %v1455_v5 = vmul.f32 %v2546_v29, %v1427_v4  ;;  %v1130_v1 = vmul.f32 %v1102_v61, %v2392_v15 }
 0x2d6   :  { %v1353_v3 = vsub.f32 1.5, %v1352_v56 }
 0x2d7   :  { %v1918_v21 = vpop.eup %1917  ;;  %v1483_v7 = vadd.f32 %v2553_v34, %v1455_v5  ;;  %v1155_v8 = vadd.f32 1e-05, %v1130_v1 }
 0x2d8   :  { %v1354_v11 = vmul.f32 %v1916_v19, %v1353_v3  ;;  %v1360_v12 = vmul.f32 %v1918_v21, %v1154_v54  ;;  %vm1366_vm13 = vweird.f32 %v1918_v21 }
 0x2d9   :  { %1508 = vst [vmem:[%s2867_s11 + $0x90] sm:$0xff] %v1483_v7  ;;  %v1533_v31 = vadd.f32 %v1945_v30, %v1483_v7  ;;  %1919 = vrsqrt.f32 %v1155_v8  ;;  %vm1367_vm15 = vmor %vm1365_vm14, %vm1366_vm13  ;;  %vm1375_vm1 = vweird.f32 %v1155_v8 }
 0x2da   :  { %v1358_v18 = vsel %vm1357_vm12, %v1916_v19, %v1354_v11  ;;  %v1361_v6 = vmul.f32 %v1918_v21, %v1360_v12 }
 0x2db   :  { %1558 = vst [vmem:[#allocation2 + $0x90] sm:$0xff] %v1533_v31  ;;  %v1428_v27 = vmul.f32 %v1358_v18, %v2577_v24  ;;  %v1946_v24 = vld [vmem:[%s2858_s2 + $0x98] sm:$0xff] }
 0x2dc   :  { %v1362_v60 = vmul.f32 0.5, %v1361_v6  ;;  %v1104_v58 = vpop.xlane.xlu2 %1103 }
 0x2dd   :  { %v1456_v9 = vmul.f32 %v2546_v29, %v1428_v27  ;;  %v1131_v16 = vmul.f32 %v1104_v58, %v2392_v15  ;;  %v1950_v58 = vld [vmem:[%s2858_s2 + $0xb8] sm:$0xff] }
 0x2de   :  { %v1363_v26 = vsub.f32 1.5, %v1362_v60 }
 0x2df   :  { %v1920_v55 = vpop.eup %1919  ;;  %v1484_v17 = vadd.f32 %v2553_v34, %v1456_v9  ;;  %v1156_v20 = vadd.f32 1e-05, %v1131_v16 }
 0x2e0   :  { %v1364_v57 = vmul.f32 %v1918_v21, %v1363_v26  ;;  %v1370_v59 = vmul.f32 %v1920_v55, %v1155_v8  ;;  %vm1376_vm0 = vweird.f32 %v1920_v55  ;;  %v1951_v26 = vld [vmem:[%s2865_s9] ss:$0 sm:$0xff]  ;;  %s1981_s9 = smov 128  }
 0x2e1   :  { %1509 = vst [vmem:[%s2867_s11 + $0x98] sm:$0xff] %v1484_v17  ;;  %v1534_v32 = vadd.f32 %v1946_v24, %v1484_v17  ;;  %1921 = vrsqrt.f32 %v1156_v20  ;;  %vm1377_vm2 = vmor %vm1375_vm1, %vm1376_vm0  ;;  %vm1385_vm4 = vweird.f32 %v1156_v20 }
 0x2e2   :  { %v1368_v45 = vsel %vm1367_vm15, %v1918_v21, %v1364_v57  ;;  %v1371_v35 = vmul.f32 %v1920_v55, %v1370_v59  ;;  %v1106_v25 = vpop.xlane.xlu0 %1105 }
 0x2e3   :  { %1559 = vst [vmem:[#allocation2 + $0x98] sm:$0xff] %v1534_v32  ;;  %v1429_v62 = vmul.f32 %v1368_v45, %v2593_v47  ;;  %v1132_v36 = vmul.f32 %v1106_v25, %v2392_v15  ;;  %v1947_v47 = vld [vmem:[%s2858_s2 + $0xa0] sm:$0xff] }
 0x2e4   :  { %v1372_v2 = vmul.f32 0.5, %v1371_v35 }
 0x2e5   :  { %v1457_v10 = vmul.f32 %v2546_v29, %v1429_v62  ;;  %v1157_v40 = vadd.f32 1e-05, %v1132_v36 }
 0x2e6   :  { %v1373_v44 = vsub.f32 1.5, %v1372_v2 }
 0x2e7   :  { %v1922_v50 = vpop.eup %1921  ;;  %v1485_v42 = vadd.f32 %v2553_v34, %v1457_v10  ;;  %1923 = vrsqrt.f32 %v1157_v40  ;;  %vm1395_vm7 = vweird.f32 %v1157_v40 }
 0x2e8   :  { %v1374_v23 = vmul.f32 %v1920_v55, %v1373_v44  ;;  %v1380_v43 = vmul.f32 %v1922_v50, %v1156_v20  ;;  %vm1386_vm3 = vweird.f32 %v1922_v50 }
 0x2e9   :  { %1510 = vst [vmem:[%s2867_s11 + $0xa0] sm:$0xff] %v1485_v42  ;;  %v1535_v22 = vadd.f32 %v1947_v47, %v1485_v42  ;;  %vm1387_vm5 = vmor %vm1385_vm4, %vm1386_vm3 }
 0x2ea   :  { %v1378_v33 = vsel %vm1377_vm2, %v1920_v55, %v1374_v23  ;;  %v1381_v63 = vmul.f32 %v1922_v50, %v1380_v43  ;;  %v1108_v52 = vpop.xlane.xlu1 %1107 }
 0x2eb   :  { %1560 = vst [vmem:[#allocation2 + $0xa0] sm:$0xff] %v1535_v22  ;;  %v1430_v0 = vmul.f32 %v1378_v33, %v2609_v13  ;;  %v1133_v19 = vmul.f32 %v1108_v52, %v2392_v15  ;;  %v1948_v15 = vld [vmem:[%s2858_s2 + $0xa8] sm:$0xff] }
 0x2ec   :  { %v1382_v46 = vmul.f32 0.5, %v1381_v63 }
 0x2ed   :  { %v1924_v53 = vpop.eup %1923  ;;  %v1458_v54 = vmul.f32 %v2546_v29, %v1430_v0  ;;  %v1158_v28 = vadd.f32 1e-05, %v1133_v19 }
 0x2ee   :  { %v1383_v51 = vsub.f32 1.5, %v1382_v46  ;;  %v1390_v48 = vmul.f32 %v1924_v53, %v1157_v40  ;;  %vm1396_vm6 = vweird.f32 %v1924_v53 }
 0x2ef   :  { %v1486_v41 = vadd.f32 %v2553_v34, %v1458_v54  ;;  %1925 = vrsqrt.f32 %v1158_v28  ;;  %vm1397_vm8 = vmor %vm1395_vm7, %vm1396_vm6  ;;  %vm1405_vm10 = vweird.f32 %v1158_v28 }
 0x2f0   :  { %v1384_v49 = vmul.f32 %v1922_v50, %v1383_v51  ;;  %v1391_v39 = vmul.f32 %v1924_v53, %v1390_v48 }
 0x2f1   :  { %1511 = vst [vmem:[%s2867_s11 + $0xa8] sm:$0xff] %v1486_v41  ;;  %v1536_v13 = vadd.f32 %v1948_v15, %v1486_v41 }
 0x2f2   :  { %v1388_v4 = vsel %vm1387_vm5, %v1922_v50, %v1384_v49  ;;  %v1392_v56 = vmul.f32 0.5, %v1391_v39 }
 0x2f3   :  { %1561 = vst [vmem:[#allocation2 + $0xa8] sm:$0xff] %v1536_v13  ;;  %v1431_v61 = vmul.f32 %v1388_v4, %v2624_v37  ;;  %v1949_v37 = vld [vmem:[%s2858_s2 + $0xb0] sm:$0xff] }
 0x2f4   :  { %v1393_v5 = vsub.f32 1.5, %v1392_v56 }
 0x2f5   :  { %v1459_v1 = vmul.f32 %v2546_v29, %v1431_v61  ;;  %v1926_v3 = vpop.eup %1925 }
 0x2f6   :  { %v1394_v21 = vmul.f32 %v1924_v53, %v1393_v5  ;;  %v1400_v8 = vmul.f32 %v1926_v3, %v1158_v28  ;;  %vm1406_vm9 = vweird.f32 %v1926_v3 }
 0x2f7   :  { %v1487_v7 = vadd.f32 %v2553_v34, %v1459_v1  ;;  %vm1407_vm11 = vmor %vm1405_vm10, %vm1406_vm9 }
 0x2f8   :  { %v1398_v11 = vsel %vm1397_vm8, %v1924_v53, %v1394_v21  ;;  %v1401_v31 = vmul.f32 %v1926_v3, %v1400_v8 }
 0x2f9   :  { %1512 = vst [vmem:[%s2867_s11 + $0xb0] sm:$0xff] %v1487_v7  ;;  %v1537_v12 = vadd.f32 %v1949_v37, %v1487_v7  ;;  %v1432_v30 = vmul.f32 %v1398_v11, %v2638_v14 }
 0x2fa   :  { %v1402_v6 = vmul.f32 0.5, %v1401_v31 }
 0x2fb   :  { %1562 = vst [vmem:[#allocation2 + $0xb0] sm:$0xff] %v1537_v12  ;;  %v1460_v18 = vmul.f32 %v2546_v29, %v1432_v30 }
 0x2fc   :  { %v1403_v60 = vsub.f32 1.5, %v1402_v6 }
 0x2fd   :  { %v1488_v27 = vadd.f32 %v2553_v34, %v1460_v18 }
 0x2fe   :  { %v1404_v16 = vmul.f32 %v1926_v3, %v1403_v60 }
 0x2ff   :  { %1513 = vst [vmem:[%s2867_s11 + $0xb8] sm:$0xff] %v1488_v27  ;;  %v1538_v9 = vadd.f32 %v1950_v58, %v1488_v27 }
 0x300   :  { %v1408_v14 = vsel %vm1407_vm11, %v1926_v3, %v1404_v16 }
 0x301   :  { %1563 = vst [vmem:[#allocation2 + $0xb8] sm:$0xff] %v1538_v9  ;;  %v1433_v29 = vmul.f32 %v1408_v14, %v2654_v38  ;;  %v1952_v38 = vld [vmem:[%s2858_s2 + $0xc0] sm:$0xff] }
 0x303   :  { %v1461_v55 = vmul.f32 %v1951_v26, %v1433_v29 }
 0x305   :  { %v1489_v17 = vadd.f32 %v2553_v34, %v1461_v55 }
 0x307   :  { %1514 = vst [vmem:[%s2867_s11 + $0xc0] sm:$0xff] %v1489_v17  ;;  %v1539_v20 = vadd.f32 %v1952_v38, %v1489_v17 }
 0x309   :  { %1564 = vst [vmem:[#allocation2 + $0xc0] sm:$0xff] %v1539_v20 }
 0x30a   :  { %1579 = dma.vmem_to_hbm [thread:$0]  %s1572_s5, 3200, %s1574_s0, [#allocation3], %s1981_s9, %s1981_s9, %s1982_s25  }
 0x30b   :  { %1977 = dma.done.wait [#allocation3], 3200  }
 0x30c   :  { %1978 = vsyncadd [#allocation3], 4294964096 }
 0x30d   :  { %1586 = vsyncpa [#allocation3], 1 }

// kernel: processor_mpnn_forward.5
= control target key start
LH: loop header
LB: loop body
LE: loop exit
PB: predicated region body
PF: predicated region fallthrough
CT: control target
= control target key end

     0   :  { %s1277_s0 = inlined_call_operand.vmem [shape: f32[64,128], index: 0, kind: input, shape index: {}]   ;;  %s1278_s1 = inlined_call_operand.vmem [shape: f32[64,128], index: 1, kind: input, shape index: {}]   ;;  %s1279_s2 = inlined_call_operand.vmem [shape: f32[64,128], index: 2, kind: input, shape index: {}]   ;;  %s1280_s3 = inlined_call_operand.vmem [shape: bf16[128,128], index: 3, kind: input, shape index: {}]   ;;  %s1281_s4 = inlined_call_operand.vmem [shape: bf16[128,128], index: 4, kind: input, shape index: {}]   ;;  %s1282_s5 = inlined_call_operand.vmem [shape: bf16[128,128], index: 5, kind: input, shape index: {}]   ;;  %s1283_s6 = inlined_call_operand.vmem [shape: f32[1,128], index: 6, kind: input, shape index: {}]   ;;  %s1284_s7 = inlined_call_operand.vmem [shape: bf16[128,128], index: 7, kind: input, shape index: {}]   ;;  %s1285_s8 = inlined_call_operand.vmem [shape: f32[1,128], index: 8, kind: input, shape index: {}]   ;;  %s1286_s9 = inlined_call_operand.vmem [shape: f32[1,128], index: 9, kind: input, shape index: {}]   ;;  %s1287_s10 = inlined_call_operand.vmem [shape: f32[1,128], index: 10, kind: input, shape index: {}]   ;;  %s1288_s11 = inlined_call_operand.hbm [shape: f32[64,128], index: 11, kind: output, shape index: {}]  }
   0x1   :  { %v851_v0 = vld [vmem:[%s1281_s4 + $0x38] sm:$0xff]  ;;  %v850_v3 = vld [vmem:[%s1281_s4 + $0x30] sm:$0xff]  ;;  %v849_v6 = vld [vmem:[%s1281_s4 + $0x28] sm:$0xff] }
   0x2   :  { %v843_v1 = vld [vmem:[%s1280_s3 + $0x38] sm:$0xff]  ;;  %191 = vmatpush.bf16.msra.mxu0 %v851_v0  ;;  %v842_v4 = vld [vmem:[%s1280_s3 + $0x30] sm:$0xff]  ;;  %v841_v7 = vld [vmem:[%s1280_s3 + $0x28] sm:$0xff] }
   0x3   :  { %v859_v2 = vld [vmem:[%s1282_s5 + $0x38] sm:$0xff]  ;;  %268 = vmatpush.bf16.msra.mxu1 %v843_v1  ;;  %v858_v5 = vld [vmem:[%s1282_s5 + $0x30] sm:$0xff]  ;;  %v857_v8 = vld [vmem:[%s1282_s5 + $0x28] sm:$0xff] }
   0x4   :  { %345 = vmatpush.bf16.msra.mxu2 %v859_v2  ;;  %v848_v9 = vld [vmem:[%s1281_s4 + $0x20] sm:$0xff] }
   0x5   :  { %v840_v10 = vld [vmem:[%s1280_s3 + $0x20] sm:$0xff] }
   0x6   :  { %192 = vmatpush.bf16.msra.mxu0 %v850_v3  ;;  %v856_v11 = vld [vmem:[%s1282_s5 + $0x20] sm:$0xff] }
   0x7   :  { %269 = vmatpush.bf16.msra.mxu1 %v842_v4 }
   0x8   :  { %346 = vmatpush.bf16.msra.mxu2 %v858_v5 }
   0xa   :  { %193 = vmatpush.bf16.msra.mxu0 %v849_v6 }
   0xb   :  { %270 = vmatpush.bf16.msra.mxu1 %v841_v7 }
   0xc   :  { %347 = vmatpush.bf16.msra.mxu2 %v857_v8 }
   0xd   :  { %16 = vsyncpa [#allocation3], 0  ;;  %v847_v12 = vld [vmem:[%s1281_s4 + $0x18] sm:$0xff]  ;;  %v846_v15 = vld [vmem:[%s1281_s4 + $0x10] sm:$0xff]  ;;  %s696_s29 = sshll.u32 %s1288_s11, 4  ;;  %s922_s30 = smov 128   ;;  %s697_s29 = int_to_ptr.hbm [resolvable:$true] %s696_s29 }
   0xe   :  { %194 = vmatpush.bf16.msra.mxu0 %v848_v9  ;;  %v839_v13 = vld [vmem:[%s1280_s3 + $0x18] sm:$0xff]  ;;  %v838_v16 = vld [vmem:[%s1280_s3 + $0x10] sm:$0xff]  ;;  %v845_v18 = vld [vmem:[%s1281_s4 + $0x8] sm:$0xff] }
   0xf   :  { %271 = vmatpush.bf16.msra.mxu1 %v840_v10  ;;  %v855_v14 = vld [vmem:[%s1282_s5 + $0x18] sm:$0xff]  ;;  %v854_v17 = vld [vmem:[%s1282_s5 + $0x10] sm:$0xff]  ;;  %v837_v19 = vld [vmem:[%s1280_s3 + $0x8] sm:$0xff] }
  0x10   :  { %348 = vmatpush.bf16.msra.mxu2 %v856_v11  ;;  %v853_v20 = vld [vmem:[%s1282_s5 + $0x8] sm:$0xff]  ;;  %v844_v21 = vld [vmem:[%s1281_s4] sm:$0xff]  ;;  %v53_v33 = vld [vmem:[%s1278_s1 + $0x10] sm:$0xff]  ;;  %s923_s4 = smov 8  }
  0x11   :  { %v836_v22 = vld [vmem:[%s1280_s3] sm:$0xff]  ;;  %v52_v24 = vld [vmem:[%s1278_s1 + $0x8] sm:$0xff]  ;;  %v54_v34 = vld [vmem:[%s1278_s1 + $0x18] sm:$0xff] }
  0x12   :  { %195 = vmatpush.bf16.msra.mxu0 %v847_v12  ;;  %v51_v23 = vld [vmem:[%s1278_s1] sm:$0xff]  ;;  %v1067_v26 = vld [vmem:[%s1277_s0 + $0x8] sm:$0xff]  ;;  %v1089_v35 = vld [vmem:[%s1277_s0 + $0x10] sm:$0xff]  ;;  %v60_v39 = vpack.c.bf16 %v54_v34, %v53_v33 }
  0x13   :  { %272 = vmatpush.bf16.msra.mxu1 %v839_v13  ;;  %v1062_v25 = vld [vmem:[%s1277_s0] sm:$0xff]  ;;  %v64_v29 = vld [vmem:[%s1279_s2 + $0x8] sm:$0xff]  ;;  %v59_v30 = vpack.c.bf16 %v52_v24, %v51_v23  ;;  %v1094_v36 = vld [vmem:[%s1277_s0 + $0x18] sm:$0xff] }
  0x14   :  { %349 = vmatpush.bf16.msra.mxu2 %v855_v14  ;;  %v852_v27 = vld [vmem:[%s1282_s5] sm:$0xff]  ;;  %v47_v31 = vpack.c.bf16 %v1067_v26, %v1062_v25  ;;  %v65_v37 = vld [vmem:[%s1279_s2 + $0x10] sm:$0xff]  ;;  %v66_v38 = vld [vmem:[%s1279_s2 + $0x18] sm:$0xff]  ;;  %v48_v40 = vpack.c.bf16 %v1094_v36, %v1089_v35 }
  0x15   :  { %v63_v28 = vld [vmem:[%s1279_s2] sm:$0xff]  ;;  %v72_v41 = vpack.c.bf16 %v66_v38, %v65_v37  ;;  %v867_v42 = vld [vmem:[%s1284_s7 + $0x38] sm:$0xff]  ;;  %v866_v43 = vld [vmem:[%s1284_s7 + $0x30] sm:$0xff] }
  0x16   :  { %196 = vmatpush.bf16.msra.mxu0 %v846_v15  ;;  %v71_v32 = vpack.c.bf16 %v64_v29, %v63_v28  ;;  %456 = vmatpush.bf16.msra.mxu3 %v867_v42  ;;  %v55_v44 = vld [vmem:[%s1278_s1 + $0x20] sm:$0xff]  ;;  %v56_v45 = vld [vmem:[%s1278_s1 + $0x28] sm:$0xff]  ;;  %v57_v53 = vld [vmem:[%s1278_s1 + $0x30] sm:$0xff] }
  0x17   :  { %273 = vmatpush.bf16.msra.mxu1 %v838_v16  ;;  %v1119_v46 = vld [vmem:[%s1277_s0 + $0x20] sm:$0xff]  ;;  %v1124_v47 = vld [vmem:[%s1277_s0 + $0x28] sm:$0xff]  ;;  %v61_v50 = vpack.c.bf16 %v56_v45, %v55_v44  ;;  %v58_v54 = vld [vmem:[%s1278_s1 + $0x38] sm:$0xff] }
  0x18   :  { %350 = vmatpush.bf16.msra.mxu2 %v854_v17  ;;  %v67_v48 = vld [vmem:[%s1279_s2 + $0x20] sm:$0xff]  ;;  %v68_v49 = vld [vmem:[%s1279_s2 + $0x28] sm:$0xff]  ;;  %v49_v51 = vpack.c.bf16 %v1124_v47, %v1119_v46  ;;  %v1143_v55 = vld [vmem:[%s1277_s0 + $0x30] sm:$0xff]  ;;  %v62_v59 = vpack.c.bf16 %v58_v54, %v57_v53 }
  0x19   :  { %v73_v52 = vpack.c.bf16 %v68_v49, %v67_v48  ;;  %v1148_v56 = vld [vmem:[%s1277_s0 + $0x38] sm:$0xff]  ;;  %v69_v57 = vld [vmem:[%s1279_s2 + $0x30] sm:$0xff]  ;;  %v865_v62 = vld [vmem:[%s1284_s7 + $0x28] sm:$0xff] }
  0x1a   :  { %197 = vmatpush.bf16.msra.mxu0 %v845_v18  ;;  %457 = vmatpush.bf16.msra.mxu3 %v866_v43  ;;  %v70_v58 = vld [vmem:[%s1279_s2 + $0x38] sm:$0xff]  ;;  %v50_v60 = vpack.c.bf16 %v1148_v56, %v1143_v55  ;;  %v864_v63 = vld [vmem:[%s1284_s7 + $0x20] sm:$0xff]  ;;  %v862_v1 = vld [vmem:[%s1284_s7 + $0x10] sm:$0xff] }
  0x1b   :  { %274 = vmatpush.bf16.msra.mxu1 %v837_v19  ;;  %v74_v61 = vpack.c.bf16 %v70_v58, %v69_v57  ;;  %v863_v0 = vld [vmem:[%s1284_s7 + $0x18] sm:$0xff]  ;;  %v861_v2 = vld [vmem:[%s1284_s7 + $0x8] sm:$0xff]  ;;  %v860_v3 = vld [vmem:[%s1284_s7] sm:$0xff] }
  0x1c   :  { %351 = vmatpush.bf16.msra.mxu2 %v853_v20  ;;  %v872_v11 = vld [vmem:[%s1283_s6] ss:$0 sm:$0xff] }
  0x1e   :  { %198 = vmatpush.bf16.msra.mxu0 %v844_v21  ;;  %458 = vmatpush.bf16.msra.mxu3 %v865_v62 }
  0x1f   :  { %275 = vmatpush.bf16.msra.mxu1 %v836_v22 }
  0x20   :  { %352 = vmatpush.bf16.msra.mxu2 %v852_v27 }
  0x21   :  { %199 = vmatmul.bf16.vlgmr.msra.gmra.mxu0 %v59_v30 }
  0x22   :  { %276 = vmatmul.bf16.vlgmr.msra.gmra.mxu1 %v47_v31  ;;  %459 = vmatpush.bf16.msra.mxu3 %v864_v63 }
  0x23   :  { %353 = vmatmul.bf16.vlgmr.msra.gmra.mxu2 %v71_v32 }
  0x26   :  { %460 = vmatpush.bf16.msra.mxu3 %v863_v0 }
  0x2a   :  { %461 = vmatpush.bf16.msra.mxu3 %v862_v1 }
  0x2e   :  { %462 = vmatpush.bf16.msra.mxu3 %v861_v2 }
  0x31   :  { %204 = vmatmul.bf16.gmra.mxu0 %v60_v39 }
  0x32   :  { %281 = vmatmul.bf16.gmra.mxu1 %v48_v40  ;;  %463 = vmatpush.bf16.msra.mxu3 %v860_v3 }
  0x33   :  { %358 = vmatmul.bf16.gmra.mxu2 %v72_v41 }
  0x41   :  { %209 = vmatmul.bf16.gmra.mxu0 %v61_v50 }
  0x42   :  { %286 = vmatmul.bf16.gmra.mxu1 %v49_v51 }
  0x43   :  { %363 = vmatmul.bf16.gmra.mxu2 %v73_v52 }
  0x51   :  { %214 = vmatmul.bf16.gmra.mxu0 %v62_v59 }
  0x52   :  { %291 = vmatmul.bf16.gmra.mxu1 %v50_v60 }
  0x53   :  { %368 = vmatmul.bf16.gmra.mxu2 %v74_v61 }
  0x9e   :  { %v200_v4 = vpop.f32.mrf.mxu0 }
  0x9f   :  { %v277_v5 = vpop.f32.mrf.mxu1 }
  0xa0   :  { %v278_v7 = vadd.f32 %v277_v5, %v200_v4 }
  0xa6   :  { %v354_v6 = vpop.f32.mrf.mxu2  ;;  %v202_v8 = vpop.f32.mrf.mxu0 }
  0xa7   :  { %v279_v9 = vpop.f32.mrf.mxu1  ;;  %v374_v10 = vadd.f32 %v354_v6, %v278_v7 }
  0xa8   :  { %v280_v12 = vadd.f32 %v279_v9, %v202_v8  ;;  %v873_v9 = vld [vmem:[%s1285_s8] ss:$0 sm:$0xff] }
  0xa9   :  { %v385_v14 = vadd.f32 %v872_v11, %v374_v10 }
  0xab   :  { %v393_v19 = vmax.f32 %v385_v14, 0.0 }
  0xae   :  { %v356_v13 = vpop.f32.mrf.mxu2  ;;  %v205_v16 = vpop.f32.mrf.mxu0 }
  0xaf   :  { %v375_v15 = vadd.f32 %v356_v13, %v280_v12  ;;  %v282_v17 = vpop.f32.mrf.mxu1 }
  0xb0   :  { %v283_v23 = vadd.f32 %v282_v17, %v205_v16 }
  0xb1   :  { %v386_v18 = vadd.f32 %v872_v11, %v375_v15 }
  0xb3   :  { %v394_v20 = vmax.f32 %v386_v18, 0.0 }
  0xb5   :  { %v401_v21 = vpack.c.bf16 %v394_v20, %v393_v19 }
  0xb6   :  { %v359_v22 = vpop.f32.mrf.mxu2  ;;  %v207_v24 = vpop.f32.mrf.mxu0 }
  0xb7   :  { %464 = vmatmul.bf16.vlgmr.msra.gmra.mxu3 %v401_v21  ;;  %v284_v27 = vpop.f32.mrf.mxu1  ;;  %v376_v28 = vadd.f32 %v359_v22, %v283_v23 }
  0xb8   :  { %v285_v29 = vadd.f32 %v284_v27, %v207_v24 }
  0xb9   :  { %v387_v31 = vadd.f32 %v872_v11, %v376_v28  ;;  %v920_v28 = vmov 128.0  }
  0xba   :  { %876 = vrcp.f32 %v920_v28  ;;  %v1230_v28 = vld [vmem:[%s1286_s9] ss:$0 sm:$0xff]  ;;  %s921_s9 = smov [#allocation2]  }
  0xbb   :  { %v395_v38 = vmax.f32 %v387_v31, 0.0 }
  0xbe   :  { %v361_v30 = vpop.f32.mrf.mxu2  ;;  %v210_v33 = vpop.f32.mrf.mxu0 }
  0xbf   :  { %v377_v32 = vadd.f32 %v361_v30, %v285_v29  ;;  %v287_v34 = vpop.f32.mrf.mxu1 }
  0xc0   :  { %v288_v42 = vadd.f32 %v287_v34, %v210_v33  ;;  %v877_v29 = vpop.eup %876 }
  0xc1   :  { %v388_v37 = vadd.f32 %v872_v11, %v377_v32  ;;  %v502_v30 = vmul.f32 128.0, %v877_v29  ;;  %vm506_vm0 = vweird.f32 %v877_v29 }
  0xc3   :  { %v396_v39 = vmax.f32 %v388_v37, 0.0  ;;  %v503_v31 = vsub.f32 1.0, %v502_v30 }
  0xc5   :  { %v402_v40 = vpack.c.bf16 %v396_v39, %v395_v38  ;;  %v504_v32 = vmul.f32 %v877_v29, %v503_v31  ;;  %v1235_v31 = vld [vmem:[%s1287_s10] ss:$0 sm:$0xff]  ;;  %s694_s10 = sshll.u32 %s921_s9, 4  ;;  %s695_s10 = int_to_ptr.vmem [resolvable:$true] %s694_s10 }
  0xc6   :  { %v364_v41 = vpop.f32.mrf.mxu2  ;;  %v212_v43 = vpop.f32.mrf.mxu0 }
  0xc7   :  { %469 = vmatmul.bf16.gmra.mxu3 %v402_v40  ;;  %v289_v44 = vpop.f32.mrf.mxu1  ;;  %v378_v45 = vadd.f32 %v364_v41, %v288_v42  ;;  %v505_v33 = vadd.f32 %v877_v29, %v504_v32 }
  0xc8   :  { %v290_v48 = vadd.f32 %v289_v44, %v212_v43 }
  0xc9   :  { %v389_v50 = vadd.f32 %v872_v11, %v378_v45  ;;  %v1182_v34 = vsel %vm506_vm0, %v877_v29, %v505_v33 }
  0xcb   :  { %v397_v57 = vmax.f32 %v389_v50, 0.0 }
  0xce   :  { %v366_v49 = vpop.f32.mrf.mxu2  ;;  %v215_v52 = vpop.f32.mrf.mxu0 }
  0xcf   :  { %v379_v51 = vadd.f32 %v366_v49, %v290_v48  ;;  %v292_v53 = vpop.f32.mrf.mxu1 }
  0xd0   :  { %v293_v61 = vadd.f32 %v292_v53, %v215_v52 }
  0xd1   :  { %v390_v54 = vadd.f32 %v872_v11, %v379_v51 }
  0xd3   :  { %v398_v58 = vmax.f32 %v390_v54, 0.0 }
  0xd5   :  { %v403_v59 = vpack.c.bf16 %v398_v58, %v397_v57 }
  0xd6   :  { %v369_v60 = vpop.f32.mrf.mxu2  ;;  %v217_v62 = vpop.f32.mrf.mxu0 }
  0xd7   :  { %474 = vmatmul.bf16.gmra.mxu3 %v403_v59  ;;  %v294_v63 = vpop.f32.mrf.mxu1  ;;  %v380_v0 = vadd.f32 %v369_v60, %v293_v61 }
  0xd8   :  { %v295_v1 = vadd.f32 %v294_v63, %v217_v62 }
  0xd9   :  { %v391_v3 = vadd.f32 %v872_v11, %v380_v0 }
  0xdb   :  { %v399_v6 = vmax.f32 %v391_v3, 0.0 }
  0xde   :  { %v371_v2 = vpop.f32.mrf.mxu2 }
  0xdf   :  { %v381_v4 = vadd.f32 %v371_v2, %v295_v1 }
  0xe1   :  { %v392_v5 = vadd.f32 %v872_v11, %v381_v4 }
  0xe3   :  { %v400_v7 = vmax.f32 %v392_v5, 0.0 }
  0xe5   :  { %v404_v8 = vpack.c.bf16 %v400_v7, %v399_v6 }
  0xe7   :  { %479 = vmatmul.bf16.gmra.mxu3 %v404_v8 }
 0x13a   :  { %v465_v10 = vpop.f32.mrf.mxu3 }
 0x13b   :  { %v466_v12 = vadd.f32 %v873_v9, %v465_v10 }
 0x13d   :  { %485 = vadd.xlane.f32.xlu0 %v466_v12 }
 0x142   :  { %v467_v13 = vpop.f32.mrf.mxu3 }
 0x143   :  { %v468_v14 = vadd.f32 %v873_v9, %v467_v13 }
 0x145   :  { %487 = vadd.xlane.f32.xlu0 %v468_v14 }
 0x14a   :  { %v470_v15 = vpop.f32.mrf.mxu3 }
 0x14b   :  { %v471_v16 = vadd.f32 %v873_v9, %v470_v15 }
 0x14d   :  { %489 = vadd.xlane.f32.xlu1 %v471_v16 }
 0x152   :  { %v472_v17 = vpop.f32.mrf.mxu3 }
 0x153   :  { %v473_v18 = vadd.f32 %v873_v9, %v472_v17 }
 0x155   :  { %491 = vadd.xlane.f32.xlu1 %v473_v18 }
 0x15a   :  { %v475_v11 = vpop.f32.mrf.mxu3 }
 0x15b   :  { %v476_v19 = vadd.f32 %v873_v9, %v475_v11 }
 0x15d   :  { %493 = vadd.xlane.f32.xlu2 %v476_v19 }
 0x162   :  { %v477_v20 = vpop.f32.mrf.mxu3 }
 0x163   :  { %v478_v21 = vadd.f32 %v873_v9, %v477_v20 }
 0x165   :  { %495 = vadd.xlane.f32.xlu2 %v478_v21 }
 0x16a   :  { %v480_v22 = vpop.f32.mrf.mxu3 }
 0x16b   :  { %v481_v23 = vadd.f32 %v873_v9, %v480_v22 }
 0x16d   :  { %497 = vadd.xlane.f32.xlu0 %v481_v23 }
 0x172   :  { %v482_v24 = vpop.f32.mrf.mxu3 }
 0x173   :  { %v483_v27 = vadd.f32 %v873_v9, %v482_v24 }
 0x175   :  { %499 = vadd.xlane.f32.xlu1 %v483_v27 }
 0x1b0   :  { %v486_v37 = vpop.xlane.xlu0 %485 }
 0x1b1   :  { %v508_v38 = vmul.f32 %v1182_v34, %v486_v37 }
 0x1b3   :  { %v1185_v39 = vsub.f32 %v466_v12, %v508_v38 }
 0x1b5   :  { %v524_v40 = vmul.f32 %v1185_v39, %v1185_v39 }
 0x1b7   :  { %532 = vadd.xlane.f32.xlu2 %v524_v40 }
 0x1b8   :  { %v488_v41 = vpop.xlane.xlu0 %487 }
 0x1b9   :  { %v509_v42 = vmul.f32 %v1182_v34, %v488_v41 }
 0x1bb   :  { %v1190_v43 = vsub.f32 %v468_v14, %v509_v42 }
 0x1bd   :  { %v525_v44 = vmul.f32 %v1190_v43, %v1190_v43 }
 0x1bf   :  { %534 = vadd.xlane.f32.xlu0 %v525_v44 }
 0x1c0   :  { %v490_v45 = vpop.xlane.xlu1 %489 }
 0x1c1   :  { %v510_v48 = vmul.f32 %v1182_v34, %v490_v45 }
 0x1c3   :  { %v1195_v49 = vsub.f32 %v471_v16, %v510_v48 }
 0x1c5   :  { %v526_v50 = vmul.f32 %v1195_v49, %v1195_v49 }
 0x1c7   :  { %536 = vadd.xlane.f32.xlu1 %v526_v50 }
 0x1c8   :  { %v492_v51 = vpop.xlane.xlu1 %491 }
 0x1c9   :  { %v511_v52 = vmul.f32 %v1182_v34, %v492_v51 }
 0x1cb   :  { %v1200_v53 = vsub.f32 %v473_v18, %v511_v52 }
 0x1cd   :  { %v527_v54 = vmul.f32 %v1200_v53, %v1200_v53 }
 0x1cf   :  { %538 = vadd.xlane.f32.xlu2 %v527_v54 }
 0x1d0   :  { %v494_v57 = vpop.xlane.xlu2 %493 }
 0x1d1   :  { %v512_v58 = vmul.f32 %v1182_v34, %v494_v57 }
 0x1d3   :  { %v1205_v59 = vsub.f32 %v476_v19, %v512_v58 }
 0x1d5   :  { %v528_v60 = vmul.f32 %v1205_v59, %v1205_v59 }
 0x1d7   :  { %540 = vadd.xlane.f32.xlu0 %v528_v60 }
 0x1d8   :  { %v496_v61 = vpop.xlane.xlu2 %495 }
 0x1d9   :  { %v513_v62 = vmul.f32 %v1182_v34, %v496_v61 }
 0x1db   :  { %v1210_v63 = vsub.f32 %v478_v21, %v513_v62 }
 0x1dd   :  { %v529_v0 = vmul.f32 %v1210_v63, %v1210_v63 }
 0x1df   :  { %542 = vadd.xlane.f32.xlu1 %v529_v0 }
 0x1e0   :  { %v498_v1 = vpop.xlane.xlu0 %497 }
 0x1e1   :  { %v514_v2 = vmul.f32 %v1182_v34, %v498_v1 }
 0x1e3   :  { %v1215_v3 = vsub.f32 %v481_v23, %v514_v2 }
 0x1e5   :  { %v530_v4 = vmul.f32 %v1215_v3, %v1215_v3 }
 0x1e7   :  { %544 = vadd.xlane.f32.xlu2 %v530_v4 }
 0x1e8   :  { %v500_v5 = vpop.xlane.xlu1 %499 }
 0x1e9   :  { %v515_v6 = vmul.f32 %v1182_v34, %v500_v5 }
 0x1eb   :  { %v1220_v7 = vsub.f32 %v483_v27, %v515_v6 }
 0x1ed   :  { %v531_v8 = vmul.f32 %v1220_v7, %v1220_v7 }
 0x1ef   :  { %546 = vadd.xlane.f32.xlu0 %v531_v8 }
 0x22a   :  { %v533_v9 = vpop.xlane.xlu2 %532 }
 0x22b   :  { %v548_v10 = vmul.f32 %v533_v9, %v1182_v34 }
 0x22d   :  { %v556_v12 = vadd.f32 1e-05, %v548_v10 }
 0x22f   :  { %878 = vrsqrt.f32 %v556_v12  ;;  %vm570_vm2 = vweird.f32 %v556_v12 }
 0x232   :  { %v535_v13 = vpop.xlane.xlu0 %534 }
 0x233   :  { %v549_v14 = vmul.f32 %v535_v13, %v1182_v34 }
 0x235   :  { %v879_v15 = vpop.eup %878  ;;  %v557_v16 = vadd.f32 1e-05, %v549_v14 }
 0x236   :  { %v565_v17 = vmul.f32 %v879_v15, %v556_v12  ;;  %vm571_vm1 = vweird.f32 %v879_v15 }
 0x237   :  { %880 = vrsqrt.f32 %v557_v16  ;;  %vm572_vm3 = vmor %vm570_vm2, %vm571_vm1  ;;  %vm580_vm5 = vweird.f32 %v557_v16 }
 0x238   :  { %v566_v18 = vmul.f32 %v879_v15, %v565_v17 }
 0x23a   :  { %v567_v11 = vmul.f32 0.5, %v566_v18  ;;  %v537_v19 = vpop.xlane.xlu1 %536 }
 0x23b   :  { %v550_v20 = vmul.f32 %v537_v19, %v1182_v34 }
 0x23c   :  { %v568_v21 = vsub.f32 1.5, %v567_v11 }
 0x23d   :  { %v881_v22 = vpop.eup %880  ;;  %v558_v23 = vadd.f32 1e-05, %v550_v20 }
 0x23e   :  { %v569_v24 = vmul.f32 %v879_v15, %v568_v21  ;;  %v575_v27 = vmul.f32 %v881_v22, %v557_v16  ;;  %vm581_vm4 = vweird.f32 %v881_v22 }
 0x23f   :  { %882 = vrsqrt.f32 %v558_v23  ;;  %vm582_vm6 = vmor %vm580_vm5, %vm581_vm4  ;;  %vm590_vm8 = vweird.f32 %v558_v23 }
 0x240   :  { %v573_v29 = vsel %vm572_vm3, %v879_v15, %v569_v24  ;;  %v576_v30 = vmul.f32 %v881_v22, %v575_v27 }
 0x241   :  { %v644_v32 = vmul.f32 %v573_v29, %v1185_v39 }
 0x242   :  { %v577_v33 = vmul.f32 0.5, %v576_v30  ;;  %v539_v37 = vpop.xlane.xlu2 %538 }
 0x243   :  { %v655_v38 = vmul.f32 %v1230_v28, %v644_v32  ;;  %v551_v40 = vmul.f32 %v539_v37, %v1182_v34 }
 0x244   :  { %v578_v41 = vsub.f32 1.5, %v577_v33 }
 0x245   :  { %v883_v42 = vpop.eup %882  ;;  %v666_v44 = vadd.f32 %v1235_v31, %v655_v38  ;;  %v559_v45 = vadd.f32 1e-05, %v551_v40 }
 0x246   :  { %v579_v48 = vmul.f32 %v881_v22, %v578_v41  ;;  %v585_v50 = vmul.f32 %v883_v42, %v558_v23  ;;  %vm591_vm7 = vweird.f32 %v883_v42 }
 0x247   :  { %v674_v51 = vadd.f32 %v666_v44, %v1062_v25  ;;  %884 = vrsqrt.f32 %v559_v45  ;;  %vm592_vm9 = vmor %vm590_vm8, %vm591_vm7  ;;  %vm600_vm11 = vweird.f32 %v559_v45 }
 0x248   :  { %v583_v39 = vsel %vm582_vm6, %v881_v22, %v579_v48  ;;  %v586_v52 = vmul.f32 %v883_v42, %v585_v50 }
 0x249   :  { %682 = vst [vmem:[#allocation2] sm:$0xff] %v674_v51  ;;  %v645_v54 = vmul.f32 %v583_v39, %v1190_v43 }
 0x24a   :  { %v587_v57 = vmul.f32 0.5, %v586_v52  ;;  %v541_v58 = vpop.xlane.xlu0 %540 }
 0x24b   :  { %v656_v60 = vmul.f32 %v1230_v28, %v645_v54  ;;  %v552_v61 = vmul.f32 %v541_v58, %v1182_v34 }
 0x24c   :  { %v588_v62 = vsub.f32 1.5, %v587_v57 }
 0x24d   :  { %v885_v0 = vpop.eup %884  ;;  %v667_v1 = vadd.f32 %v1235_v31, %v656_v60  ;;  %v560_v2 = vadd.f32 1e-05, %v552_v61 }
 0x24e   :  { %v589_v25 = vmul.f32 %v883_v42, %v588_v62  ;;  %v595_v4 = vmul.f32 %v885_v0, %v559_v45  ;;  %vm601_vm10 = vweird.f32 %v885_v0 }
 0x24f   :  { %v675_v5 = vadd.f32 %v667_v1, %v1067_v26  ;;  %886 = vrsqrt.f32 %v560_v2  ;;  %vm602_vm12 = vmor %vm600_vm11, %vm601_vm10  ;;  %vm610_vm14 = vweird.f32 %v560_v2 }
 0x250   :  { %v593_v43 = vsel %vm592_vm9, %v883_v42, %v589_v25  ;;  %v596_v6 = vmul.f32 %v885_v0, %v595_v4 }
 0x251   :  { %683 = vst [vmem:[#allocation2 + $0x8] sm:$0xff] %v675_v5  ;;  %v646_v8 = vmul.f32 %v593_v43, %v1195_v49 }
 0x252   :  { %v597_v9 = vmul.f32 0.5, %v596_v6  ;;  %v543_v10 = vpop.xlane.xlu1 %542 }
 0x253   :  { %v657_v12 = vmul.f32 %v1230_v28, %v646_v8  ;;  %v553_v13 = vmul.f32 %v543_v10, %v1182_v34 }
 0x254   :  { %v598_v14 = vsub.f32 1.5, %v597_v9 }
 0x255   :  { %v887_v15 = vpop.eup %886  ;;  %v668_v16 = vadd.f32 %v1235_v31, %v657_v12  ;;  %v561_v17 = vadd.f32 1e-05, %v553_v13 }
 0x256   :  { %v599_v26 = vmul.f32 %v885_v0, %v598_v14  ;;  %v605_v18 = vmul.f32 %v887_v15, %v560_v2  ;;  %vm611_vm13 = vweird.f32 %v887_v15 }
 0x257   :  { %v676_v11 = vadd.f32 %v668_v16, %v1089_v35  ;;  %888 = vrsqrt.f32 %v561_v17  ;;  %vm612_vm15 = vmor %vm610_vm14, %vm611_vm13  ;;  %vm620_vm1 = vweird.f32 %v561_v17 }
 0x258   :  { %v603_v49 = vsel %vm602_vm12, %v885_v0, %v599_v26  ;;  %v606_v19 = vmul.f32 %v887_v15, %v605_v18 }
 0x259   :  { %684 = vst [vmem:[#allocation2 + $0x10] sm:$0xff] %v676_v11  ;;  %v647_v20 = vmul.f32 %v603_v49, %v1200_v53 }
 0x25a   :  { %v607_v21 = vmul.f32 0.5, %v606_v19  ;;  %v545_v22 = vpop.xlane.xlu2 %544 }
 0x25b   :  { %v658_v23 = vmul.f32 %v1230_v28, %v647_v20  ;;  %v554_v24 = vmul.f32 %v545_v22, %v1182_v34 }
 0x25c   :  { %v608_v27 = vsub.f32 1.5, %v607_v21 }
 0x25d   :  { %v889_v29 = vpop.eup %888  ;;  %v669_v30 = vadd.f32 %v1235_v31, %v658_v23  ;;  %v562_v32 = vadd.f32 1e-05, %v554_v24 }
 0x25e   :  { %v609_v35 = vmul.f32 %v887_v15, %v608_v27  ;;  %v615_v33 = vmul.f32 %v889_v29, %v561_v17  ;;  %vm621_vm0 = vweird.f32 %v889_v29 }
 0x25f   :  { %v677_v37 = vadd.f32 %v669_v30, %v1094_v36  ;;  %890 = vrsqrt.f32 %v562_v32  ;;  %vm622_vm2 = vmor %vm620_vm1, %vm621_vm0  ;;  %vm630_vm4 = vweird.f32 %v562_v32 }
 0x260   :  { %v613_v53 = vsel %vm612_vm15, %v887_v15, %v609_v35  ;;  %v616_v38 = vmul.f32 %v889_v29, %v615_v33 }
 0x261   :  { %685 = vst [vmem:[#allocation2 + $0x18] sm:$0xff] %v677_v37  ;;  %v648_v40 = vmul.f32 %v613_v53, %v1205_v59 }
 0x262   :  { %v617_v41 = vmul.f32 0.5, %v616_v38  ;;  %v547_v42 = vpop.xlane.xlu0 %546 }
 0x263   :  { %v659_v44 = vmul.f32 %v1230_v28, %v648_v40  ;;  %v555_v45 = vmul.f32 %v547_v42, %v1182_v34 }
 0x264   :  { %v618_v48 = vsub.f32 1.5, %v617_v41 }
 0x265   :  { %v891_v50 = vpop.eup %890  ;;  %v670_v51 = vadd.f32 %v1235_v31, %v659_v44  ;;  %v563_v39 = vadd.f32 1e-05, %v555_v45 }
 0x266   :  { %v619_v36 = vmul.f32 %v889_v29, %v618_v48  ;;  %v625_v52 = vmul.f32 %v891_v50, %v562_v32  ;;  %vm631_vm3 = vweird.f32 %v891_v50 }
 0x267   :  { %v678_v54 = vadd.f32 %v670_v51, %v1119_v46  ;;  %892 = vrsqrt.f32 %v563_v39  ;;  %vm632_vm5 = vmor %vm630_vm4, %vm631_vm3  ;;  %vm640_vm7 = vweird.f32 %v563_v39 }
 0x268   :  { %v623_v59 = vsel %vm622_vm2, %v889_v29, %v619_v36  ;;  %v626_v57 = vmul.f32 %v891_v50, %v625_v52 }
 0x269   :  { %686 = vst [vmem:[#allocation2 + $0x20] sm:$0xff] %v678_v54  ;;  %v649_v58 = vmul.f32 %v623_v59, %v1210_v63 }
 0x26a   :  { %v627_v60 = vmul.f32 0.5, %v626_v57 }
 0x26b   :  { %v660_v34 = vmul.f32 %v1230_v28, %v649_v58 }
 0x26c   :  { %v628_v61 = vsub.f32 1.5, %v627_v60 }
 0x26d   :  { %v893_v62 = vpop.eup %892  ;;  %v671_v0 = vadd.f32 %v1235_v31, %v660_v34 }
 0x26e   :  { %v629_v1 = vmul.f32 %v891_v50, %v628_v61  ;;  %v635_v2 = vmul.f32 %v893_v62, %v563_v39  ;;  %vm641_vm6 = vweird.f32 %v893_v62 }
 0x26f   :  { %v679_v46 = vadd.f32 %v671_v0, %v1124_v47  ;;  %vm642_vm8 = vmor %vm640_vm7, %vm641_vm6 }
 0x270   :  { %v633_v25 = vsel %vm632_vm5, %v891_v50, %v629_v1  ;;  %v636_v4 = vmul.f32 %v893_v62, %v635_v2 }
 0x271   :  { %687 = vst [vmem:[#allocation2 + $0x28] sm:$0xff] %v679_v46  ;;  %v650_v5 = vmul.f32 %v633_v25, %v1215_v3 }
 0x272   :  { %v637_v63 = vmul.f32 0.5, %v636_v4 }
 0x273   :  { %v661_v43 = vmul.f32 %v1230_v28, %v650_v5 }
 0x274   :  { %v638_v6 = vsub.f32 1.5, %v637_v63 }
 0x275   :  { %v672_v8 = vadd.f32 %v1235_v31, %v661_v43 }
 0x276   :  { %v639_v9 = vmul.f32 %v893_v62, %v638_v6 }
 0x277   :  { %v680_v10 = vadd.f32 %v672_v8, %v1143_v55 }
 0x278   :  { %v643_v12 = vsel %vm642_vm8, %v893_v62, %v639_v9 }
 0x279   :  { %688 = vst [vmem:[#allocation2 + $0x30] sm:$0xff] %v680_v10  ;;  %v651_v47 = vmul.f32 %v643_v12, %v1220_v7 }
 0x27b   :  { %v662_v13 = vmul.f32 %v1230_v28, %v651_v47 }
 0x27d   :  { %v673_v3 = vadd.f32 %v1235_v31, %v662_v13 }
 0x27f   :  { %v681_v14 = vadd.f32 %v673_v3, %v1148_v56 }
 0x281   :  { %689 = vst [vmem:[#allocation2 + $0x38] sm:$0xff] %v681_v14 }
 0x282   :  { %702 = dma.vmem_to_hbm [thread:$0]  %s695_s10, 1024, %s697_s29, [#allocation3], %s922_s30, %s922_s30, %s923_s4  }
 0x283   :  { %918 = dma.done.wait [#allocation3], 1024  }
 0x284   :  { %919 = vsyncadd [#allocation3], 4294966272 }
 0x285   :  { %707 = vsyncpa [#allocation3], 1 }

</bundles_post_ra>
